<compile_context>
chip_gen: v5e
topology: v5e:2x2
jax: 0.10.0
libtpu: 0.0.40
codegen_flags: <defaults>
</compile_context>

<pallas_src>
import jax
import jax.numpy as jnp
from jax.experimental import pallas as pl
from jax.experimental.pallas import tpu as pltpu

L = 40          # input_length (PyTorch default)
C1 = 16         # conv1 out channels
C2 = 32         # conv2 out channels
H = 64          # hidden of first Linear
LP = L + 2      # conv1 output length including conv2's two zero-pad columns


def cnn_oracle_kernel(x_ref, w1_ref, b1_ref, w2_ref, b2_ref, w3_ref, b3_ref,
                      w4_ref, b4_ref, out_ref):
    # ---- conv1 + ReLU as one dense matmul against a banded weight ----
    # y1[b, c1*LP + p] = relu(conv1(x)[b, c1, p-1]); p = 0 and LP-1 stay 0
    # (they are conv2's zero padding, encoded as zero columns + zero bias).
    y1 = jnp.dot(x_ref[...], w1_ref[...], preferred_element_type=jnp.float32)
    y1 = jnp.maximum(y1 + b1_ref[...], 0.0)                    # (B, C1*LP)

    # ---- conv2 + ReLU as one dense matmul; output IS the channel-major
    # flatten (feat[b, c*L + l]), so no relayout / flatten loop is needed ----
    feat = jnp.dot(y1, w2_ref[...], preferred_element_type=jnp.float32)
    feat = jnp.maximum(feat + b2_ref[...], 0.0)                # (B, C2*L)

    # ---- Linear(32*L -> 64) + ReLU ----
    h = jnp.dot(feat, w3_ref[...], preferred_element_type=jnp.float32)
    h = jnp.maximum(h + b3_ref[...], 0.0)                      # (B, H)

    # ---- Linear(64 -> 1) + Sigmoid: VPU multiply + lane reduction ----
    logit = jnp.sum(h * w4_ref[...], axis=-1, keepdims=True) + b4_ref[...]
    z = jnp.exp(-jnp.abs(logit))                               # stable sigmoid
    inv = pl.reciprocal(1.0 + z, approx=True)                  # EUP slot
    out_ref[...] = jnp.where(logit >= 0.0, inv, z * inv)


def prepare_params(params):
    """One-time re-layout of PyTorch parameters into the banded-matmul weights
    the kernel consumes.  Pure function of params — call once and cache."""
    w1, b1, w2, b2, w3, b3, w4, b4 = [jnp.asarray(p, jnp.float32) for p in params]

    # conv1 -> W1b (L, C1*LP):  W1b[q, c1*LP + p] = w1[c1, 0, q - p + 2]
    q = jnp.arange(L)[:, None]                 # x position        (L, 1)
    p = jnp.arange(LP)[None, :]                # padded y1 position (1, LP)
    interior = (p >= 1) & (p <= L)             # (1, LP)
    w1b = jnp.zeros((C1, L, LP), jnp.float32)
    for k in range(3):
        m = (((q - p + 2) == k) & interior).astype(jnp.float32)   # (L, LP)
        w1b = w1b + w1[:, 0, k][:, None, None] * m[None, :, :]
    w1b = jnp.transpose(w1b, (1, 0, 2)).reshape(L, C1 * LP)
    b1f = (b1[:, None] * interior.astype(jnp.float32)).reshape(1, C1 * LP)

    # conv2 -> W2b (C1*LP, C2*L):  W2b[c1*LP + p, c*L + l] = w2[c, c1, p - l]
    pp = jnp.arange(LP)[:, None]               # (LP, 1)
    ll = jnp.arange(L)[None, :]                # (1, L)
    w2b = jnp.zeros((C1, LP, C2, L), jnp.float32)
    for k in range(3):
        m = ((pp - ll) == k).astype(jnp.float32)                  # (LP, L)
        w2b = w2b + jnp.transpose(w2[:, :, k])[:, None, :, None] * m[None, :, None, :]
    w2b = w2b.reshape(C1 * LP, C2 * L)
    b2f = jnp.broadcast_to(b2[:, None], (C2, L)).reshape(1, C2 * L)

    w3t = jnp.transpose(w3)                    # (C2*L, H)
    b3r = b3.reshape(1, H)
    w4r = w4.reshape(1, H)
    b4r = b4.reshape(1, 1)
    return (w1b, b1f, w2b, b2f, w3t, b3r, w4r, b4r)


def cnn_oracle_forward(x, prepared):
    """x: (B, 1, L) float32 (NCW, like the PyTorch module).
    `prepared` = prepare_params(params), computed once and reused."""
    B = x.shape[0]
    x2 = x[:, 0, :].astype(jnp.float32)        # (B, L)
    vmem = pl.BlockSpec(memory_space=pltpu.MemorySpace.VMEM)
    return pl.pallas_call(
        cnn_oracle_kernel,
        out_shape=jax.ShapeDtypeStruct((B, 1), jnp.float32),
        in_specs=[vmem] * 9,
        out_specs=vmem,
    )(x2, *prepared)


def ref_forward(x, params):
    """Pure-JAX reference reproducing the PyTorch forward."""
    w1, b1, w2, b2, w3, b3, w4, b4 = params
    y = jax.lax.conv_general_dilated(x, w1, (1,), ((1, 1),),
                                     dimension_numbers=('NCH', 'OIH', 'NCH'))
    y = jax.nn.relu(y + b1[None, :, None])
    y = jax.lax.conv_general_dilated(y, w2, (1,), ((1, 1),),
                                     dimension_numbers=('NCH', 'OIH', 'NCH'))
    y = jax.nn.relu(y + b2[None, :, None])
    f = y.reshape(y.shape[0], -1)
    h = jax.nn.relu(f @ w3.T + b3)
    return jax.nn.sigmoid(h @ w4.T + b4)


if __name__ == "__main__":
    key = jax.random.PRNGKey(0)
    ks = jax.random.split(key, 9)
    params = (
        jax.random.normal(ks[0], (C1, 1, 3), jnp.float32) * 0.3,    # conv1.weight
        jax.random.normal(ks[1], (C1,), jnp.float32) * 0.1,         # conv1.bias
        jax.random.normal(ks[2], (C2, C1, 3), jnp.float32) * 0.1,   # conv2.weight
        jax.random.normal(ks[3], (C2,), jnp.float32) * 0.1,         # conv2.bias
        jax.random.normal(ks[4], (H, C2 * L), jnp.float32) * 0.02,  # fc1.weight
        jax.random.normal(ks[5], (H,), jnp.float32) * 0.1,          # fc1.bias
        jax.random.normal(ks[6], (1, H), jnp.float32) * 0.1,        # fc2.weight
        jax.random.normal(ks[7], (1,), jnp.float32) * 0.1,          # fc2.bias
    )
    x = jax.random.normal(ks[8], (2, 1, L), jnp.float32)            # (B, C=1, L)

    prepared = prepare_params(params)          # hoisted: done once per model
    out = cnn_oracle_forward(x, prepared)
    out = jax.block_until_ready(out)

    ref = ref_forward(x, params)
    assert out.shape == (2, 1)
    assert jnp.allclose(out, ref, atol=2e-3, rtol=2e-3), (out, ref)
    print("KERNEL_OK")
</pallas_src>

<mosaic_0001>
module attributes {stable_mosaic.version = 11 : i64} {
  func.func @cnn_oracle_kernel(%arg0: memref<2x40xf32, #tpu.memory_space<vmem>>, %arg1: memref<40x672xf32, #tpu.memory_space<vmem>>, %arg2: memref<1x672xf32, #tpu.memory_space<vmem>>, %arg3: memref<672x1280xf32, #tpu.memory_space<vmem>>, %arg4: memref<1x1280xf32, #tpu.memory_space<vmem>>, %arg5: memref<1280x64xf32, #tpu.memory_space<vmem>>, %arg6: memref<1x64xf32, #tpu.memory_space<vmem>>, %arg7: memref<1x64xf32, #tpu.memory_space<vmem>>, %arg8: memref<1x1xf32, #tpu.memory_space<vmem>>, %arg9: memref<2x1xf32, #tpu.memory_space<vmem>>) attributes {dimension_semantics = [], scalar_prefetch = 0 : i64, scratch_operands = 0 : i64, tpu.core_type = #tpu.core_type<tc>} {
    %c0 = arith.constant 0 : index
    %c0_0 = arith.constant 0 : index
    %0 = vector.load %arg0[%c0, %c0_0] : memref<2x40xf32, #tpu.memory_space<vmem>>, vector<2x40xf32>
    %c0_1 = arith.constant 0 : index
    %c0_2 = arith.constant 0 : index
    %1 = vector.load %arg1[%c0_1, %c0_2] : memref<40x672xf32, #tpu.memory_space<vmem>>, vector<40x672xf32>
    %cst = arith.constant dense<0.000000e+00> : vector<2x672xf32>
    %2 = tpu.matmul %0, %1, %cst {dimension_numbers = #tpu.dot_dimension_numbers<[1], [0], [0], [1], [0, 0, 1, 1], [], []>} : vector<2x40xf32>, vector<40x672xf32>, vector<2x672xf32> -> vector<2x672xf32>
    %c0_3 = arith.constant 0 : index
    %c0_4 = arith.constant 0 : index
    %3 = vector.load %arg2[%c0_3, %c0_4] : memref<1x672xf32, #tpu.memory_space<vmem>>, vector<1x672xf32>
    %4 = vector.broadcast %3 : vector<1x672xf32> to vector<2x672xf32>
    %5 = arith.addf %2, %4 : vector<2x672xf32>
    %cst_5 = arith.constant 0.000000e+00 : f32
    %6 = vector.broadcast %cst_5 : f32 to vector<2x672xf32>
    %7 = arith.maximumf %5, %6 : vector<2x672xf32>
    %c0_6 = arith.constant 0 : index
    %c0_7 = arith.constant 0 : index
    %8 = vector.load %arg3[%c0_6, %c0_7] : memref<672x1280xf32, #tpu.memory_space<vmem>>, vector<672x1280xf32>
    %cst_8 = arith.constant dense<0.000000e+00> : vector<2x1280xf32>
    %9 = tpu.matmul %7, %8, %cst_8 {dimension_numbers = #tpu.dot_dimension_numbers<[1], [0], [0], [1], [0, 0, 1, 1], [], []>} : vector<2x672xf32>, vector<672x1280xf32>, vector<2x1280xf32> -> vector<2x1280xf32>
    %c0_9 = arith.constant 0 : index
    %c0_10 = arith.constant 0 : index
    %10 = vector.load %arg4[%c0_9, %c0_10] : memref<1x1280xf32, #tpu.memory_space<vmem>>, vector<1x1280xf32>
    %11 = vector.broadcast %10 : vector<1x1280xf32> to vector<2x1280xf32>
    %12 = arith.addf %9, %11 : vector<2x1280xf32>
    %cst_11 = arith.constant 0.000000e+00 : f32
    %13 = vector.broadcast %cst_11 : f32 to vector<2x1280xf32>
    %14 = arith.maximumf %12, %13 : vector<2x1280xf32>
    %c0_12 = arith.constant 0 : index
    %c0_13 = arith.constant 0 : index
    %15 = vector.load %arg5[%c0_12, %c0_13] : memref<1280x64xf32, #tpu.memory_space<vmem>>, vector<1280x64xf32>
    %cst_14 = arith.constant dense<0.000000e+00> : vector<2x64xf32>
    %16 = tpu.matmul %14, %15, %cst_14 {dimension_numbers = #tpu.dot_dimension_numbers<[1], [0], [0], [1], [0, 0, 1, 1], [], []>} : vector<2x1280xf32>, vector<1280x64xf32>, vector<2x64xf32> -> vector<2x64xf32>
    %c0_15 = arith.constant 0 : index
    %c0_16 = arith.constant 0 : index
    %17 = vector.load %arg6[%c0_15, %c0_16] : memref<1x64xf32, #tpu.memory_space<vmem>>, vector<1x64xf32>
    %18 = vector.broadcast %17 : vector<1x64xf32> to vector<2x64xf32>
    %19 = arith.addf %16, %18 : vector<2x64xf32>
    %cst_17 = arith.constant 0.000000e+00 : f32
    %20 = vector.broadcast %cst_17 : f32 to vector<2x64xf32>
    %21 = arith.maximumf %19, %20 : vector<2x64xf32>
    %c0_18 = arith.constant 0 : index
    %c0_19 = arith.constant 0 : index
    %22 = vector.load %arg7[%c0_18, %c0_19] : memref<1x64xf32, #tpu.memory_space<vmem>>, vector<1x64xf32>
    %23 = vector.broadcast %22 : vector<1x64xf32> to vector<2x64xf32>
    %24 = arith.mulf %21, %23 : vector<2x64xf32>
    %cst_20 = arith.constant dense<0.000000e+00> : vector<2xf32>
    %25 = vector.multi_reduction <add>, %24, %cst_20 [1] : vector<2x64xf32> to vector<2xf32>
    %26 = vector.shape_cast %25 : vector<2xf32> to vector<2x1xf32>
    %c0_21 = arith.constant 0 : index
    %c0_22 = arith.constant 0 : index
    %27 = vector.load %arg8[%c0_21, %c0_22] : memref<1x1xf32, #tpu.memory_space<vmem>>, vector<1x1xf32>
    %28 = vector.broadcast %27 : vector<1x1xf32> to vector<2x1xf32>
    %29 = arith.addf %26, %28 : vector<2x1xf32>
    %30 = math.absf %29 : vector<2x1xf32>
    %cst_23 = arith.constant 0.000000e+00 : f32
    %31 = vector.broadcast %cst_23 : f32 to vector<2x1xf32>
    %32 = arith.subf %31, %30 : vector<2x1xf32>
    %33 = math.exp %32 : vector<2x1xf32>
    %cst_24 = arith.constant 1.000000e+00 : f32
    %34 = vector.broadcast %cst_24 : f32 to vector<2x1xf32>
    %35 = arith.addf %34, %33 : vector<2x1xf32>
    %36 = tpu.reciprocal %35 {approx = true} : vector<2x1xf32> -> vector<2x1xf32>
    %cst_25 = arith.constant 0.000000e+00 : f32
    %37 = vector.broadcast %cst_25 : f32 to vector<2x1xf32>
    %38 = arith.cmpf oge, %29, %37 : vector<2x1xf32>
    %39 = arith.mulf %33, %36 : vector<2x1xf32>
    %40 = arith.select %38, %36, %39 : vector<2x1xi1>, vector<2x1xf32>
    %c0_26 = arith.constant 0 : index
    %c0_27 = arith.constant 0 : index
    %41 = vector.load %arg9[%c0_26, %c0_27] : memref<2x1xf32, #tpu.memory_space<vmem>>, vector<2x1xf32>
    tpu.vector_store %arg9[%c0_26, %c0_27], %40 {strides = array<i32>} : memref<2x1xf32, #tpu.memory_space<vmem>>, vector<2x1xf32>,
    return
  }
}

</mosaic_0001>

<bundles_post_ra>
// kernel: tpu_custom_call.1
= control target key start
LH: loop header
LB: loop body
LE: loop exit
PB: predicated region body
PF: predicated region fallthrough
CT: control target
= control target key end

     0   :  { %s3781_s0 = inlined_call_operand.hbm [shape: f32[2,40], index: 0, kind: input, shape index: {}]   ;;  %s3782_s1 = inlined_call_operand.hbm [shape: f32[40,672], index: 1, kind: input, shape index: {}]   ;;  %s3783_s2 = inlined_call_operand.hbm [shape: f32[1,672], index: 2, kind: input, shape index: {}]   ;;  %s3784_s3 = inlined_call_operand.hbm [shape: f32[672,1280], index: 3, kind: input, shape index: {}]   ;;  %s3785_s4 = inlined_call_operand.hbm [shape: f32[1,1280], index: 4, kind: input, shape index: {}]   ;;  %s3786_s5 = inlined_call_operand.vmem [shape: f32[1280,64], index: 5, kind: input, shape index: {}]   ;;  %s3787_s6 = inlined_call_operand.hbm [shape: f32[1,64], index: 6, kind: input, shape index: {}]   ;;  %s3788_s7 = inlined_call_operand.hbm [shape: f32[1,64], index: 7, kind: input, shape index: {}]   ;;  %s3789_s8 = inlined_call_operand.<no memory space> [shape: f32[1,1], index: 8, kind: input, shape index: {}]   ;;  %s3790_s9 = inlined_call_operand.vmem [shape: f32[2,1], index: 9, kind: output, shape index: {}]  }
   0x1   :  { %v14_v0 = vstv %s3789_s8 }
   0x2   :  { %15 = vst [vmem:[#allocation2] sm:$0x1] %v14_v0 }
   0x3   :  { %16 = vsyncpa [#allocation4], 0 }
   0x4   :  { %17 = vsyncpa [#allocation6], 0 }
   0x5   :  { %18 = vsyncpa [#allocation9], 0  ;;  %s35_s13 = sshll.u32 %s3782_s1, 4  ;;  %s36_s13 = int_to_ptr.hbm [resolvable:$true] %s35_s13 }
   0x6   :  { %19 = vsyncpa [#allocation12], 0  ;;  %s2994_s14 = smov [#allocation5]   ;;  %s59_s18 = sshll.u32 %s3784_s3, 4  ;;  %s60_s18 = int_to_ptr.hbm [resolvable:$true] %s59_s18 }
   0x7   :  { %s37_s15 = sshll.u32 %s2994_s14, 4  ;;  %s2995_s19 = smov 768   ;;  %s38_s15 = int_to_ptr.vmem [resolvable:$true] %s37_s15 }
   0x8   :  { %s2996_s20 = smov 48   ;;  %s2997_s8 = smov [#allocation8]  }
   0x9   :  { %43 = dma.hbm_to_vmem [thread:$0]  %s36_s13, 3840, %s38_s15, [#allocation6], %s2995_s19, %s2995_s19, %s2996_s20  }
   0xa   :  { %s61_s21 = sshll.u32 %s2997_s8, 4  ;;  %s2998_s22 = smov 1280   ;;  %s62_s21 = int_to_ptr.vmem [resolvable:$true] %s61_s21 }
   0xb   :  { %s2999_s23 = smov 80   ;;  %s86_s25 = sshll.u32 %s3787_s6, 4  ;;  %s87_s25 = int_to_ptr.hbm [resolvable:$true] %s86_s25 }
   0xc   :  { %67 = dma.hbm_to_vmem [thread:$0]  %s60_s18, 107520, %s62_s21, [#allocation9], %s2998_s22, %s2998_s22, %s2999_s23  }
   0xd   :  { %s3000_s26 = smov [#allocation11]   ;;  %s25_s29 = sshll.u32 %s3781_s0, 4  ;;  %s26_s29 = int_to_ptr.hbm [resolvable:$true] %s25_s29 }
   0xe   :  { %s88_s27 = sshll.u32 %s3000_s26, 4  ;;  %s3001_s30 = smov [#allocation3]   ;;  %s89_s27 = int_to_ptr.vmem [resolvable:$true] %s88_s27 }
   0xf   :  { %91 = dma.hbm_to_vmem [thread:$0]  %s87_s25, 16, %s89_s27, [#allocation12]  }
  0x10   :  { %s27_s10 = sshll.u32 %s3001_s30, 4  ;;  %s49_s13 = sshll.u32 %s3783_s2, 4  ;;  %s28_s10 = int_to_ptr.vmem [resolvable:$true] %s27_s10  ;;  %s50_s13 = int_to_ptr.hbm [resolvable:$true] %s49_s13 }
  0x11   :  { %30 = dma.hbm_to_vmem [thread:$0]  %s26_s29, 32, %s28_s10, [#allocation4]  }
  0x12   :  { %s73_s15 = sshll.u32 %s3785_s4, 4  ;;  %s3002_s16 = smov [#allocation7]   ;;  %s74_s15 = int_to_ptr.hbm [resolvable:$true] %s73_s15 }
  0x13   :  { %s51_s17 = sshll.u32 %s3002_s16, 4  ;;  %s3003_s0 = smov [#allocation10]   ;;  %s52_s17 = int_to_ptr.vmem [resolvable:$true] %s51_s17 }
  0x14   :  { %54 = dma.hbm_to_vmem [thread:$0]  %s50_s13, 96, %s52_s17, [#allocation6]  }
  0x15   :  { %s75_s18 = sshll.u32 %s3003_s0, 4  ;;  %s97_s8 = sshll.u32 %s3788_s7, 4  ;;  %s76_s18 = int_to_ptr.vmem [resolvable:$true] %s75_s18  ;;  %s98_s8 = int_to_ptr.hbm [resolvable:$true] %s97_s8 }
  0x16   :  { %78 = dma.hbm_to_vmem [thread:$0]  %s74_s15, 160, %s76_s18, [#allocation9]  }
  0x17   :  { %s3004_s2 = smov [#allocation13]  }
  0x18   :  { %s99_s21 = sshll.u32 %s3004_s2, 4  ;;  %s100_s21 = int_to_ptr.vmem [resolvable:$true] %s99_s21 }
  0x19   :  { %102 = dma.hbm_to_vmem [thread:$0]  %s98_s8, 16, %s100_s21, [#allocation12]  }
  0x1a   :  { %2986 = dma.done.wait [#allocation4], 32  }
  0x1b   :  { %2987 = vsyncadd [#allocation4], 4294967264 }
  0x1c   :  { %2988 = dma.done.wait [#allocation6], 3936  }
  0x1d   :  { %2989 = vsyncadd [#allocation6], 4294963360 }
  0x1e   :  { %2990 = dma.done.wait [#allocation9], 107680  }
  0x1f   :  { %2991 = vsyncadd [#allocation9], 4294859616 }
  0x20   :  { %2992 = dma.done.wait [#allocation12], 32  }
  0x21   :  { %2993 = vsyncadd [#allocation12], 4294967264  ;;  %v158_v1 = vld [vmem:[#allocation5 + $0xc0] sm:$0xff]  ;;  %v160_v2 = vld [vmem:[#allocation5 + $0xd0] sm:$0xff]  ;;  %vm178_vm0 = vcmask 326656   ;;  %vm1172_vm1 = vcmask 261120  }
  0x22   :  { %v161_v3 = vld [vmem:[#allocation5 + $0xd8] sm:$0xff]  ;;  %193 = vmatpush.msra.mxu1 %v158_v1  ;;  %233 = vmatpush.msra.mxu2 %v160_v2  ;;  %v152_v4 = vld [vmem:[#allocation5 + $0x90] sm:$0xff]  ;;  %v154_v5 = vld [vmem:[#allocation5 + $0xa0] sm:$0xff]  ;;  %vm2756_vm2 = vcmask 517120   ;;  %vm2774_vm3 = vcmask 1024  }
  0x23   :  { %v155_v6 = vld [vmem:[#allocation5 + $0xa8] sm:$0xff]  ;;  %253 = vmatpush.msra.mxu3 %v161_v3  ;;  %v146_v7 = vld [vmem:[#allocation5 + $0x60] sm:$0xff]  ;;  %v148_v8 = vld [vmem:[#allocation5 + $0x70] sm:$0xff] }
  0x24   :  { %194 = vmatpush.msra.mxu1 %v152_v4  ;;  %234 = vmatpush.msra.mxu2 %v154_v5  ;;  %v149_v9 = vld [vmem:[#allocation5 + $0x78] sm:$0xff]  ;;  %v140_v10 = vld [vmem:[#allocation5 + $0x30] sm:$0xff]  ;;  %v142_v11 = vld [vmem:[#allocation5 + $0x40] sm:$0xff] }
  0x25   :  { %254 = vmatpush.msra.mxu3 %v155_v6  ;;  %v143_v12 = vld [vmem:[#allocation5 + $0x48] sm:$0xff]  ;;  %v134_v13 = vld [vmem:[#allocation5] sm:$0xff]  ;;  %v136_v14 = vld [vmem:[#allocation5 + $0x10] sm:$0xff] }
  0x26   :  { %195 = vmatpush.msra.mxu1 %v146_v7  ;;  %235 = vmatpush.msra.mxu2 %v148_v8  ;;  %v162_v15 = vld [vmem:[#allocation5 + $0xe0] sm:$0xff]  ;;  %v137_v16 = vld [vmem:[#allocation5 + $0x18] sm:$0xff]  ;;  %v159_v18 = vld [vmem:[#allocation5 + $0xc8] sm:$0xff] }
  0x27   :  { %255 = vmatpush.msra.mxu3 %v149_v9  ;;  %v3079_v17 = vld [vmem:[#allocation3] sm:$0x3]  ;;  %273 = vmatpush.msra.mxu0 %v162_v15  ;;  %v156_v19 = vld [vmem:[#allocation5 + $0xb0] sm:$0xff]  ;;  %v458_v21 = vld [vmem:[#allocation8 + $0x4b0] sm:$0xff] }
  0x28   :  { %196 = vmatpush.msra.mxu1 %v140_v10  ;;  %236 = vmatpush.msra.mxu2 %v142_v11  ;;  %v153_v20 = vld [vmem:[#allocation5 + $0x98] sm:$0xff]  ;;  %v150_v22 = vld [vmem:[#allocation5 + $0x80] sm:$0xff]  ;;  %v147_v23 = vld [vmem:[#allocation5 + $0x68] sm:$0xff] }
  0x29   :  { %256 = vmatpush.msra.mxu3 %v143_v12  ;;  %274 = vmatpush.msra.mxu0 %v156_v19  ;;  %v448_v24 = vld [vmem:[#allocation8 + $0x460] sm:$0xff]  ;;  %v618_v25 = vld [vmem:[#allocation8 + $0x9b0] sm:$0xff] }
  0x2a   :  { %197 = vmatpush.msra.mxu1 %v134_v13  ;;  %237 = vmatpush.msra.mxu2 %v136_v14  ;;  %v144_v26 = vld [vmem:[#allocation5 + $0x50] sm:$0xff]  ;;  %v141_v28 = vld [vmem:[#allocation5 + $0x38] sm:$0xff]  ;;  %v438_v29 = vld [vmem:[#allocation8 + $0x410] sm:$0xff] }
  0x2b   :  { %257 = vmatpush.msra.mxu3 %v137_v16  ;;  %2784 = vmatmul.msk.f32.vlgmr.msra.gmra.mxu1 %vm178_vm0, %v3079_v17  ;;  %v608_v27 = vld [vmem:[#allocation8 + $0x960] sm:$0xff]  ;;  %v138_v30 = vld [vmem:[#allocation5 + $0x20] sm:$0xff]  ;;  %v135_v32 = vld [vmem:[#allocation5 + $0x8] sm:$0xff] }
  0x2c   :  { %213 = vmatpush.msrb.mxu1 %v159_v18  ;;  %2786 = vmatmul.msk.f32.vlgmr.msra.gmra.mxu2 %vm178_vm0, %v3079_v17  ;;  %v598_v31 = vld [vmem:[#allocation8 + $0x910] sm:$0xff]  ;;  %v428_v33 = vld [vmem:[#allocation8 + $0x3c0] sm:$0xff] }
  0x2d   :  { %2787 = vmatmul.msk.f32.vlgmr.msra.gmra.mxu3 %vm178_vm0, %v3079_v17  ;;  %1176 = vmatpush.msrb.mxu2 %v458_v21  ;;  %v163_v34 = vld [vmem:[#allocation5 + $0xe8] sm:$0xff]  ;;  %v588_v37 = vld [vmem:[#allocation8 + $0x8c0] sm:$0xff] }
  0x2e   :  { %214 = vmatpush.msrb.mxu1 %v153_v20  ;;  %275 = vmatpush.msra.mxu0 %v150_v22  ;;  %v778_v35 = vld [vmem:[#allocation8 + $0xeb0] sm:$0xff]  ;;  %v157_v38 = vld [vmem:[#allocation5 + $0xb8] sm:$0xff] }
  0x2f   :  { %1196 = vmatpush.msrb.mxu3 %v618_v25  ;;  %1177 = vmatpush.msrb.mxu2 %v448_v24  ;;  %v418_v36 = vld [vmem:[#allocation8 + $0x370] sm:$0xff]  ;;  %v768_v39 = vld [vmem:[#allocation8 + $0xe60] sm:$0xff] }
  0x30   :  { %215 = vmatpush.msrb.mxu1 %v147_v23  ;;  %276 = vmatpush.msra.mxu0 %v144_v26  ;;  %v408_v40 = vld [vmem:[#allocation8 + $0x320] sm:$0xff]  ;;  %v578_v41 = vld [vmem:[#allocation8 + $0x870] sm:$0xff] }
  0x31   :  { %1197 = vmatpush.msrb.mxu3 %v608_v27  ;;  %1178 = vmatpush.msrb.mxu2 %v438_v29  ;;  %v151_v42 = vld [vmem:[#allocation5 + $0x88] sm:$0xff]  ;;  %v568_v45 = vld [vmem:[#allocation8 + $0x820] sm:$0xff] }
  0x32   :  { %216 = vmatpush.msrb.mxu1 %v141_v28  ;;  %277 = vmatpush.msra.mxu0 %v138_v30  ;;  %v758_v43 = vld [vmem:[#allocation8 + $0xe10] sm:$0xff]  ;;  %v145_v46 = vld [vmem:[#allocation5 + $0x58] sm:$0xff]  ;;  %v459_v27 = vld [vmem:[#allocation8 + $0x4b8] sm:$0xff] }
  0x33   :  { %1198 = vmatpush.msrb.mxu3 %v598_v31  ;;  %2788 = vmatmul.msk.f32.vlgmr.msra.gmra.mxu0 %vm178_vm0, %v3079_v17  ;;  %v398_v44 = vld [vmem:[#allocation8 + $0x2d0] sm:$0xff]  ;;  %v748_v47 = vld [vmem:[#allocation8 + $0xdc0] sm:$0xff]  ;;  %v619_v31 = vld [vmem:[#allocation8 + $0x9b8] sm:$0xff] }
  0x34   :  { %217 = vmatpush.msrb.mxu1 %v135_v32  ;;  %1179 = vmatpush.msrb.mxu2 %v428_v33  ;;  %v388_v48 = vld [vmem:[#allocation8 + $0x280] sm:$0xff]  ;;  %v558_v49 = vld [vmem:[#allocation8 + $0x7d0] sm:$0xff]  ;;  %v449_v32 = vld [vmem:[#allocation8 + $0x468] sm:$0xff] }
  0x35   :  { %2785 = vmatmul.msk.f32.vlgmr.msrb.gmra.mxu1 %vm178_vm0, %v3079_v17  ;;  %1216 = vmatpush.msrb.mxu0 %v778_v35  ;;  %v139_v50 = vld [vmem:[#allocation5 + $0x28] sm:$0xff]  ;;  %v728_v53 = vld [vmem:[#allocation8 + $0xd20] sm:$0xff]  ;;  %v609_v35 = vld [vmem:[#allocation8 + $0x968] sm:$0xff] }
  0x36   :  { %293 = vmatpush.msra.mxu1 %v163_v34  ;;  %1180 = vmatpush.msrb.mxu2 %v418_v36  ;;  %v738_v51 = vld [vmem:[#allocation8 + $0xd70] sm:$0xff]  ;;  %v548_v54 = vld [vmem:[#allocation8 + $0x780] sm:$0xff]  ;;  %v439_v36 = vld [vmem:[#allocation8 + $0x418] sm:$0xff] }
  0x37   :  { %1199 = vmatpush.msrb.mxu3 %v588_v37  ;;  %1217 = vmatpush.msrb.mxu0 %v768_v39  ;;  %v378_v52 = vld [vmem:[#allocation8 + $0x230] sm:$0xff]  ;;  %v368_v55 = vld [vmem:[#allocation8 + $0x1e0] sm:$0xff]  ;;  %v599_v39 = vld [vmem:[#allocation8 + $0x918] sm:$0xff] }
  0x38   :  { %294 = vmatpush.msra.mxu1 %v157_v38  ;;  %1181 = vmatpush.msrb.mxu2 %v408_v40  ;;  %v938_v56 = vld [vmem:[#allocation8 + $0x13b0] sm:$0xff]  ;;  %v928_v60 = vld [vmem:[#allocation8 + $0x1360] sm:$0xff]  ;;  %v429_v40 = vld [vmem:[#allocation8 + $0x3c8] sm:$0xff] }
  0x39   :  { %1200 = vmatpush.msrb.mxu3 %v578_v41  ;;  %1218 = vmatpush.msrb.mxu0 %v758_v43  ;;  %v718_v57 = vld [vmem:[#allocation8 + $0xcd0] sm:$0xff]  ;;  %v708_v61 = vld [vmem:[#allocation8 + $0xc80] sm:$0xff]  ;;  %v589_v43 = vld [vmem:[#allocation8 + $0x8c8] sm:$0xff] }
  0x3a   :  { %295 = vmatpush.msra.mxu1 %v151_v42  ;;  %1182 = vmatpush.msrb.mxu2 %v398_v44  ;;  %v538_v58 = vld [vmem:[#allocation8 + $0x730] sm:$0xff]  ;;  %v528_v62 = vld [vmem:[#allocation8 + $0x6e0] sm:$0xff]  ;;  %v419_v44 = vld [vmem:[#allocation8 + $0x378] sm:$0xff] }
  0x3b   :  { %1201 = vmatpush.msrb.mxu3 %v568_v45  ;;  %1219 = vmatpush.msrb.mxu0 %v748_v47  ;;  %v358_v59 = vld [vmem:[#allocation8 + $0x190] sm:$0xff]  ;;  %v348_v63 = vld [vmem:[#allocation8 + $0x140] sm:$0xff]  ;;  %v579_v47 = vld [vmem:[#allocation8 + $0x878] sm:$0xff] }
  0x3c   :  { %296 = vmatpush.msra.mxu1 %v145_v46  ;;  %1183 = vmatpush.msrb.mxu2 %v388_v48  ;;  %v918_v0 = vld [vmem:[#allocation8 + $0x1310] sm:$0xff]  ;;  %v908_v4 = vld [vmem:[#allocation8 + $0x12c0] sm:$0xff]  ;;  %v409_v48 = vld [vmem:[#allocation8 + $0x328] sm:$0xff] }
  0x3d   :  { %1202 = vmatpush.msrb.mxu3 %v558_v49  ;;  %1220 = vmatpush.msrb.mxu0 %v738_v51  ;;  %v698_v1 = vld [vmem:[#allocation8 + $0xc30] sm:$0xff]  ;;  %v688_v5 = vld [vmem:[#allocation8 + $0xbe0] sm:$0xff]  ;;  %v399_v51 = vld [vmem:[#allocation8 + $0x2d8] sm:$0xff] }
  0x3e   :  { %297 = vmatpush.msra.mxu1 %v139_v50  ;;  %1184 = vmatpush.msrb.mxu2 %v378_v52  ;;  %v518_v2 = vld [vmem:[#allocation8 + $0x690] sm:$0xff]  ;;  %v508_v6 = vld [vmem:[#allocation8 + $0x640] sm:$0xff]  ;;  %v569_v50 = vld [vmem:[#allocation8 + $0x828] sm:$0xff] }
  0x3f   :  { %2789 = vmatmul.msk.f32.vlgmr.msra.gmra.mxu1 %vm178_vm0, %v3079_v17  ;;  %1221 = vmatpush.msrb.mxu0 %v728_v53  ;;  %v338_v3 = vld [vmem:[#allocation8 + $0xf0] sm:$0xff]  ;;  %v328_v7 = vld [vmem:[#allocation8 + $0xa0] sm:$0xff]  ;;  %v559_v53 = vld [vmem:[#allocation8 + $0x7d8] sm:$0xff] }
  0x40   :  { %1203 = vmatpush.msrb.mxu3 %v548_v54  ;;  %1185 = vmatpush.msrb.mxu2 %v368_v55  ;;  %v898_v8 = vld [vmem:[#allocation8 + $0x1270] sm:$0xff]  ;;  %v888_v12 = vld [vmem:[#allocation8 + $0x1220] sm:$0xff]  ;;  %v389_v54 = vld [vmem:[#allocation8 + $0x288] sm:$0xff] }
  0x41   :  { %1236 = vmatpush.msrb.mxu1 %v938_v56  ;;  %1222 = vmatpush.msrb.mxu0 %v718_v57  ;;  %v678_v9 = vld [vmem:[#allocation8 + $0xb90] sm:$0xff]  ;;  %v668_v13 = vld [vmem:[#allocation8 + $0xb40] sm:$0xff]  ;;  %v549_v56 = vld [vmem:[#allocation8 + $0x788] sm:$0xff] }
  0x42   :  { %1204 = vmatpush.msrb.mxu3 %v538_v58  ;;  %1186 = vmatpush.msrb.mxu2 %v358_v59  ;;  %v498_v10 = vld [vmem:[#allocation8 + $0x5f0] sm:$0xff]  ;;  %v488_v14 = vld [vmem:[#allocation8 + $0x5a0] sm:$0xff]  ;;  %v379_v57 = vld [vmem:[#allocation8 + $0x238] sm:$0xff] }
  0x43   :  { %1237 = vmatpush.msrb.mxu1 %v928_v60  ;;  %1223 = vmatpush.msrb.mxu0 %v708_v61  ;;  %v318_v11 = vld [vmem:[#allocation8 + $0x50] sm:$0xff]  ;;  %v308_v15 = vld [vmem:[#allocation8] sm:$0xff]  ;;  %v539_v59 = vld [vmem:[#allocation8 + $0x738] sm:$0xff] }
  0x44   :  { %1205 = vmatpush.msrb.mxu3 %v528_v62  ;;  %1187 = vmatpush.msrb.mxu2 %v348_v63  ;;  %v658_v16 = vld [vmem:[#allocation8 + $0xaf0] sm:$0xff]  ;;  %v868_v20 = vld [vmem:[#allocation8 + $0x1180] sm:$0xff]  ;;  %v529_v61 = vld [vmem:[#allocation8 + $0x6e8] sm:$0xff] }
  0x45   :  { %1238 = vmatpush.msrb.mxu1 %v918_v0  ;;  %1224 = vmatpush.msrb.mxu0 %v698_v1  ;;  %v878_v17 = vld [vmem:[#allocation8 + $0x11d0] sm:$0xff]  ;;  %v648_v21 = vld [vmem:[#allocation8 + $0xaa0] sm:$0xff]  ;;  %v369_v0 = vld [vmem:[#allocation8 + $0x1e8] sm:$0xff] }
  0x46   :  { %1206 = vmatpush.msrb.mxu3 %v518_v2  ;;  %1188 = vmatpush.msrb.mxu2 %v338_v3  ;;  %v1098_v18 = vld [vmem:[#allocation8 + $0x18b0] sm:$0xff]  ;;  %v1088_v22 = vld [vmem:[#allocation8 + $0x1860] sm:$0xff]  ;;  %v519_v1 = vld [vmem:[#allocation8 + $0x698] sm:$0xff] }
  0x47   :  { %1239 = vmatpush.msrb.mxu1 %v908_v4  ;;  %1225 = vmatpush.msrb.mxu0 %v688_v5  ;;  %v478_v19 = vld [vmem:[#allocation8 + $0x550] sm:$0xff]  ;;  %v468_v23 = vld [vmem:[#allocation8 + $0x500] sm:$0xff]  ;;  %v359_v4 = vld [vmem:[#allocation8 + $0x198] sm:$0xff] }
  0x48   :  { %1207 = vmatpush.msrb.mxu3 %v508_v6  ;;  %1189 = vmatpush.msrb.mxu2 %v328_v7  ;;  %v858_v24 = vld [vmem:[#allocation8 + $0x1130] sm:$0xff]  ;;  %v848_v28 = vld [vmem:[#allocation8 + $0x10e0] sm:$0xff]  ;;  %v509_v5 = vld [vmem:[#allocation8 + $0x648] sm:$0xff] }
  0x49   :  { %1240 = vmatpush.msrb.mxu1 %v898_v8  ;;  %1226 = vmatpush.msrb.mxu0 %v678_v9  ;;  %v638_v25 = vld [vmem:[#allocation8 + $0xa50] sm:$0xff]  ;;  %v628_v29 = vld [vmem:[#allocation8 + $0xa00] sm:$0xff]  ;;  %v349_v8 = vld [vmem:[#allocation8 + $0x148] sm:$0xff] }
  0x4a   :  { %1208 = vmatpush.msrb.mxu3 %v498_v10  ;;  %1190 = vmatpush.msrb.mxu2 %v318_v11  ;;  %v1078_v26 = vld [vmem:[#allocation8 + $0x1810] sm:$0xff]  ;;  %v1068_v30 = vld [vmem:[#allocation8 + $0x17c0] sm:$0xff]  ;;  %v499_v9 = vld [vmem:[#allocation8 + $0x5f8] sm:$0xff] }
  0x4b   :  { %1241 = vmatpush.msrb.mxu1 %v888_v12  ;;  %1227 = vmatpush.msrb.mxu0 %v668_v13  ;;  %v1058_v33 = vld [vmem:[#allocation8 + $0x1770] sm:$0xff]  ;;  %v1048_v37 = vld [vmem:[#allocation8 + $0x1720] sm:$0xff]  ;;  %v339_v11 = vld [vmem:[#allocation8 + $0xf8] sm:$0xff] }
  0x4c   :  { %1209 = vmatpush.msrb.mxu3 %v488_v14  ;;  %1191 = vmatpush.msrb.mxu2 %v308_v15  ;;  %v838_v34 = vld [vmem:[#allocation8 + $0x1090] sm:$0xff]  ;;  %v828_v38 = vld [vmem:[#allocation8 + $0x1040] sm:$0xff]  ;;  %v489_v12 = vld [vmem:[#allocation8 + $0x5a8] sm:$0xff] }
  0x4d   :  { %1242 = vmatpush.msrb.mxu1 %v878_v17  ;;  %1228 = vmatpush.msrb.mxu0 %v658_v16  ;;  %v1038_v41 = vld [vmem:[#allocation8 + $0x16d0] sm:$0xff]  ;;  %v1028_v45 = vld [vmem:[#allocation8 + $0x1680] sm:$0xff]  ;;  %v329_v14 = vld [vmem:[#allocation8 + $0xa8] sm:$0xff] }
  0x4e   :  { %1256 = vmatpush.msra.mxu2 %v1098_v18  ;;  %1210 = vmatpush.msrb.mxu3 %v478_v19  ;;  %v818_v42 = vld [vmem:[#allocation8 + $0xff0] sm:$0xff]  ;;  %v808_v46 = vld [vmem:[#allocation8 + $0xfa0] sm:$0xff]  ;;  %v479_v15 = vld [vmem:[#allocation8 + $0x558] sm:$0xff] }
  0x4f   :  { %1243 = vmatpush.msrb.mxu1 %v868_v20  ;;  %1229 = vmatpush.msrb.mxu0 %v648_v21  ;;  %v1018_v49 = vld [vmem:[#allocation8 + $0x1630] sm:$0xff]  ;;  %v1008_v52 = vld [vmem:[#allocation8 + $0x15e0] sm:$0xff]  ;;  %v319_v17 = vld [vmem:[#allocation8 + $0x58] sm:$0xff] }
  0x50   :  { %1257 = vmatpush.msra.mxu2 %v1088_v22  ;;  %1211 = vmatpush.msrb.mxu3 %v468_v23  ;;  %v998_v55 = vld [vmem:[#allocation8 + $0x1590] sm:$0xff]  ;;  %v988_v58 = vld [vmem:[#allocation8 + $0x1540] sm:$0xff]  ;;  %v469_v18 = vld [vmem:[#allocation8 + $0x508] sm:$0xff] }
  0x51   :  { %1244 = vmatpush.msrb.mxu1 %v858_v24  ;;  %1230 = vmatpush.msrb.mxu0 %v638_v25  ;;  %v978_v60 = vld [vmem:[#allocation8 + $0x14f0] sm:$0xff]  ;;  %v968_v62 = vld [vmem:[#allocation8 + $0x14a0] sm:$0xff]  ;;  %v309_v19 = vld [vmem:[#allocation8 + $0x8] sm:$0xff] }
  0x52   :  { %1258 = vmatpush.msra.mxu2 %v1078_v26  ;;  %1296 = vmatpush.msra.mxu3 %v459_v27  ;;  %v798_v63 = vld [vmem:[#allocation8 + $0xf50] sm:$0xff]  ;;  %v788_v3 = vld [vmem:[#allocation8 + $0xf00] sm:$0xff]  ;;  %v3093_v20 = vld [vmem:[#allocation7] sm:$0x3f] }
  0x53   :  { %1245 = vmatpush.msrb.mxu1 %v848_v28  ;;  %1231 = vmatpush.msrb.mxu0 %v628_v29  ;;  %v958_v2 = vld [vmem:[#allocation8 + $0x1450] sm:$0xff]  ;;  %v948_v6 = vld [vmem:[#allocation8 + $0x1400] sm:$0xff]  ;;  %v166_v21 = vperm.slane %v3093_v20, 0  ;;  %v939_v25 = vld [vmem:[#allocation8 + $0x13b8] sm:$0xff]  ;;  %v168_v26 = vperm.slane %v3093_v20, 2  ;;  %v169_v27 = vperm.slane %v3093_v20, 3 }
  0x54   :  { %1259 = vmatpush.msra.mxu2 %v1068_v30  ;;  %1297 = vmatpush.msra.mxu3 %v449_v32  ;;  %v1138_v7 = vld [vmem:[#allocation8 + $0x19f0] sm:$0xff]  ;;  %v1128_v10 = vld [vmem:[#allocation8 + $0x19a0] sm:$0xff]  ;;  %v929_v28 = vld [vmem:[#allocation8 + $0x1368] sm:$0xff]  ;;  %v167_v30 = vperm.slane %v3093_v20, 1 }
  0x55   :  { %1316 = vmatpush.msra.mxu0 %v619_v31  ;;  %1246 = vmatpush.msrb.mxu1 %v838_v34  ;;  %v1118_v13 = vld [vmem:[#allocation8 + $0x1950] sm:$0xff]  ;;  %v1108_v16 = vld [vmem:[#allocation8 + $0x1900] sm:$0xff]  ;;  %v919_v31 = vld [vmem:[#allocation8 + $0x1318] sm:$0xff] }
  0x56   :  { %1260 = vmatpush.msra.mxu2 %v1058_v33  ;;  %1298 = vmatpush.msra.mxu3 %v439_v36 }
  0x57   :  { %1317 = vmatpush.msra.mxu0 %v609_v35  ;;  %1247 = vmatpush.msrb.mxu1 %v828_v38  ;;  %v909_v35 = vld [vmem:[#allocation8 + $0x12c8] sm:$0xff]  ;;  %v1139_v38 = vld [vmem:[#allocation8 + $0x19f8] sm:$0xff] }
  0x58   :  { %1261 = vmatpush.msra.mxu2 %v1048_v37  ;;  %1299 = vmatpush.msra.mxu3 %v429_v40 }
  0x59   :  { %1318 = vmatpush.msra.mxu0 %v599_v39  ;;  %1248 = vmatpush.msrb.mxu1 %v818_v42  ;;  %v899_v42 = vld [vmem:[#allocation8 + $0x1278] sm:$0xff] }
  0x5a   :  { %1262 = vmatpush.msra.mxu2 %v1038_v41  ;;  %1300 = vmatpush.msra.mxu3 %v419_v44  ;;  %v779_v41 = vld [vmem:[#allocation8 + $0xeb8] sm:$0xff]  ;;  %v1129_v44 = vld [vmem:[#allocation8 + $0x19a8] sm:$0xff] }
  0x5b   :  { %1319 = vmatpush.msra.mxu0 %v589_v43  ;;  %1249 = vmatpush.msrb.mxu1 %v808_v46  ;;  %v170_v43 = vperm.slane %v3093_v20, 4 }
  0x5c   :  { %1263 = vmatpush.msra.mxu2 %v1028_v45  ;;  %1301 = vmatpush.msra.mxu3 %v409_v48  ;;  %v1099_v48 = vld [vmem:[#allocation8 + $0x18b8] sm:$0xff] }
  0x5d   :  { %1320 = vmatpush.msra.mxu0 %v579_v47  ;;  %1250 = vmatpush.msrb.mxu1 %v798_v63  ;;  %v769_v47 = vld [vmem:[#allocation8 + $0xe68] sm:$0xff]  ;;  %v171_v63 = vperm.slane %v3093_v20, 5  ;;  %v819_v20 = vld [vmem:[#allocation8 + $0xff8] sm:$0xff] }
  0x5e   :  { %1264 = vmatpush.msra.mxu2 %v1018_v49  ;;  %1302 = vmatpush.msra.mxu3 %v399_v51  ;;  %v889_v49 = vld [vmem:[#allocation8 + $0x1228] sm:$0xff] }
  0x5f   :  { %1321 = vmatpush.msra.mxu0 %v569_v50  ;;  %1251 = vmatpush.msrb.mxu1 %v788_v3  ;;  %v1119_v50 = vld [vmem:[#allocation8 + $0x1958] sm:$0xff]  ;;  %v610_v3 = vld [vmem:[#allocation8 + $0x970] sm:$0xff] }
  0x60   :  { %1265 = vmatpush.msra.mxu2 %v1008_v52  ;;  %1303 = vmatpush.msra.mxu3 %v389_v54  ;;  %v759_v52 = vld [vmem:[#allocation8 + $0xe18] sm:$0xff] }
  0x61   :  { %1322 = vmatpush.msra.mxu0 %v559_v53  ;;  %1288 = vmatpush.msra.mxu1 %v1138_v7  ;;  %v1089_v53 = vld [vmem:[#allocation8 + $0x1868] sm:$0xff]  ;;  %v879_v54 = vld [vmem:[#allocation8 + $0x11d8] sm:$0xff] }
  0x62   :  { %1266 = vmatpush.msra.mxu2 %v998_v55  ;;  %1304 = vmatpush.msra.mxu3 %v379_v57  ;;  %v1109_v55 = vld [vmem:[#allocation8 + $0x1908] sm:$0xff]  ;;  %v1079_v57 = vld [vmem:[#allocation8 + $0x1818] sm:$0xff] }
  0x63   :  { %1323 = vmatpush.msra.mxu0 %v549_v56  ;;  %1289 = vmatpush.msra.mxu1 %v1128_v10  ;;  %v749_v56 = vld [vmem:[#allocation8 + $0xdc8] sm:$0xff] }
  0x64   :  { %1267 = vmatpush.msra.mxu2 %v988_v58  ;;  %1305 = vmatpush.msra.mxu3 %v369_v0  ;;  %v869_v58 = vld [vmem:[#allocation8 + $0x1188] sm:$0xff] }
  0x65   :  { %1324 = vmatpush.msra.mxu0 %v539_v59  ;;  %1290 = vmatpush.msra.mxu1 %v1118_v13  ;;  %v729_v0 = vld [vmem:[#allocation8 + $0xd28] sm:$0xff]  ;;  %v1039_v13 = vld [vmem:[#allocation8 + $0x16d8] sm:$0xff] }
  0x66   :  { %1268 = vmatpush.msra.mxu2 %v978_v60  ;;  %1306 = vmatpush.msra.mxu3 %v359_v4  ;;  %v739_v60 = vld [vmem:[#allocation8 + $0xd78] sm:$0xff]  ;;  %v849_v7 = vld [vmem:[#allocation8 + $0x10e8] sm:$0xff] }
  0x67   :  { %1325 = vmatpush.msra.mxu0 %v529_v61  ;;  %1291 = vmatpush.msra.mxu1 %v1108_v16  ;;  %v620_v61 = vld [vmem:[#allocation8 + $0x9c0] sm:$0xff]  ;;  %v1059_v4 = vld [vmem:[#allocation8 + $0x1778] sm:$0xff]  ;;  %v709_v10 = vld [vmem:[#allocation8 + $0xc88] sm:$0xff] }
  0x68   :  { %1269 = vmatpush.msra.mxu2 %v968_v62  ;;  %1307 = vmatpush.msra.mxu3 %v349_v8  ;;  %v1069_v62 = vld [vmem:[#allocation8 + $0x17c8] sm:$0xff]  ;;  %v600_v8 = vld [vmem:[#allocation8 + $0x920] sm:$0xff] }
  0x69   :  { %1326 = vmatpush.msra.mxu0 %v519_v1  ;;  %v859_v1 = vld [vmem:[#allocation8 + $0x1138] sm:$0xff]  ;;  %v829_v16 = vld [vmem:[#allocation8 + $0x1048] sm:$0xff] }
  0x6a   :  { %1270 = vmatpush.msra.mxu2 %v958_v2  ;;  %1308 = vmatpush.msra.mxu3 %v339_v11  ;;  %v839_v11 = vld [vmem:[#allocation8 + $0x1098] sm:$0xff] }
  0x6b   :  { %1327 = vmatpush.msra.mxu0 %v509_v5  ;;  %v719_v5 = vld [vmem:[#allocation8 + $0xcd8] sm:$0xff] }
  0x6c   :  { %1271 = vmatpush.msra.mxu2 %v948_v6  ;;  %1309 = vmatpush.msra.mxu3 %v329_v14  ;;  %v699_v14 = vld [vmem:[#allocation8 + $0xc38] sm:$0xff] }
  0x6d   :  { %1328 = vmatpush.msra.mxu0 %v499_v9  ;;  %v1049_v9 = vld [vmem:[#allocation8 + $0x1728] sm:$0xff] }
  0x6e   :  { %1310 = vmatpush.msra.mxu3 %v319_v17  ;;  %v580_v17 = vld [vmem:[#allocation8 + $0x880] sm:$0xff] }
  0x6f   :  { %1329 = vmatpush.msra.mxu0 %v489_v12  ;;  %v590_v12 = vld [vmem:[#allocation8 + $0x8d0] sm:$0xff] }
  0x70   :  { %1311 = vmatpush.msra.mxu3 %v309_v19  ;;  %v689_v19 = vld [vmem:[#allocation8 + $0xbe8] sm:$0xff] }
  0x71   :  { %1330 = vmatpush.msra.mxu0 %v479_v15 }
  0x73   :  { %1331 = vmatpush.msra.mxu0 %v469_v18  ;;  %v1029_v18 = vld [vmem:[#allocation8 + $0x1688] sm:$0xff] }
  0xa8   :  { %v199_v22 = vpop.f32.mrf.mxu1 }
  0xa9   :  { %v200_v23 = vadd.f32 %v199_v22, %v166_v21  ;;  %v570_v21 = vld [vmem:[#allocation8 + $0x830] sm:$0xff]  ;;  %v1019_v22 = vld [vmem:[#allocation8 + $0x1638] sm:$0xff] }
  0xab   :  { %v3096_v24 = vmax.f32 %v200_v23, 0.0  ;;  %v679_v23 = vld [vmem:[#allocation8 + $0xb98] sm:$0xff] }
  0xad   :  { %1192 = vmatmul.f32.vlgmr.msrb.gmra.mxu2 %v3096_v24 }
  0xae   :  { %1356 = vmatpush.msrb.mxu2 %v939_v25  ;;  %v809_v25 = vld [vmem:[#allocation8 + $0xfa8] sm:$0xff] }
  0xaf   :  { %v239_v29 = vpop.f32.mrf.mxu2 }
  0xb0   :  { %v240_v32 = vadd.f32 %v239_v29, %v168_v26  ;;  %v259_v33 = vpop.f32.mrf.mxu3  ;;  %1357 = vmatpush.msrb.mxu2 %v929_v28  ;;  %v279_v45 = vpop.f32.mrf.mxu0  ;;  %v560_v26 = vld [vmem:[#allocation8 + $0x7e0] sm:$0xff]  ;;  %v669_v28 = vld [vmem:[#allocation8 + $0xb48] sm:$0xff]  ;;  %v799_v29 = vld [vmem:[#allocation8 + $0xf58] sm:$0xff] }
  0xb1   :  { %v260_v34 = vadd.f32 %v259_v33, %v169_v27  ;;  %v280_v51 = vadd.f32 %v279_v45, %v170_v43  ;;  %v1009_v27 = vld [vmem:[#allocation8 + $0x15e8] sm:$0xff]  ;;  %v639_v43 = vld [vmem:[#allocation8 + $0xa58] sm:$0xff] }
  0xb2   :  { %v3102_v36 = vmax.f32 %v240_v32, 0.0  ;;  %v219_v37 = vpop.f32.mrf.mxu1  ;;  %1358 = vmatpush.msrb.mxu2 %v919_v31  ;;  %v999_v31 = vld [vmem:[#allocation8 + $0x1598] sm:$0xff]  ;;  %v789_v33 = vld [vmem:[#allocation8 + $0xf08] sm:$0xff] }
  0xb3   :  { %v3104_v39 = vmax.f32 %v260_v34, 0.0  ;;  %v220_v40 = vadd.f32 %v219_v37, %v167_v30  ;;  %v3112_v59 = vmax.f32 %v280_v51, 0.0  ;;  %v550_v30 = vld [vmem:[#allocation8 + $0x790] sm:$0xff]  ;;  %v659_v32 = vld [vmem:[#allocation8 + $0xaf8] sm:$0xff]  ;;  %v540_v34 = vld [vmem:[#allocation8 + $0x740] sm:$0xff] }
  0xb4   :  { %1232 = vmatmul.f32.vlgmr.msrb.gmra.mxu0 %v3102_v36  ;;  %1359 = vmatpush.msrb.mxu2 %v909_v35  ;;  %v989_v35 = vld [vmem:[#allocation8 + $0x1548] sm:$0xff]  ;;  %v780_v37 = vld [vmem:[#allocation8 + $0xec0] sm:$0xff] }
  0xb5   :  { %v3108_v46 = vmax.f32 %v220_v40, 0.0  ;;  %1252 = vmatmul.f32.vlgmr.msrb.gmra.mxu1 %v3104_v39  ;;  %1408 = vmatpush.msrb.mxu0 %v1139_v38  ;;  %v649_v38 = vld [vmem:[#allocation8 + $0xaa8] sm:$0xff]  ;;  %v530_v40 = vld [vmem:[#allocation8 + $0x6f0] sm:$0xff]  ;;  %v460_v51 = vld [vmem:[#allocation8 + $0x4c0] sm:$0xff] }
  0xb6   :  { %1336 = vmatpush.msrb.mxu1 %v779_v41  ;;  %1360 = vmatpush.msrb.mxu2 %v899_v42  ;;  %v979_v41 = vld [vmem:[#allocation8 + $0x14f8] sm:$0xff]  ;;  %v770_v42 = vld [vmem:[#allocation8 + $0xe70] sm:$0xff]  ;;  %v969_v45 = vld [vmem:[#allocation8 + $0x14a8] sm:$0xff] }
  0xb7   :  { %1212 = vmatmul.f32.vlgmr.msrb.gmra.mxu3 %v3108_v46  ;;  %1409 = vmatpush.msrb.mxu0 %v1129_v44  ;;  %v520_v44 = vld [vmem:[#allocation8 + $0x6a0] sm:$0xff] }
  0xb8   :  { %1337 = vmatpush.msrb.mxu1 %v769_v47  ;;  %1376 = vmatpush.msrb.mxu3 %v1099_v48  ;;  %v760_v47 = vld [vmem:[#allocation8 + $0xe20] sm:$0xff]  ;;  %v629_v48 = vld [vmem:[#allocation8 + $0xa08] sm:$0xff] }
  0xb9   :  { %1361 = vmatpush.msrb.mxu2 %v889_v49  ;;  %1410 = vmatpush.msrb.mxu0 %v1119_v50  ;;  %v510_v49 = vld [vmem:[#allocation8 + $0x650] sm:$0xff]  ;;  %v959_v50 = vld [vmem:[#allocation8 + $0x1458] sm:$0xff] }
  0xba   :  { %1338 = vmatpush.msrb.mxu1 %v759_v52  ;;  %1377 = vmatpush.msrb.mxu3 %v1089_v53  ;;  %v750_v52 = vld [vmem:[#allocation8 + $0xdd0] sm:$0xff]  ;;  %v500_v53 = vld [vmem:[#allocation8 + $0x600] sm:$0xff] }
  0xbb   :  { %1362 = vmatpush.msrb.mxu2 %v879_v54  ;;  %1411 = vmatpush.msrb.mxu0 %v1109_v55  ;;  %v949_v54 = vld [vmem:[#allocation8 + $0x1408] sm:$0xff]  ;;  %v450_v55 = vld [vmem:[#allocation8 + $0x470] sm:$0xff] }
  0xbc   :  { %1339 = vmatpush.msrb.mxu1 %v749_v56  ;;  %1378 = vmatpush.msrb.mxu3 %v1079_v57  ;;  %v299_v2 = vpop.f32.mrf.mxu1  ;;  %v740_v56 = vld [vmem:[#allocation8 + $0xd80] sm:$0xff]  ;;  %v490_v57 = vld [vmem:[#allocation8 + $0x5b0] sm:$0xff] }
  0xbd   :  { %1332 = vmatmul.f32.vlgmr.msra.gmra.mxu0 %v3108_v46  ;;  %1363 = vmatpush.msrb.mxu2 %v869_v58  ;;  %v300_v6 = vadd.f32 %v299_v2, %v171_v63  ;;  %v940_v58 = vld [vmem:[#allocation8 + $0x13c0] sm:$0xff]  ;;  %v930_v63 = vld [vmem:[#allocation8 + $0x1370] sm:$0xff] }
  0xbe   :  { %1340 = vmatpush.msrb.mxu1 %v739_v60  ;;  %1436 = vmatpush.msra.mxu0 %v620_v61  ;;  %v440_v60 = vld [vmem:[#allocation8 + $0x420] sm:$0xff]  ;;  %v730_v61 = vld [vmem:[#allocation8 + $0xd30] sm:$0xff] }
  0xbf   :  { %1272 = vmatmul.f32.vlgmr.msra.gmra.mxu2 %v3112_v59  ;;  %1379 = vmatpush.msrb.mxu3 %v1069_v62  ;;  %v3118_v15 = vmax.f32 %v300_v6, 0.0  ;;  %v480_v62 = vld [vmem:[#allocation8 + $0x560] sm:$0xff]  ;;  %v470_v2 = vld [vmem:[#allocation8 + $0x510] sm:$0xff] }
  0xc0   :  { %1341 = vmatpush.msrb.mxu1 %v729_v0  ;;  %1364 = vmatpush.msrb.mxu2 %v859_v1  ;;  %v430_v0 = vld [vmem:[#allocation8 + $0x3d0] sm:$0xff]  ;;  %v720_v1 = vld [vmem:[#allocation8 + $0xce0] sm:$0xff] }
  0xc1   :  { %1437 = vmatpush.msra.mxu0 %v610_v3  ;;  %1312 = vmatmul.f32.vlgmr.msra.gmra.mxu3 %v3096_v24  ;;  %v920_v3 = vld [vmem:[#allocation8 + $0x1320] sm:$0xff] }
  0xc2   :  { %1380 = vmatpush.msrb.mxu3 %v1059_v4  ;;  %1342 = vmatpush.msrb.mxu1 %v719_v5  ;;  %v420_v4 = vld [vmem:[#allocation8 + $0x380] sm:$0xff]  ;;  %v710_v5 = vld [vmem:[#allocation8 + $0xc90] sm:$0xff] }
  0xc3   :  { %1365 = vmatpush.msrb.mxu2 %v849_v7  ;;  %1438 = vmatpush.msra.mxu0 %v600_v8  ;;  %v1140_v6 = vld [vmem:[#allocation8 + $0x1a00] sm:$0xff]  ;;  %v910_v7 = vld [vmem:[#allocation8 + $0x12d0] sm:$0xff] }
  0xc4   :  { %1381 = vmatpush.msrb.mxu3 %v1049_v9  ;;  %1343 = vmatpush.msrb.mxu1 %v709_v10  ;;  %v410_v8 = vld [vmem:[#allocation8 + $0x330] sm:$0xff]  ;;  %v700_v9 = vld [vmem:[#allocation8 + $0xc40] sm:$0xff] }
  0xc5   :  { %1366 = vmatpush.msrb.mxu2 %v839_v11  ;;  %1439 = vmatpush.msra.mxu0 %v590_v12  ;;  %v1130_v10 = vld [vmem:[#allocation8 + $0x19b0] sm:$0xff]  ;;  %v900_v11 = vld [vmem:[#allocation8 + $0x1280] sm:$0xff] }
  0xc6   :  { %1382 = vmatpush.msrb.mxu3 %v1039_v13  ;;  %1344 = vmatpush.msrb.mxu1 %v699_v14  ;;  %v400_v12 = vld [vmem:[#allocation8 + $0x2e0] sm:$0xff]  ;;  %v690_v13 = vld [vmem:[#allocation8 + $0xbf0] sm:$0xff] }
  0xc7   :  { %1367 = vmatpush.msrb.mxu2 %v829_v16  ;;  %1440 = vmatpush.msra.mxu0 %v580_v17  ;;  %v1120_v14 = vld [vmem:[#allocation8 + $0x1960] sm:$0xff]  ;;  %v890_v16 = vld [vmem:[#allocation8 + $0x1230] sm:$0xff] }
  0xc8   :  { %2790 = vmatmul.msk.f32.vlgmr.msra.gmra.mxu1 %vm1172_vm1, %v3118_v15  ;;  %1383 = vmatpush.msrb.mxu3 %v1029_v18  ;;  %v390_v17 = vld [vmem:[#allocation8 + $0x290] sm:$0xff]  ;;  %v680_v18 = vld [vmem:[#allocation8 + $0xba0] sm:$0xff] }
  0xc9   :  { %1345 = vmatpush.msrb.mxu1 %v689_v19  ;;  %1368 = vmatpush.msrb.mxu2 %v819_v20  ;;  %v1110_v19 = vld [vmem:[#allocation8 + $0x1910] sm:$0xff]  ;;  %v880_v20 = vld [vmem:[#allocation8 + $0x11e0] sm:$0xff] }
  0xca   :  { %1441 = vmatpush.msra.mxu0 %v570_v21  ;;  %1384 = vmatpush.msrb.mxu3 %v1019_v22  ;;  %v461_v21 = vld [vmem:[#allocation8 + $0x4c8] sm:$0xff]  ;;  %v380_v22 = vld [vmem:[#allocation8 + $0x240] sm:$0xff] }
  0xcb   :  { %1346 = vmatpush.msrb.mxu1 %v679_v23  ;;  %1369 = vmatpush.msrb.mxu2 %v809_v25  ;;  %v670_v23 = vld [vmem:[#allocation8 + $0xb50] sm:$0xff] }
  0xcc   :  { %1442 = vmatpush.msra.mxu0 %v560_v26  ;;  %1385 = vmatpush.msrb.mxu3 %v1009_v27  ;;  %v870_v25 = vld [vmem:[#allocation8 + $0x1190] sm:$0xff]  ;;  %v451_v26 = vld [vmem:[#allocation8 + $0x478] sm:$0xff] }
  0xcd   :  { %1347 = vmatpush.msrb.mxu1 %v669_v28  ;;  %1370 = vmatpush.msrb.mxu2 %v799_v29  ;;  %v370_v27 = vld [vmem:[#allocation8 + $0x1f0] sm:$0xff]  ;;  %v660_v28 = vld [vmem:[#allocation8 + $0xb00] sm:$0xff] }
  0xce   :  { %1443 = vmatpush.msra.mxu0 %v550_v30  ;;  %1386 = vmatpush.msrb.mxu3 %v999_v31  ;;  %v860_v29 = vld [vmem:[#allocation8 + $0x1140] sm:$0xff]  ;;  %v441_v30 = vld [vmem:[#allocation8 + $0x428] sm:$0xff] }
  0xcf   :  { %1348 = vmatpush.msrb.mxu1 %v659_v32  ;;  %1371 = vmatpush.msrb.mxu2 %v789_v33  ;;  %v360_v31 = vld [vmem:[#allocation8 + $0x1a0] sm:$0xff]  ;;  %v650_v32 = vld [vmem:[#allocation8 + $0xab0] sm:$0xff] }
  0xd0   :  { %1444 = vmatpush.msra.mxu0 %v540_v34  ;;  %1372 = vmatmul.f32.vlgmr.msrb.gmra.mxu2 %v3104_v39  ;;  %v850_v33 = vld [vmem:[#allocation8 + $0x10f0] sm:$0xff]  ;;  %v431_v34 = vld [vmem:[#allocation8 + $0x3d8] sm:$0xff] }
  0xd1   :  { %1387 = vmatpush.msrb.mxu3 %v989_v35  ;;  %1456 = vmatpush.msra.mxu2 %v780_v37  ;;  %v350_v35 = vld [vmem:[#allocation8 + $0x150] sm:$0xff]  ;;  %v640_v37 = vld [vmem:[#allocation8 + $0xa60] sm:$0xff] }
  0xd2   :  { %1349 = vmatpush.msrb.mxu1 %v649_v38  ;;  %1445 = vmatpush.msra.mxu0 %v530_v40  ;;  %v840_v38 = vld [vmem:[#allocation8 + $0x10a0] sm:$0xff]  ;;  %v421_v40 = vld [vmem:[#allocation8 + $0x388] sm:$0xff] }
  0xd3   :  { %1388 = vmatpush.msrb.mxu3 %v979_v41  ;;  %1457 = vmatpush.msra.mxu2 %v770_v42  ;;  %v340_v41 = vld [vmem:[#allocation8 + $0x100] sm:$0xff]  ;;  %v630_v42 = vld [vmem:[#allocation8 + $0xa10] sm:$0xff] }
  0xd4   :  { %1350 = vmatpush.msrb.mxu1 %v639_v43  ;;  %1446 = vmatpush.msra.mxu0 %v520_v44  ;;  %v830_v43 = vld [vmem:[#allocation8 + $0x1050] sm:$0xff]  ;;  %v411_v44 = vld [vmem:[#allocation8 + $0x338] sm:$0xff] }
  0xd5   :  { %1389 = vmatpush.msrb.mxu3 %v969_v45  ;;  %1458 = vmatpush.msra.mxu2 %v760_v47  ;;  %v621_v45 = vld [vmem:[#allocation8 + $0x9c8] sm:$0xff]  ;;  %v330_v47 = vld [vmem:[#allocation8 + $0xb0] sm:$0xff] }
  0xd6   :  { %1351 = vmatpush.msrb.mxu1 %v629_v48  ;;  %1447 = vmatpush.msra.mxu0 %v510_v49  ;;  %v820_v48 = vld [vmem:[#allocation8 + $0x1000] sm:$0xff]  ;;  %v401_v49 = vld [vmem:[#allocation8 + $0x2e8] sm:$0xff] }
  0xd7   :  { %1352 = vmatmul.f32.vlgmr.msrb.gmra.mxu1 %v3102_v36  ;;  %1390 = vmatpush.msrb.mxu3 %v959_v50  ;;  %v611_v50 = vld [vmem:[#allocation8 + $0x978] sm:$0xff] }
  0xd8   :  { %2791 = vmatmul.msk.f32.vlgmr.msrb.gmra.mxu0 %vm1172_vm1, %v3118_v15  ;;  %1416 = vmatpush.msra.mxu1 %v460_v51  ;;  %v320_v51 = vld [vmem:[#allocation8 + $0x60] sm:$0xff] }
  0xd9   :  { %1459 = vmatpush.msra.mxu2 %v750_v52  ;;  %1448 = vmatpush.msra.mxu0 %v500_v53  ;;  %v810_v52 = vld [vmem:[#allocation8 + $0xfb0] sm:$0xff]  ;;  %v391_v53 = vld [vmem:[#allocation8 + $0x298] sm:$0xff] }
  0xda   :  { %1391 = vmatpush.msrb.mxu3 %v949_v54  ;;  %1417 = vmatpush.msra.mxu1 %v450_v55  ;;  %v601_v54 = vld [vmem:[#allocation8 + $0x928] sm:$0xff]  ;;  %v310_v55 = vld [vmem:[#allocation8 + $0x10] sm:$0xff] }
  0xdb   :  { %1460 = vmatpush.msra.mxu2 %v740_v56  ;;  %1392 = vmatmul.f32.vlgmr.msrb.gmra.mxu3 %v3112_v59  ;;  %v800_v56 = vld [vmem:[#allocation8 + $0xf60] sm:$0xff] }
  0xdc   :  { %1449 = vmatpush.msra.mxu0 %v490_v57  ;;  %1476 = vmatpush.msra.mxu3 %v940_v58  ;;  %v1100_v57 = vld [vmem:[#allocation8 + $0x18c0] sm:$0xff]  ;;  %v381_v58 = vld [vmem:[#allocation8 + $0x248] sm:$0xff] }
  0xdd   :  { %1418 = vmatpush.msra.mxu1 %v440_v60  ;;  %1461 = vmatpush.msra.mxu2 %v730_v61  ;;  %v591_v60 = vld [vmem:[#allocation8 + $0x8d8] sm:$0xff]  ;;  %v790_v61 = vld [vmem:[#allocation8 + $0xf10] sm:$0xff] }
  0xde   :  { %1450 = vmatpush.msra.mxu0 %v480_v62  ;;  %1477 = vmatpush.msra.mxu3 %v930_v63  ;;  %v1090_v62 = vld [vmem:[#allocation8 + $0x1870] sm:$0xff]  ;;  %v371_v63 = vld [vmem:[#allocation8 + $0x1f8] sm:$0xff] }
  0xdf   :  { %1419 = vmatpush.msra.mxu1 %v430_v0  ;;  %1462 = vmatpush.msra.mxu2 %v720_v1  ;;  %v581_v0 = vld [vmem:[#allocation8 + $0x888] sm:$0xff] }
  0xe0   :  { %1451 = vmatpush.msra.mxu0 %v470_v2  ;;  %1478 = vmatpush.msra.mxu3 %v920_v3  ;;  %v781_v1 = vld [vmem:[#allocation8 + $0xec8] sm:$0xff]  ;;  %v1080_v2 = vld [vmem:[#allocation8 + $0x1820] sm:$0xff] }
  0xe1   :  { %1420 = vmatpush.msra.mxu1 %v420_v4  ;;  %1452 = vmatmul.f32.vlgmr.msra.gmra.mxu0 %v3108_v46  ;;  %v361_v3 = vld [vmem:[#allocation8 + $0x1a8] sm:$0xff]  ;;  %v571_v4 = vld [vmem:[#allocation8 + $0x838] sm:$0xff] }
  0xe2   :  { %1463 = vmatpush.msra.mxu2 %v710_v5  ;;  %1528 = vmatpush.msrb.mxu0 %v1140_v6  ;;  %v771_v5 = vld [vmem:[#allocation8 + $0xe78] sm:$0xff]  ;;  %v1070_v6 = vld [vmem:[#allocation8 + $0x17d0] sm:$0xff] }
  0xe3   :  { %1479 = vmatpush.msra.mxu3 %v910_v7  ;;  %1421 = vmatpush.msra.mxu1 %v410_v8  ;;  %v351_v7 = vld [vmem:[#allocation8 + $0x158] sm:$0xff]  ;;  %v561_v8 = vld [vmem:[#allocation8 + $0x7e8] sm:$0xff] }
  0xe4   :  { %1464 = vmatpush.msra.mxu2 %v700_v9  ;;  %1529 = vmatpush.msrb.mxu0 %v1130_v10  ;;  %v761_v9 = vld [vmem:[#allocation8 + $0xe28] sm:$0xff]  ;;  %v1060_v10 = vld [vmem:[#allocation8 + $0x1780] sm:$0xff] }
  0xe5   :  { %1480 = vmatpush.msra.mxu3 %v900_v11  ;;  %1422 = vmatpush.msra.mxu1 %v400_v12  ;;  %v341_v11 = vld [vmem:[#allocation8 + $0x108] sm:$0xff]  ;;  %v551_v12 = vld [vmem:[#allocation8 + $0x798] sm:$0xff] }
  0xe6   :  { %1465 = vmatpush.msra.mxu2 %v690_v13  ;;  %1530 = vmatpush.msrb.mxu0 %v1120_v14  ;;  %v751_v13 = vld [vmem:[#allocation8 + $0xdd8] sm:$0xff]  ;;  %v1050_v14 = vld [vmem:[#allocation8 + $0x1730] sm:$0xff] }
  0xe7   :  { %1481 = vmatpush.msra.mxu3 %v890_v16  ;;  %1423 = vmatpush.msra.mxu1 %v390_v17  ;;  %v331_v16 = vld [vmem:[#allocation8 + $0xb8] sm:$0xff]  ;;  %v541_v17 = vld [vmem:[#allocation8 + $0x748] sm:$0xff] }
  0xe8   :  { %1466 = vmatpush.msra.mxu2 %v680_v18  ;;  %1531 = vmatpush.msrb.mxu0 %v1110_v19  ;;  %v741_v18 = vld [vmem:[#allocation8 + $0xd88] sm:$0xff]  ;;  %v1040_v19 = vld [vmem:[#allocation8 + $0x16e0] sm:$0xff] }
  0xe9   :  { %1482 = vmatpush.msra.mxu3 %v880_v20  ;;  %1424 = vmatpush.msra.mxu1 %v380_v22  ;;  %v321_v20 = vld [vmem:[#allocation8 + $0x68] sm:$0xff]  ;;  %v731_v22 = vld [vmem:[#allocation8 + $0xd38] sm:$0xff] }
  0xea   :  { %1536 = vmatpush.msra.mxu0 %v461_v21  ;;  %1467 = vmatpush.msra.mxu2 %v670_v23  ;;  %v531_v21 = vld [vmem:[#allocation8 + $0x6f8] sm:$0xff]  ;;  %v1030_v23 = vld [vmem:[#allocation8 + $0x1690] sm:$0xff] }
  0xeb   :  { %2792 = vmatmul.msk.f32.vlgmr.msrb.gmra.mxu0 %vm1172_vm1, %v3118_v15  ;;  %1483 = vmatpush.msra.mxu3 %v870_v25  ;;  %v311_v25 = vld [vmem:[#allocation8 + $0x18] sm:$0xff] }
  0xec   :  { %1537 = vmatpush.msra.mxu0 %v451_v26  ;;  %1425 = vmatpush.msra.mxu1 %v370_v27  ;;  %v521_v26 = vld [vmem:[#allocation8 + $0x6a8] sm:$0xff] }
  0xed   :  { %1468 = vmatpush.msra.mxu2 %v660_v28  ;;  %1484 = vmatpush.msra.mxu3 %v860_v29  ;;  %v721_v27 = vld [vmem:[#allocation8 + $0xce8] sm:$0xff]  ;;  %v1020_v29 = vld [vmem:[#allocation8 + $0x1640] sm:$0xff] }
  0xee   :  { %1538 = vmatpush.msra.mxu0 %v441_v30  ;;  %1426 = vmatpush.msra.mxu1 %v360_v31  ;;  %v1101_v28 = vld [vmem:[#allocation8 + $0x18c8] sm:$0xff]  ;;  %v511_v30 = vld [vmem:[#allocation8 + $0x658] sm:$0xff] }
  0xef   :  { %1469 = vmatpush.msra.mxu2 %v650_v32  ;;  %1485 = vmatpush.msra.mxu3 %v850_v33  ;;  %v711_v31 = vld [vmem:[#allocation8 + $0xc98] sm:$0xff]  ;;  %v1010_v33 = vld [vmem:[#allocation8 + $0x15f0] sm:$0xff] }
  0xf0   :  { %1539 = vmatpush.msra.mxu0 %v431_v34  ;;  %1427 = vmatpush.msra.mxu1 %v350_v35  ;;  %v1091_v32 = vld [vmem:[#allocation8 + $0x1878] sm:$0xff]  ;;  %v501_v34 = vld [vmem:[#allocation8 + $0x608] sm:$0xff] }
  0xf1   :  { %1470 = vmatpush.msra.mxu2 %v640_v37  ;;  %1486 = vmatpush.msra.mxu3 %v840_v38  ;;  %v701_v35 = vld [vmem:[#allocation8 + $0xc48] sm:$0xff]  ;;  %v1000_v38 = vld [vmem:[#allocation8 + $0x15a0] sm:$0xff] }
  0xf2   :  { %1540 = vmatpush.msra.mxu0 %v421_v40  ;;  %1428 = vmatpush.msra.mxu1 %v340_v41  ;;  %v1081_v37 = vld [vmem:[#allocation8 + $0x1828] sm:$0xff]  ;;  %v491_v40 = vld [vmem:[#allocation8 + $0x5b8] sm:$0xff] }
  0xf3   :  { %1471 = vmatpush.msra.mxu2 %v630_v42  ;;  %1487 = vmatpush.msra.mxu3 %v830_v43  ;;  %v691_v41 = vld [vmem:[#allocation8 + $0xbf8] sm:$0xff]  ;;  %v990_v43 = vld [vmem:[#allocation8 + $0x1550] sm:$0xff] }
  0xf4   :  { %1472 = vmatmul.f32.vlgmr.msra.gmra.mxu2 %v3102_v36  ;;  %1541 = vmatpush.msra.mxu0 %v411_v44  ;;  %v1071_v42 = vld [vmem:[#allocation8 + $0x17d8] sm:$0xff]  ;;  %v481_v44 = vld [vmem:[#allocation8 + $0x568] sm:$0xff] }
  0xf5   :  { %1556 = vmatpush.msrb.mxu2 %v621_v45  ;;  %1429 = vmatpush.msra.mxu1 %v330_v47  ;;  %v681_v45 = vld [vmem:[#allocation8 + $0xba8] sm:$0xff] }
  0xf6   :  { %1488 = vmatpush.msra.mxu3 %v820_v48  ;;  %1542 = vmatpush.msra.mxu0 %v401_v49  ;;  %v1061_v47 = vld [vmem:[#allocation8 + $0x1788] sm:$0xff]  ;;  %v980_v48 = vld [vmem:[#allocation8 + $0x1500] sm:$0xff]  ;;  %v471_v49 = vld [vmem:[#allocation8 + $0x518] sm:$0xff] }
  0xf7   :  { %1557 = vmatpush.msrb.mxu2 %v611_v50  ;;  %1430 = vmatpush.msra.mxu1 %v320_v51  ;;  %v671_v50 = vld [vmem:[#allocation8 + $0xb58] sm:$0xff] }
  0xf8   :  { %1489 = vmatpush.msra.mxu3 %v810_v52  ;;  %1543 = vmatpush.msra.mxu0 %v391_v53  ;;  %v1051_v51 = vld [vmem:[#allocation8 + $0x1738] sm:$0xff]  ;;  %v1141_v52 = vld [vmem:[#allocation8 + $0x1a08] sm:$0xff]  ;;  %v970_v53 = vld [vmem:[#allocation8 + $0x14b0] sm:$0xff] }
  0xf9   :  { %1558 = vmatpush.msrb.mxu2 %v601_v54  ;;  %1431 = vmatpush.msra.mxu1 %v310_v55  ;;  %v661_v54 = vld [vmem:[#allocation8 + $0xb08] sm:$0xff] }
  0xfa   :  { %1432 = vmatmul.f32.vlgmr.msra.gmra.mxu1 %v3096_v24  ;;  %1490 = vmatpush.msra.mxu3 %v800_v56  ;;  %v1041_v55 = vld [vmem:[#allocation8 + $0x16e8] sm:$0xff]  ;;  %v1131_v56 = vld [vmem:[#allocation8 + $0x19b8] sm:$0xff] }
  0xfb   :  { %1496 = vmatpush.msrb.mxu1 %v1100_v57  ;;  %1544 = vmatpush.msra.mxu0 %v381_v58  ;;  %v960_v57 = vld [vmem:[#allocation8 + $0x1460] sm:$0xff]  ;;  %v651_v58 = vld [vmem:[#allocation8 + $0xab8] sm:$0xff] }
  0xfc   :  { %1559 = vmatpush.msrb.mxu2 %v591_v60  ;;  %1491 = vmatpush.msra.mxu3 %v790_v61  ;;  %v1031_v60 = vld [vmem:[#allocation8 + $0x1698] sm:$0xff]  ;;  %v1121_v61 = vld [vmem:[#allocation8 + $0x1968] sm:$0xff] }
  0xfd   :  { %1497 = vmatpush.msrb.mxu1 %v1090_v62  ;;  %1545 = vmatpush.msra.mxu0 %v371_v63  ;;  %v950_v62 = vld [vmem:[#allocation8 + $0x1410] sm:$0xff]  ;;  %v641_v63 = vld [vmem:[#allocation8 + $0xa68] sm:$0xff] }
  0xfe   :  { %1560 = vmatpush.msrb.mxu2 %v581_v0  ;;  %1492 = vmatmul.f32.vlgmr.msra.gmra.mxu3 %v3104_v39  ;;  %v941_v0 = vld [vmem:[#allocation8 + $0x13c8] sm:$0xff] }
  0xff   :  { %1576 = vmatpush.msrb.mxu3 %v781_v1  ;;  %1498 = vmatpush.msrb.mxu1 %v1080_v2  ;;  %v1021_v1 = vld [vmem:[#allocation8 + $0x1648] sm:$0xff]  ;;  %v1111_v2 = vld [vmem:[#allocation8 + $0x1918] sm:$0xff] }
 0x100   :  { %1546 = vmatpush.msra.mxu0 %v361_v3  ;;  %1561 = vmatpush.msrb.mxu2 %v571_v4  ;;  %v631_v3 = vld [vmem:[#allocation8 + $0xa18] sm:$0xff]  ;;  %v462_v4 = vld [vmem:[#allocation8 + $0x4d0] sm:$0xff] }
 0x101   :  { %1577 = vmatpush.msrb.mxu3 %v771_v5  ;;  %1499 = vmatpush.msrb.mxu1 %v1070_v6  ;;  %v931_v5 = vld [vmem:[#allocation8 + $0x1378] sm:$0xff] }
 0x102   :  { %1547 = vmatpush.msra.mxu0 %v351_v7  ;;  %1562 = vmatpush.msrb.mxu2 %v561_v8  ;;  %v1011_v6 = vld [vmem:[#allocation8 + $0x15f8] sm:$0xff]  ;;  %v452_v7 = vld [vmem:[#allocation8 + $0x480] sm:$0xff]  ;;  %v622_v8 = vld [vmem:[#allocation8 + $0x9d0] sm:$0xff] }
 0x103   :  { %1578 = vmatpush.msrb.mxu3 %v761_v9  ;;  %1500 = vmatpush.msrb.mxu1 %v1060_v10  ;;  %v921_v9 = vld [vmem:[#allocation8 + $0x1328] sm:$0xff] }
 0x104   :  { %1548 = vmatpush.msra.mxu0 %v341_v11  ;;  %1563 = vmatpush.msrb.mxu2 %v551_v12  ;;  %v1001_v10 = vld [vmem:[#allocation8 + $0x15a8] sm:$0xff]  ;;  %v442_v11 = vld [vmem:[#allocation8 + $0x430] sm:$0xff]  ;;  %v612_v12 = vld [vmem:[#allocation8 + $0x980] sm:$0xff] }
 0x105   :  { %1579 = vmatpush.msrb.mxu3 %v751_v13  ;;  %1501 = vmatpush.msrb.mxu1 %v1050_v14  ;;  %v911_v13 = vld [vmem:[#allocation8 + $0x12d8] sm:$0xff] }
 0x106   :  { %1549 = vmatpush.msra.mxu0 %v331_v16  ;;  %1564 = vmatpush.msrb.mxu2 %v541_v17  ;;  %v991_v14 = vld [vmem:[#allocation8 + $0x1558] sm:$0xff]  ;;  %v432_v16 = vld [vmem:[#allocation8 + $0x3e0] sm:$0xff]  ;;  %v602_v17 = vld [vmem:[#allocation8 + $0x930] sm:$0xff] }
 0x107   :  { %1580 = vmatpush.msrb.mxu3 %v741_v18  ;;  %1502 = vmatpush.msrb.mxu1 %v1040_v19  ;;  %v901_v18 = vld [vmem:[#allocation8 + $0x1288] sm:$0xff] }
 0x108   :  { %1550 = vmatpush.msra.mxu0 %v321_v20  ;;  %1565 = vmatpush.msrb.mxu2 %v531_v21  ;;  %v981_v19 = vld [vmem:[#allocation8 + $0x1508] sm:$0xff]  ;;  %v422_v20 = vld [vmem:[#allocation8 + $0x390] sm:$0xff]  ;;  %v592_v21 = vld [vmem:[#allocation8 + $0x8e0] sm:$0xff] }
 0x109   :  { %1581 = vmatpush.msrb.mxu3 %v731_v22  ;;  %1503 = vmatpush.msrb.mxu1 %v1030_v23  ;;  %v891_v22 = vld [vmem:[#allocation8 + $0x1238] sm:$0xff] }
 0x10a   :  { %1551 = vmatpush.msra.mxu0 %v311_v25  ;;  %1566 = vmatpush.msrb.mxu2 %v521_v26  ;;  %v971_v23 = vld [vmem:[#allocation8 + $0x14b8] sm:$0xff]  ;;  %v412_v25 = vld [vmem:[#allocation8 + $0x340] sm:$0xff]  ;;  %v582_v26 = vld [vmem:[#allocation8 + $0x890] sm:$0xff] }
 0x10b   :  { %1552 = vmatmul.f32.vlgmr.msra.gmra.mxu0 %v3096_v24  ;;  %1582 = vmatpush.msrb.mxu3 %v721_v27  ;;  %v881_v27 = vld [vmem:[#allocation8 + $0x11e8] sm:$0xff] }
 0x10c   :  { %1616 = vmatpush.msrb.mxu0 %v1101_v28  ;;  %1504 = vmatpush.msrb.mxu1 %v1020_v29  ;;  %v961_v28 = vld [vmem:[#allocation8 + $0x1468] sm:$0xff]  ;;  %v402_v29 = vld [vmem:[#allocation8 + $0x2f0] sm:$0xff] }
 0x10d   :  { %1567 = vmatpush.msrb.mxu2 %v511_v30  ;;  %1583 = vmatpush.msrb.mxu3 %v711_v31  ;;  %v572_v30 = vld [vmem:[#allocation8 + $0x840] sm:$0xff]  ;;  %v871_v31 = vld [vmem:[#allocation8 + $0x1198] sm:$0xff] }
 0x10e   :  { %1617 = vmatpush.msrb.mxu0 %v1091_v32  ;;  %1505 = vmatpush.msrb.mxu1 %v1010_v33  ;;  %v951_v32 = vld [vmem:[#allocation8 + $0x1418] sm:$0xff]  ;;  %v392_v33 = vld [vmem:[#allocation8 + $0x2a0] sm:$0xff] }
 0x10f   :  { %1568 = vmatpush.msrb.mxu2 %v501_v34  ;;  %1584 = vmatpush.msrb.mxu3 %v701_v35  ;;  %v562_v34 = vld [vmem:[#allocation8 + $0x7f0] sm:$0xff] }
 0x110   :  { %1618 = vmatpush.msrb.mxu0 %v1081_v37  ;;  %1506 = vmatpush.msrb.mxu1 %v1000_v38  ;;  %v942_v35 = vld [vmem:[#allocation8 + $0x13d0] sm:$0xff]  ;;  %v861_v37 = vld [vmem:[#allocation8 + $0x1148] sm:$0xff] }
 0x111   :  { %1569 = vmatpush.msrb.mxu2 %v491_v40  ;;  %1585 = vmatpush.msrb.mxu3 %v691_v41  ;;  %v382_v38 = vld [vmem:[#allocation8 + $0x250] sm:$0xff]  ;;  %v552_v40 = vld [vmem:[#allocation8 + $0x7a0] sm:$0xff] }
 0x112   :  { %1619 = vmatpush.msrb.mxu0 %v1071_v42  ;;  %1507 = vmatpush.msrb.mxu1 %v990_v43  ;;  %v932_v41 = vld [vmem:[#allocation8 + $0x1380] sm:$0xff]  ;;  %v851_v42 = vld [vmem:[#allocation8 + $0x10f8] sm:$0xff] }
 0x113   :  { %1570 = vmatpush.msrb.mxu2 %v481_v44  ;;  %1586 = vmatpush.msrb.mxu3 %v681_v45  ;;  %v372_v43 = vld [vmem:[#allocation8 + $0x200] sm:$0xff]  ;;  %v542_v44 = vld [vmem:[#allocation8 + $0x750] sm:$0xff] }
 0x114   :  { %1620 = vmatpush.msrb.mxu0 %v1061_v47  ;;  %1508 = vmatpush.msrb.mxu1 %v980_v48  ;;  %v922_v45 = vld [vmem:[#allocation8 + $0x1330] sm:$0xff]  ;;  %v841_v47 = vld [vmem:[#allocation8 + $0x10a8] sm:$0xff] }
 0x115   :  { %1571 = vmatpush.msrb.mxu2 %v471_v49  ;;  %1587 = vmatpush.msrb.mxu3 %v671_v50  ;;  %v362_v48 = vld [vmem:[#allocation8 + $0x1b0] sm:$0xff]  ;;  %v532_v49 = vld [vmem:[#allocation8 + $0x700] sm:$0xff] }
 0x116   :  { %1572 = vmatmul.f32.vlgmr.msrb.gmra.mxu2 %v3108_v46  ;;  %1621 = vmatpush.msrb.mxu0 %v1051_v51  ;;  %v912_v50 = vld [vmem:[#allocation8 + $0x12e0] sm:$0xff]  ;;  %v831_v51 = vld [vmem:[#allocation8 + $0x1058] sm:$0xff] }
 0x117   :  { %1648 = vmatpush.msra.mxu2 %v1141_v52  ;;  %1509 = vmatpush.msrb.mxu1 %v970_v53  ;;  %v352_v52 = vld [vmem:[#allocation8 + $0x160] sm:$0xff]  ;;  %v522_v53 = vld [vmem:[#allocation8 + $0x6b0] sm:$0xff] }
 0x118   :  { %1588 = vmatpush.msrb.mxu3 %v661_v54  ;;  %1622 = vmatpush.msrb.mxu0 %v1041_v55  ;;  %v902_v54 = vld [vmem:[#allocation8 + $0x1290] sm:$0xff]  ;;  %v821_v55 = vld [vmem:[#allocation8 + $0x1008] sm:$0xff] }
 0x119   :  { %1649 = vmatpush.msra.mxu2 %v1131_v56  ;;  %1510 = vmatpush.msrb.mxu1 %v960_v57  ;;  %v342_v56 = vld [vmem:[#allocation8 + $0x110] sm:$0xff]  ;;  %v512_v57 = vld [vmem:[#allocation8 + $0x660] sm:$0xff] }
 0x11a   :  { %1589 = vmatpush.msrb.mxu3 %v651_v58  ;;  %1623 = vmatpush.msrb.mxu0 %v1031_v60  ;;  %v892_v58 = vld [vmem:[#allocation8 + $0x1240] sm:$0xff]  ;;  %v811_v60 = vld [vmem:[#allocation8 + $0xfb8] sm:$0xff] }
 0x11b   :  { %1650 = vmatpush.msra.mxu2 %v1121_v61  ;;  %1511 = vmatpush.msrb.mxu1 %v950_v62  ;;  %v332_v61 = vld [vmem:[#allocation8 + $0xc0] sm:$0xff]  ;;  %v502_v62 = vld [vmem:[#allocation8 + $0x610] sm:$0xff] }
 0x11c   :  { %1512 = vmatmul.f32.vlgmr.msrb.gmra.mxu1 %v3112_v59  ;;  %1590 = vmatpush.msrb.mxu3 %v641_v63  ;;  %v882_v63 = vld [vmem:[#allocation8 + $0x11f0] sm:$0xff] }
 0x11d   :  { %1596 = vmatpush.msra.mxu1 %v941_v0  ;;  %1624 = vmatpush.msrb.mxu0 %v1021_v1  ;;  %v801_v0 = vld [vmem:[#allocation8 + $0xf68] sm:$0xff]  ;;  %v322_v1 = vld [vmem:[#allocation8 + $0x70] sm:$0xff] }
 0x11e   :  { %1651 = vmatpush.msra.mxu2 %v1111_v2  ;;  %1591 = vmatpush.msrb.mxu3 %v631_v3  ;;  %v492_v2 = vld [vmem:[#allocation8 + $0x5c0] sm:$0xff] }
 0x11f   :  { %1597 = vmatpush.msra.mxu1 %v931_v5  ;;  %1625 = vmatpush.msrb.mxu0 %v1011_v6  ;;  %v872_v3 = vld [vmem:[#allocation8 + $0x11a0] sm:$0xff]  ;;  %v482_v6 = vld [vmem:[#allocation8 + $0x570] sm:$0xff] }
 0x120   :  { %1656 = vmatpush.msrb.mxu2 %v462_v4  ;;  %1592 = vmatmul.f32.vlgmr.msrb.gmra.mxu3 %v3102_v36  ;;  %v791_v4 = vld [vmem:[#allocation8 + $0xf18] sm:$0xff]  ;;  %v312_v5 = vld [vmem:[#allocation8 + $0x20] sm:$0xff] }
 0x121   :  { %2793 = vmatmul.msk.f32.vlgmr.msra.gmra.mxu2 %vm1172_vm1, %v3118_v15  ;;  %1676 = vmatpush.msra.mxu3 %v622_v8  ;;  %v862_v8 = vld [vmem:[#allocation8 + $0x1150] sm:$0xff] }
 0x122   :  { %1657 = vmatpush.msrb.mxu2 %v452_v7  ;;  %1598 = vmatpush.msra.mxu1 %v921_v9  ;;  %v782_v7 = vld [vmem:[#allocation8 + $0xed0] sm:$0xff] }
 0x123   :  { %1626 = vmatpush.msrb.mxu0 %v1001_v10  ;;  %1677 = vmatpush.msra.mxu3 %v612_v12  ;;  %v1102_v9 = vld [vmem:[#allocation8 + $0x18d0] sm:$0xff]  ;;  %v472_v10 = vld [vmem:[#allocation8 + $0x520] sm:$0xff] }
 0x124   :  { %1658 = vmatpush.msrb.mxu2 %v442_v11  ;;  %1599 = vmatpush.msra.mxu1 %v911_v13  ;;  %v772_v11 = vld [vmem:[#allocation8 + $0xe80] sm:$0xff] }
 0x125   :  { %1627 = vmatpush.msrb.mxu0 %v991_v14  ;;  %1678 = vmatpush.msra.mxu3 %v602_v17  ;;  %v852_v12 = vld [vmem:[#allocation8 + $0x1100] sm:$0xff]  ;;  %v1142_v14 = vld [vmem:[#allocation8 + $0x1a10] sm:$0xff] }
 0x126   :  { %1659 = vmatpush.msrb.mxu2 %v432_v16  ;;  %1600 = vmatpush.msra.mxu1 %v901_v18  ;;  %v1092_v13 = vld [vmem:[#allocation8 + $0x1880] sm:$0xff]  ;;  %v762_v16 = vld [vmem:[#allocation8 + $0xe30] sm:$0xff] }
 0x127   :  { %1628 = vmatpush.msrb.mxu0 %v981_v19  ;;  %1679 = vmatpush.msra.mxu3 %v592_v21  ;;  %v842_v17 = vld [vmem:[#allocation8 + $0x10b0] sm:$0xff]  ;;  %v1132_v19 = vld [vmem:[#allocation8 + $0x19c0] sm:$0xff] }
 0x128   :  { %1660 = vmatpush.msrb.mxu2 %v422_v20  ;;  %1601 = vmatpush.msra.mxu1 %v891_v22  ;;  %v1082_v18 = vld [vmem:[#allocation8 + $0x1830] sm:$0xff]  ;;  %v752_v20 = vld [vmem:[#allocation8 + $0xde0] sm:$0xff] }
 0x129   :  { %1629 = vmatpush.msrb.mxu0 %v971_v23  ;;  %1680 = vmatpush.msra.mxu3 %v582_v26  ;;  %v832_v21 = vld [vmem:[#allocation8 + $0x1060] sm:$0xff]  ;;  %v1122_v23 = vld [vmem:[#allocation8 + $0x1970] sm:$0xff] }
 0x12a   :  { %1661 = vmatpush.msrb.mxu2 %v412_v25  ;;  %1602 = vmatpush.msra.mxu1 %v881_v27  ;;  %v1072_v22 = vld [vmem:[#allocation8 + $0x17e0] sm:$0xff]  ;;  %v742_v25 = vld [vmem:[#allocation8 + $0xd90] sm:$0xff] }
 0x12b   :  { %1630 = vmatpush.msrb.mxu0 %v961_v28  ;;  %1681 = vmatpush.msra.mxu3 %v572_v30  ;;  %v822_v26 = vld [vmem:[#allocation8 + $0x1010] sm:$0xff]  ;;  %v1112_v28 = vld [vmem:[#allocation8 + $0x1920] sm:$0xff] }
 0x12c   :  { %1662 = vmatpush.msrb.mxu2 %v402_v29  ;;  %1603 = vmatpush.msra.mxu1 %v871_v31  ;;  %v1062_v27 = vld [vmem:[#allocation8 + $0x1790] sm:$0xff]  ;;  %v732_v29 = vld [vmem:[#allocation8 + $0xd40] sm:$0xff]  ;;  %v623_v31 = vld [vmem:[#allocation8 + $0x9d8] sm:$0xff] }
 0x12d   :  { %1631 = vmatpush.msrb.mxu0 %v951_v32  ;;  %1682 = vmatpush.msra.mxu3 %v562_v34  ;;  %v812_v30 = vld [vmem:[#allocation8 + $0xfc0] sm:$0xff]  ;;  %v802_v34 = vld [vmem:[#allocation8 + $0xf70] sm:$0xff] }
 0x12e   :  { %1663 = vmatpush.msrb.mxu2 %v392_v33  ;;  %1632 = vmatmul.f32.vlgmr.msrb.gmra.mxu0 %v3112_v59  ;;  %v1052_v32 = vld [vmem:[#allocation8 + $0x1740] sm:$0xff]  ;;  %v722_v33 = vld [vmem:[#allocation8 + $0xcf0] sm:$0xff] }
 0x12f   :  { %1716 = vmatpush.msra.mxu0 %v942_v35  ;;  %1604 = vmatpush.msra.mxu1 %v861_v37  ;;  %v613_v35 = vld [vmem:[#allocation8 + $0x988] sm:$0xff]  ;;  %v1042_v37 = vld [vmem:[#allocation8 + $0x16f0] sm:$0xff] }
 0x130   :  { %1664 = vmatpush.msrb.mxu2 %v382_v38  ;;  %1683 = vmatpush.msra.mxu3 %v552_v40  ;;  %v712_v38 = vld [vmem:[#allocation8 + $0xca0] sm:$0xff] }
 0x131   :  { %1717 = vmatpush.msra.mxu0 %v932_v41  ;;  %1605 = vmatpush.msra.mxu1 %v851_v42  ;;  %v792_v40 = vld [vmem:[#allocation8 + $0xf20] sm:$0xff]  ;;  %v603_v41 = vld [vmem:[#allocation8 + $0x938] sm:$0xff] }
 0x132   :  { %1665 = vmatpush.msrb.mxu2 %v372_v43  ;;  %1684 = vmatpush.msra.mxu3 %v542_v44  ;;  %v1032_v42 = vld [vmem:[#allocation8 + $0x16a0] sm:$0xff]  ;;  %v783_v43 = vld [vmem:[#allocation8 + $0xed8] sm:$0xff]  ;;  %v702_v44 = vld [vmem:[#allocation8 + $0xc50] sm:$0xff] }
 0x133   :  { %1718 = vmatpush.msra.mxu0 %v922_v45  ;;  %1606 = vmatpush.msra.mxu1 %v841_v47  ;;  %v593_v45 = vld [vmem:[#allocation8 + $0x8e8] sm:$0xff]  ;;  %v1022_v47 = vld [vmem:[#allocation8 + $0x1650] sm:$0xff] }
 0x134   :  { %1666 = vmatpush.msrb.mxu2 %v362_v48  ;;  %1685 = vmatpush.msra.mxu3 %v532_v49  ;;  %v773_v48 = vld [vmem:[#allocation8 + $0xe88] sm:$0xff]  ;;  %v692_v49 = vld [vmem:[#allocation8 + $0xc00] sm:$0xff] }
 0x135   :  { %1719 = vmatpush.msra.mxu0 %v912_v50  ;;  %1607 = vmatpush.msra.mxu1 %v831_v51  ;;  %v583_v50 = vld [vmem:[#allocation8 + $0x898] sm:$0xff]  ;;  %v1012_v51 = vld [vmem:[#allocation8 + $0x1600] sm:$0xff] }
 0x136   :  { %1667 = vmatpush.msrb.mxu2 %v352_v52  ;;  %1686 = vmatpush.msra.mxu3 %v522_v53  ;;  %v763_v52 = vld [vmem:[#allocation8 + $0xe38] sm:$0xff]  ;;  %v682_v53 = vld [vmem:[#allocation8 + $0xbb0] sm:$0xff] }
 0x137   :  { %1720 = vmatpush.msra.mxu0 %v902_v54  ;;  %1608 = vmatpush.msra.mxu1 %v821_v55  ;;  %v573_v54 = vld [vmem:[#allocation8 + $0x848] sm:$0xff]  ;;  %v1002_v55 = vld [vmem:[#allocation8 + $0x15b0] sm:$0xff] }
 0x138   :  { %1668 = vmatpush.msrb.mxu2 %v342_v56  ;;  %1687 = vmatpush.msra.mxu3 %v512_v57  ;;  %v753_v56 = vld [vmem:[#allocation8 + $0xde8] sm:$0xff]  ;;  %v672_v57 = vld [vmem:[#allocation8 + $0xb60] sm:$0xff] }
 0x139   :  { %1721 = vmatpush.msra.mxu0 %v892_v58  ;;  %1609 = vmatpush.msra.mxu1 %v811_v60  ;;  %v563_v58 = vld [vmem:[#allocation8 + $0x7f8] sm:$0xff]  ;;  %v992_v60 = vld [vmem:[#allocation8 + $0x1560] sm:$0xff] }
 0x13a   :  { %1669 = vmatpush.msrb.mxu2 %v332_v61  ;;  %1688 = vmatpush.msra.mxu3 %v502_v62  ;;  %v743_v61 = vld [vmem:[#allocation8 + $0xd98] sm:$0xff]  ;;  %v662_v62 = vld [vmem:[#allocation8 + $0xb10] sm:$0xff] }
 0x13b   :  { %1722 = vmatpush.msra.mxu0 %v882_v63  ;;  %1610 = vmatpush.msra.mxu1 %v801_v0  ;;  %v553_v63 = vld [vmem:[#allocation8 + $0x7a8] sm:$0xff]  ;;  %v982_v0 = vld [vmem:[#allocation8 + $0x1510] sm:$0xff] }
 0x13c   :  { %1670 = vmatpush.msrb.mxu2 %v322_v1  ;;  %1689 = vmatpush.msra.mxu3 %v492_v2  ;;  %v733_v1 = vld [vmem:[#allocation8 + $0xd48] sm:$0xff]  ;;  %v652_v2 = vld [vmem:[#allocation8 + $0xac0] sm:$0xff] }
 0x13d   :  { %1723 = vmatpush.msra.mxu0 %v872_v3  ;;  %1611 = vmatpush.msra.mxu1 %v791_v4  ;;  %v543_v3 = vld [vmem:[#allocation8 + $0x758] sm:$0xff]  ;;  %v972_v4 = vld [vmem:[#allocation8 + $0x14c0] sm:$0xff] }
 0x13e   :  { %1612 = vmatmul.f32.vlgmr.msra.gmra.mxu1 %v3104_v39  ;;  %1671 = vmatpush.msrb.mxu2 %v312_v5  ;;  %v723_v5 = vld [vmem:[#allocation8 + $0xcf8] sm:$0xff] }
 0x13f   :  { %1690 = vmatpush.msra.mxu3 %v482_v6  ;;  %1696 = vmatpush.msrb.mxu1 %v782_v7  ;;  %v642_v6 = vld [vmem:[#allocation8 + $0xa70] sm:$0xff]  ;;  %v533_v7 = vld [vmem:[#allocation8 + $0x708] sm:$0xff] }
 0x140   :  { %1724 = vmatpush.msra.mxu0 %v862_v8  ;;  %1672 = vmatmul.f32.vlgmr.msrb.gmra.mxu2 %v3096_v24  ;;  %v962_v8 = vld [vmem:[#allocation8 + $0x1470] sm:$0xff] }
 0x141   :  { %1736 = vmatpush.msra.mxu2 %v1102_v9  ;;  %1691 = vmatpush.msra.mxu3 %v472_v10  ;;  %v713_v9 = vld [vmem:[#allocation8 + $0xca8] sm:$0xff]  ;;  %v632_v10 = vld [vmem:[#allocation8 + $0xa20] sm:$0xff] }
 0x142   :  { %1697 = vmatpush.msrb.mxu1 %v772_v11  ;;  %1725 = vmatpush.msra.mxu0 %v852_v12  ;;  %v523_v11 = vld [vmem:[#allocation8 + $0x6b8] sm:$0xff]  ;;  %v952_v12 = vld [vmem:[#allocation8 + $0x1420] sm:$0xff] }
 0x143   :  { %1692 = vmatmul.f32.vlgmr.msra.gmra.mxu3 %v3108_v46  ;;  %1737 = vmatpush.msra.mxu2 %v1092_v13  ;;  %v463_v13 = vld [vmem:[#allocation8 + $0x4d8] sm:$0xff] }
 0x144   :  { %1768 = vmatpush.msrb.mxu3 %v1142_v14  ;;  %1698 = vmatpush.msrb.mxu1 %v762_v16  ;;  %v703_v14 = vld [vmem:[#allocation8 + $0xc58] sm:$0xff]  ;;  %v513_v16 = vld [vmem:[#allocation8 + $0x668] sm:$0xff] }
 0x145   :  { %1726 = vmatpush.msra.mxu0 %v842_v17  ;;  %1738 = vmatpush.msra.mxu2 %v1082_v18  ;;  %v943_v17 = vld [vmem:[#allocation8 + $0x13d8] sm:$0xff]  ;;  %v453_v18 = vld [vmem:[#allocation8 + $0x488] sm:$0xff] }
 0x146   :  { %1769 = vmatpush.msrb.mxu3 %v1132_v19  ;;  %1699 = vmatpush.msrb.mxu1 %v752_v20  ;;  %v693_v19 = vld [vmem:[#allocation8 + $0xc08] sm:$0xff]  ;;  %v503_v20 = vld [vmem:[#allocation8 + $0x618] sm:$0xff] }
 0x147   :  { %1727 = vmatpush.msra.mxu0 %v832_v21  ;;  %1739 = vmatpush.msra.mxu2 %v1072_v22  ;;  %v933_v21 = vld [vmem:[#allocation8 + $0x1388] sm:$0xff]  ;;  %v443_v22 = vld [vmem:[#allocation8 + $0x438] sm:$0xff] }
 0x148   :  { %1770 = vmatpush.msrb.mxu3 %v1122_v23  ;;  %1700 = vmatpush.msrb.mxu1 %v742_v25  ;;  %v683_v23 = vld [vmem:[#allocation8 + $0xbb8] sm:$0xff]  ;;  %v493_v25 = vld [vmem:[#allocation8 + $0x5c8] sm:$0xff] }
 0x149   :  { %1728 = vmatpush.msra.mxu0 %v822_v26  ;;  %1740 = vmatpush.msra.mxu2 %v1062_v27  ;;  %v923_v26 = vld [vmem:[#allocation8 + $0x1338] sm:$0xff]  ;;  %v433_v27 = vld [vmem:[#allocation8 + $0x3e8] sm:$0xff] }
 0x14a   :  { %1771 = vmatpush.msrb.mxu3 %v1112_v28  ;;  %1701 = vmatpush.msrb.mxu1 %v732_v29  ;;  %v673_v28 = vld [vmem:[#allocation8 + $0xb68] sm:$0xff]  ;;  %v483_v29 = vld [vmem:[#allocation8 + $0x578] sm:$0xff] }
 0x14b   :  { %1729 = vmatpush.msra.mxu0 %v812_v30  ;;  %1741 = vmatpush.msra.mxu2 %v1052_v32  ;;  %v913_v30 = vld [vmem:[#allocation8 + $0x12e8] sm:$0xff]  ;;  %v663_v32 = vld [vmem:[#allocation8 + $0xb18] sm:$0xff] }
 0x14c   :  { %1796 = vmatpush.msra.mxu3 %v623_v31  ;;  %1702 = vmatpush.msrb.mxu1 %v722_v33  ;;  %v423_v31 = vld [vmem:[#allocation8 + $0x398] sm:$0xff]  ;;  %v473_v33 = vld [vmem:[#allocation8 + $0x528] sm:$0xff] }
 0x14d   :  { %2794 = vmatmul.msk.f32.vlgmr.msrb.gmra.mxu3 %vm1172_vm1, %v3118_v15  ;;  %1730 = vmatpush.msra.mxu0 %v802_v34  ;;  %v903_v34 = vld [vmem:[#allocation8 + $0x1298] sm:$0xff] }
 0x14e   :  { %1797 = vmatpush.msra.mxu3 %v613_v35  ;;  %1742 = vmatpush.msra.mxu2 %v1042_v37  ;;  %v413_v35 = vld [vmem:[#allocation8 + $0x348] sm:$0xff] }
 0x14f   :  { %1703 = vmatpush.msrb.mxu1 %v712_v38  ;;  %1731 = vmatpush.msra.mxu0 %v792_v40  ;;  %v653_v37 = vld [vmem:[#allocation8 + $0xac8] sm:$0xff]  ;;  %v1143_v38 = vld [vmem:[#allocation8 + $0x1a18] sm:$0xff] }
 0x150   :  { %1798 = vmatpush.msra.mxu3 %v603_v41  ;;  %1732 = vmatmul.f32.vlgmr.msra.gmra.mxu0 %v3104_v39  ;;  %v893_v40 = vld [vmem:[#allocation8 + $0x1248] sm:$0xff]  ;;  %v403_v41 = vld [vmem:[#allocation8 + $0x2f8] sm:$0xff] }
 0x151   :  { %1743 = vmatpush.msra.mxu2 %v1032_v42  ;;  %1816 = vmatpush.msrb.mxu0 %v783_v43  ;;  %v643_v42 = vld [vmem:[#allocation8 + $0xa78] sm:$0xff]  ;;  %v1133_v43 = vld [vmem:[#allocation8 + $0x19c8] sm:$0xff] }
 0x152   :  { %1704 = vmatpush.msrb.mxu1 %v702_v44  ;;  %1799 = vmatpush.msra.mxu3 %v593_v45  ;;  %v883_v44 = vld [vmem:[#allocation8 + $0x11f8] sm:$0xff]  ;;  %v393_v45 = vld [vmem:[#allocation8 + $0x2a8] sm:$0xff] }
 0x153   :  { %1744 = vmatpush.msra.mxu2 %v1022_v47  ;;  %1817 = vmatpush.msrb.mxu0 %v773_v48  ;;  %v633_v47 = vld [vmem:[#allocation8 + $0xa28] sm:$0xff]  ;;  %v1123_v48 = vld [vmem:[#allocation8 + $0x1978] sm:$0xff] }
 0x154   :  { %1705 = vmatpush.msrb.mxu1 %v692_v49  ;;  %1800 = vmatpush.msra.mxu3 %v583_v50  ;;  %v873_v49 = vld [vmem:[#allocation8 + $0x11a8] sm:$0xff]  ;;  %v624_v50 = vld [vmem:[#allocation8 + $0x9e0] sm:$0xff] }
 0x155   :  { %1745 = vmatpush.msra.mxu2 %v1012_v51  ;;  %1818 = vmatpush.msrb.mxu0 %v763_v52  ;;  %v383_v51 = vld [vmem:[#allocation8 + $0x258] sm:$0xff]  ;;  %v1113_v52 = vld [vmem:[#allocation8 + $0x1928] sm:$0xff] }
 0x156   :  { %1706 = vmatpush.msrb.mxu1 %v682_v53  ;;  %1801 = vmatpush.msra.mxu3 %v573_v54  ;;  %v863_v53 = vld [vmem:[#allocation8 + $0x1158] sm:$0xff]  ;;  %v464_v54 = vld [vmem:[#allocation8 + $0x4e0] sm:$0xff] }
 0x157   :  { %1746 = vmatpush.msra.mxu2 %v1002_v55  ;;  %1819 = vmatpush.msrb.mxu0 %v753_v56  ;;  %v614_v55 = vld [vmem:[#allocation8 + $0x990] sm:$0xff]  ;;  %v373_v56 = vld [vmem:[#allocation8 + $0x208] sm:$0xff] }
 0x158   :  { %1707 = vmatpush.msrb.mxu1 %v672_v57  ;;  %1802 = vmatpush.msra.mxu3 %v563_v58  ;;  %v853_v57 = vld [vmem:[#allocation8 + $0x1108] sm:$0xff]  ;;  %v454_v58 = vld [vmem:[#allocation8 + $0x490] sm:$0xff] }
 0x159   :  { %1747 = vmatpush.msra.mxu2 %v992_v60  ;;  %1820 = vmatpush.msrb.mxu0 %v743_v61  ;;  %v604_v60 = vld [vmem:[#allocation8 + $0x940] sm:$0xff]  ;;  %v363_v61 = vld [vmem:[#allocation8 + $0x1b8] sm:$0xff] }
 0x15a   :  { %1708 = vmatpush.msrb.mxu1 %v662_v62  ;;  %1803 = vmatpush.msra.mxu3 %v553_v63  ;;  %v843_v62 = vld [vmem:[#allocation8 + $0x10b8] sm:$0xff]  ;;  %v444_v63 = vld [vmem:[#allocation8 + $0x440] sm:$0xff] }
 0x15b   :  { %1748 = vmatpush.msra.mxu2 %v982_v0  ;;  %1821 = vmatpush.msrb.mxu0 %v733_v1  ;;  %v594_v0 = vld [vmem:[#allocation8 + $0x8f0] sm:$0xff]  ;;  %v353_v1 = vld [vmem:[#allocation8 + $0x168] sm:$0xff] }
 0x15c   :  { %1709 = vmatpush.msrb.mxu1 %v652_v2  ;;  %1804 = vmatpush.msra.mxu3 %v543_v3  ;;  %v833_v2 = vld [vmem:[#allocation8 + $0x1068] sm:$0xff]  ;;  %v434_v3 = vld [vmem:[#allocation8 + $0x3f0] sm:$0xff] }
 0x15d   :  { %1749 = vmatpush.msra.mxu2 %v972_v4  ;;  %1822 = vmatpush.msrb.mxu0 %v723_v5  ;;  %v584_v4 = vld [vmem:[#allocation8 + $0x8a0] sm:$0xff]  ;;  %v343_v5 = vld [vmem:[#allocation8 + $0x118] sm:$0xff] }
 0x15e   :  { %1710 = vmatpush.msrb.mxu1 %v642_v6  ;;  %1805 = vmatpush.msra.mxu3 %v533_v7  ;;  %v823_v6 = vld [vmem:[#allocation8 + $0x1018] sm:$0xff]  ;;  %v424_v7 = vld [vmem:[#allocation8 + $0x3a0] sm:$0xff] }
 0x15f   :  { %1750 = vmatpush.msra.mxu2 %v962_v8  ;;  %1823 = vmatpush.msrb.mxu0 %v713_v9  ;;  %v574_v8 = vld [vmem:[#allocation8 + $0x850] sm:$0xff]  ;;  %v333_v9 = vld [vmem:[#allocation8 + $0xc8] sm:$0xff] }
 0x160   :  { %1711 = vmatpush.msrb.mxu1 %v632_v10  ;;  %1806 = vmatpush.msra.mxu3 %v523_v11  ;;  %v813_v10 = vld [vmem:[#allocation8 + $0xfc8] sm:$0xff]  ;;  %v414_v11 = vld [vmem:[#allocation8 + $0x350] sm:$0xff] }
 0x161   :  { %1712 = vmatmul.f32.vlgmr.msrb.gmra.mxu1 %v3102_v36  ;;  %1751 = vmatpush.msra.mxu2 %v952_v12  ;;  %v564_v12 = vld [vmem:[#allocation8 + $0x800] sm:$0xff] }
 0x162   :  { %1776 = vmatpush.msra.mxu1 %v463_v13  ;;  %1824 = vmatpush.msrb.mxu0 %v703_v14  ;;  %v323_v13 = vld [vmem:[#allocation8 + $0x78] sm:$0xff] }
 0x163   :  { %1752 = vmatmul.f32.vlgmr.msra.gmra.mxu2 %v3112_v59  ;;  %1807 = vmatpush.msra.mxu3 %v513_v16  ;;  %v803_v14 = vld [vmem:[#allocation8 + $0xf78] sm:$0xff]  ;;  %v404_v16 = vld [vmem:[#allocation8 + $0x300] sm:$0xff] }
 0x164   :  { %1836 = vmatpush.msrb.mxu2 %v943_v17  ;;  %1777 = vmatpush.msra.mxu1 %v453_v18  ;;  %v554_v17 = vld [vmem:[#allocation8 + $0x7b0] sm:$0xff]  ;;  %v313_v18 = vld [vmem:[#allocation8 + $0x28] sm:$0xff] }
 0x165   :  { %1825 = vmatpush.msrb.mxu0 %v693_v19  ;;  %1808 = vmatpush.msra.mxu3 %v503_v20  ;;  %v793_v19 = vld [vmem:[#allocation8 + $0xf28] sm:$0xff]  ;;  %v394_v20 = vld [vmem:[#allocation8 + $0x2b0] sm:$0xff] }
 0x166   :  { %1837 = vmatpush.msrb.mxu2 %v933_v21  ;;  %1778 = vmatpush.msra.mxu1 %v443_v22  ;;  %v1103_v21 = vld [vmem:[#allocation8 + $0x18d8] sm:$0xff]  ;;  %v544_v22 = vld [vmem:[#allocation8 + $0x760] sm:$0xff] }
 0x167   :  { %1826 = vmatpush.msrb.mxu0 %v683_v23  ;;  %1809 = vmatpush.msra.mxu3 %v493_v25  ;;  %v384_v23 = vld [vmem:[#allocation8 + $0x260] sm:$0xff] }
 0x168   :  { %1838 = vmatpush.msrb.mxu2 %v923_v26  ;;  %1779 = vmatpush.msra.mxu1 %v433_v27  ;;  %v784_v25 = vld [vmem:[#allocation8 + $0xee0] sm:$0xff]  ;;  %v1093_v26 = vld [vmem:[#allocation8 + $0x1888] sm:$0xff]  ;;  %v534_v27 = vld [vmem:[#allocation8 + $0x710] sm:$0xff] }
 0x169   :  { %1827 = vmatpush.msrb.mxu0 %v673_v28  ;;  %1810 = vmatpush.msra.mxu3 %v483_v29  ;;  %v374_v28 = vld [vmem:[#allocation8 + $0x210] sm:$0xff] }
 0x16a   :  { %1839 = vmatpush.msrb.mxu2 %v913_v30  ;;  %1780 = vmatpush.msra.mxu1 %v423_v31  ;;  %v774_v29 = vld [vmem:[#allocation8 + $0xe90] sm:$0xff]  ;;  %v1083_v30 = vld [vmem:[#allocation8 + $0x1838] sm:$0xff]  ;;  %v524_v31 = vld [vmem:[#allocation8 + $0x6c0] sm:$0xff] }
 0x16b   :  { %1828 = vmatpush.msrb.mxu0 %v663_v32  ;;  %1811 = vmatpush.msra.mxu3 %v473_v33  ;;  %v364_v32 = vld [vmem:[#allocation8 + $0x1c0] sm:$0xff] }
 0x16c   :  { %1840 = vmatpush.msrb.mxu2 %v903_v34  ;;  %1781 = vmatpush.msra.mxu1 %v413_v35  ;;  %v764_v33 = vld [vmem:[#allocation8 + $0xe40] sm:$0xff]  ;;  %v1073_v34 = vld [vmem:[#allocation8 + $0x17e8] sm:$0xff]  ;;  %v514_v35 = vld [vmem:[#allocation8 + $0x670] sm:$0xff] }
 0x16d   :  { %1812 = vmatmul.f32.vlgmr.msra.gmra.mxu3 %v3108_v46  ;;  %1829 = vmatpush.msrb.mxu0 %v653_v37  ;;  %v354_v37 = vld [vmem:[#allocation8 + $0x170] sm:$0xff] }
 0x16e   :  { %1888 = vmatpush.msrb.mxu3 %v1143_v38  ;;  %1841 = vmatpush.msrb.mxu2 %v893_v40  ;;  %v754_v38 = vld [vmem:[#allocation8 + $0xdf0] sm:$0xff]  ;;  %v1063_v40 = vld [vmem:[#allocation8 + $0x1798] sm:$0xff] }
 0x16f   :  { %1782 = vmatpush.msra.mxu1 %v403_v41  ;;  %1830 = vmatpush.msrb.mxu0 %v643_v42  ;;  %v504_v41 = vld [vmem:[#allocation8 + $0x620] sm:$0xff] }
 0x170   :  { %1889 = vmatpush.msrb.mxu3 %v1133_v43  ;;  %1842 = vmatpush.msrb.mxu2 %v883_v44  ;;  %v344_v42 = vld [vmem:[#allocation8 + $0x120] sm:$0xff]  ;;  %v1053_v44 = vld [vmem:[#allocation8 + $0x1748] sm:$0xff] }
 0x171   :  { %1783 = vmatpush.msra.mxu1 %v393_v45  ;;  %1831 = vmatpush.msrb.mxu0 %v633_v47  ;;  %v744_v43 = vld [vmem:[#allocation8 + $0xda0] sm:$0xff]  ;;  %v494_v45 = vld [vmem:[#allocation8 + $0x5d0] sm:$0xff] }
 0x172   :  { %1890 = vmatpush.msrb.mxu3 %v1123_v48  ;;  %1832 = vmatmul.f32.vlgmr.msrb.gmra.mxu0 %v3102_v36  ;;  %v334_v47 = vld [vmem:[#allocation8 + $0xd0] sm:$0xff] }
 0x173   :  { %1843 = vmatpush.msrb.mxu2 %v873_v49  ;;  %1916 = vmatpush.msra.mxu0 %v624_v50  ;;  %v734_v48 = vld [vmem:[#allocation8 + $0xd50] sm:$0xff]  ;;  %v1043_v49 = vld [vmem:[#allocation8 + $0x16f8] sm:$0xff]  ;;  %v484_v50 = vld [vmem:[#allocation8 + $0x580] sm:$0xff] }
 0x174   :  { %1784 = vmatpush.msra.mxu1 %v383_v51  ;;  %1891 = vmatpush.msrb.mxu3 %v1113_v52  ;;  %v324_v51 = vld [vmem:[#allocation8 + $0x80] sm:$0xff] }
 0x175   :  { %1844 = vmatpush.msrb.mxu2 %v863_v53  ;;  %1917 = vmatpush.msra.mxu0 %v614_v55  ;;  %v724_v52 = vld [vmem:[#allocation8 + $0xd00] sm:$0xff]  ;;  %v1033_v53 = vld [vmem:[#allocation8 + $0x16a8] sm:$0xff]  ;;  %v314_v55 = vld [vmem:[#allocation8 + $0x30] sm:$0xff] }
 0x176   :  { %1896 = vmatpush.msra.mxu3 %v464_v54  ;;  %1785 = vmatpush.msra.mxu1 %v373_v56  ;;  %v474_v54 = vld [vmem:[#allocation8 + $0x530] sm:$0xff] }
 0x177   :  { %2795 = vmatmul.msk.f32.vlgmr.msrb.gmra.mxu3 %vm1172_vm1, %v3118_v15  ;;  %1845 = vmatpush.msrb.mxu2 %v853_v57  ;;  %v714_v56 = vld [vmem:[#allocation8 + $0xcb0] sm:$0xff]  ;;  %v1144_v57 = vld [vmem:[#allocation8 + $0x1a20] sm:$0xff] }
 0x178   :  { %1897 = vmatpush.msra.mxu3 %v454_v58  ;;  %1918 = vmatpush.msra.mxu0 %v604_v60  ;;  %v1023_v58 = vld [vmem:[#allocation8 + $0x1658] sm:$0xff]  ;;  %v704_v60 = vld [vmem:[#allocation8 + $0xc60] sm:$0xff] }
 0x179   :  { %1786 = vmatpush.msra.mxu1 %v363_v61  ;;  %1846 = vmatpush.msrb.mxu2 %v843_v62  ;;  %v1104_v61 = vld [vmem:[#allocation8 + $0x18e0] sm:$0xff]  ;;  %v1134_v62 = vld [vmem:[#allocation8 + $0x19d0] sm:$0xff] }
 0x17a   :  { %1898 = vmatpush.msra.mxu3 %v444_v63  ;;  %1919 = vmatpush.msra.mxu0 %v594_v0  ;;  %v1013_v63 = vld [vmem:[#allocation8 + $0x1608] sm:$0xff]  ;;  %v694_v0 = vld [vmem:[#allocation8 + $0xc10] sm:$0xff] }
 0x17b   :  { %1787 = vmatpush.msra.mxu1 %v353_v1  ;;  %1847 = vmatpush.msrb.mxu2 %v833_v2  ;;  %v1094_v1 = vld [vmem:[#allocation8 + $0x1890] sm:$0xff]  ;;  %v1124_v2 = vld [vmem:[#allocation8 + $0x1980] sm:$0xff] }
 0x17c   :  { %1899 = vmatpush.msra.mxu3 %v434_v3  ;;  %1920 = vmatpush.msra.mxu0 %v584_v4  ;;  %v1003_v3 = vld [vmem:[#allocation8 + $0x15b8] sm:$0xff]  ;;  %v684_v4 = vld [vmem:[#allocation8 + $0xbc0] sm:$0xff] }
 0x17d   :  { %1788 = vmatpush.msra.mxu1 %v343_v5  ;;  %1848 = vmatpush.msrb.mxu2 %v823_v6  ;;  %v1084_v5 = vld [vmem:[#allocation8 + $0x1840] sm:$0xff]  ;;  %v1114_v6 = vld [vmem:[#allocation8 + $0x1930] sm:$0xff] }
 0x17e   :  { %1900 = vmatpush.msra.mxu3 %v424_v7  ;;  %1921 = vmatpush.msra.mxu0 %v574_v8  ;;  %v993_v7 = vld [vmem:[#allocation8 + $0x1568] sm:$0xff] }
 0x17f   :  { %1789 = vmatpush.msra.mxu1 %v333_v9  ;;  %1849 = vmatpush.msrb.mxu2 %v813_v10  ;;  %v465_v8 = vld [vmem:[#allocation8 + $0x4e8] sm:$0xff]  ;;  %v674_v9 = vld [vmem:[#allocation8 + $0xb70] sm:$0xff] }
 0x180   :  { %1901 = vmatpush.msra.mxu3 %v414_v11  ;;  %1922 = vmatpush.msra.mxu0 %v564_v12  ;;  %v1074_v10 = vld [vmem:[#allocation8 + $0x17f0] sm:$0xff]  ;;  %v983_v11 = vld [vmem:[#allocation8 + $0x1518] sm:$0xff] }
 0x181   :  { %1790 = vmatpush.msra.mxu1 %v323_v13  ;;  %1850 = vmatpush.msrb.mxu2 %v803_v14  ;;  %v455_v12 = vld [vmem:[#allocation8 + $0x498] sm:$0xff]  ;;  %v664_v13 = vld [vmem:[#allocation8 + $0xb20] sm:$0xff] }
 0x182   :  { %1902 = vmatpush.msra.mxu3 %v404_v16  ;;  %1923 = vmatpush.msra.mxu0 %v554_v17  ;;  %v1064_v14 = vld [vmem:[#allocation8 + $0x17a0] sm:$0xff]  ;;  %v973_v16 = vld [vmem:[#allocation8 + $0x14c8] sm:$0xff] }
 0x183   :  { %1791 = vmatpush.msra.mxu1 %v313_v18  ;;  %1851 = vmatpush.msrb.mxu2 %v793_v19  ;;  %v445_v17 = vld [vmem:[#allocation8 + $0x448] sm:$0xff]  ;;  %v654_v18 = vld [vmem:[#allocation8 + $0xad0] sm:$0xff] }
 0x184   :  { %1792 = vmatmul.f32.vlgmr.msra.gmra.mxu1 %v3096_v24  ;;  %1903 = vmatpush.msra.mxu3 %v394_v20  ;;  %v1054_v19 = vld [vmem:[#allocation8 + $0x1750] sm:$0xff]  ;;  %v963_v20 = vld [vmem:[#allocation8 + $0x1478] sm:$0xff] }
 0x185   :  { %1856 = vmatpush.msrb.mxu1 %v1103_v21  ;;  %1924 = vmatpush.msra.mxu0 %v544_v22  ;;  %v435_v21 = vld [vmem:[#allocation8 + $0x3f8] sm:$0xff]  ;;  %v644_v22 = vld [vmem:[#allocation8 + $0xa80] sm:$0xff] }
 0x186   :  { %1852 = vmatmul.f32.vlgmr.msrb.gmra.mxu2 %v3104_v39  ;;  %1904 = vmatpush.msra.mxu3 %v384_v23  ;;  %v1044_v23 = vld [vmem:[#allocation8 + $0x1700] sm:$0xff] }
 0x187   :  { %1936 = vmatpush.msra.mxu2 %v784_v25  ;;  %1857 = vmatpush.msrb.mxu1 %v1093_v26  ;;  %v953_v25 = vld [vmem:[#allocation8 + $0x1428] sm:$0xff] }
 0x188   :  { %1925 = vmatpush.msra.mxu0 %v534_v27  ;;  %1905 = vmatpush.msra.mxu3 %v374_v28  ;;  %v425_v26 = vld [vmem:[#allocation8 + $0x3a8] sm:$0xff]  ;;  %v634_v27 = vld [vmem:[#allocation8 + $0xa30] sm:$0xff]  ;;  %v944_v28 = vld [vmem:[#allocation8 + $0x13e0] sm:$0xff] }
 0x189   :  { %1937 = vmatpush.msra.mxu2 %v774_v29  ;;  %1858 = vmatpush.msrb.mxu1 %v1083_v30  ;;  %v1034_v29 = vld [vmem:[#allocation8 + $0x16b0] sm:$0xff]  ;;  %v415_v30 = vld [vmem:[#allocation8 + $0x358] sm:$0xff] }
 0x18a   :  { %1926 = vmatpush.msra.mxu0 %v524_v31  ;;  %1906 = vmatpush.msra.mxu3 %v364_v32  ;;  %v625_v31 = vld [vmem:[#allocation8 + $0x9e8] sm:$0xff]  ;;  %v934_v32 = vld [vmem:[#allocation8 + $0x1390] sm:$0xff] }
 0x18b   :  { %1938 = vmatpush.msra.mxu2 %v764_v33  ;;  %1859 = vmatpush.msrb.mxu1 %v1073_v34  ;;  %v1024_v33 = vld [vmem:[#allocation8 + $0x1660] sm:$0xff]  ;;  %v405_v34 = vld [vmem:[#allocation8 + $0x308] sm:$0xff] }
 0x18c   :  { %1927 = vmatpush.msra.mxu0 %v514_v35  ;;  %1907 = vmatpush.msra.mxu3 %v354_v37  ;;  %v615_v35 = vld [vmem:[#allocation8 + $0x998] sm:$0xff]  ;;  %v924_v37 = vld [vmem:[#allocation8 + $0x1340] sm:$0xff] }
 0x18d   :  { %1939 = vmatpush.msra.mxu2 %v754_v38  ;;  %1860 = vmatpush.msrb.mxu1 %v1063_v40  ;;  %v1014_v38 = vld [vmem:[#allocation8 + $0x1610] sm:$0xff]  ;;  %v395_v40 = vld [vmem:[#allocation8 + $0x2b8] sm:$0xff] }
 0x18e   :  { %1928 = vmatpush.msra.mxu0 %v504_v41  ;;  %1908 = vmatpush.msra.mxu3 %v344_v42  ;;  %v605_v41 = vld [vmem:[#allocation8 + $0x948] sm:$0xff]  ;;  %v914_v42 = vld [vmem:[#allocation8 + $0x12f0] sm:$0xff] }
 0x18f   :  { %1940 = vmatpush.msra.mxu2 %v744_v43  ;;  %1861 = vmatpush.msrb.mxu1 %v1053_v44  ;;  %v1004_v43 = vld [vmem:[#allocation8 + $0x15c0] sm:$0xff]  ;;  %v385_v44 = vld [vmem:[#allocation8 + $0x268] sm:$0xff] }
 0x190   :  { %1929 = vmatpush.msra.mxu0 %v494_v45  ;;  %1909 = vmatpush.msra.mxu3 %v334_v47  ;;  %v595_v45 = vld [vmem:[#allocation8 + $0x8f8] sm:$0xff]  ;;  %v904_v47 = vld [vmem:[#allocation8 + $0x12a0] sm:$0xff] }
 0x191   :  { %1941 = vmatpush.msra.mxu2 %v734_v48  ;;  %1862 = vmatpush.msrb.mxu1 %v1043_v49  ;;  %v994_v48 = vld [vmem:[#allocation8 + $0x1570] sm:$0xff]  ;;  %v375_v49 = vld [vmem:[#allocation8 + $0x218] sm:$0xff] }
 0x192   :  { %1930 = vmatpush.msra.mxu0 %v484_v50  ;;  %1910 = vmatpush.msra.mxu3 %v324_v51  ;;  %v585_v50 = vld [vmem:[#allocation8 + $0x8a8] sm:$0xff]  ;;  %v894_v51 = vld [vmem:[#allocation8 + $0x1250] sm:$0xff] }
 0x193   :  { %1942 = vmatpush.msra.mxu2 %v724_v52  ;;  %1863 = vmatpush.msrb.mxu1 %v1033_v53  ;;  %v984_v52 = vld [vmem:[#allocation8 + $0x1520] sm:$0xff]  ;;  %v365_v53 = vld [vmem:[#allocation8 + $0x1c8] sm:$0xff] }
 0x194   :  { %1931 = vmatpush.msra.mxu0 %v474_v54  ;;  %1911 = vmatpush.msra.mxu3 %v314_v55  ;;  %v575_v54 = vld [vmem:[#allocation8 + $0x858] sm:$0xff]  ;;  %v884_v55 = vld [vmem:[#allocation8 + $0x1200] sm:$0xff] }
 0x195   :  { %1932 = vmatmul.f32.vlgmr.msra.gmra.mxu0 %v3108_v46  ;;  %1943 = vmatpush.msra.mxu2 %v714_v56  ;;  %v974_v56 = vld [vmem:[#allocation8 + $0x14d0] sm:$0xff] }
 0x196   :  { %2008 = vmatpush.msrb.mxu0 %v1144_v57  ;;  %1864 = vmatpush.msrb.mxu1 %v1023_v58  ;;  %v355_v57 = vld [vmem:[#allocation8 + $0x178] sm:$0xff]  ;;  %v565_v58 = vld [vmem:[#allocation8 + $0x808] sm:$0xff] }
 0x197   :  { %1912 = vmatmul.f32.vlgmr.msra.gmra.mxu3 %v3096_v24  ;;  %1944 = vmatpush.msra.mxu2 %v704_v60  ;;  %v874_v60 = vld [vmem:[#allocation8 + $0x11b0] sm:$0xff] }
 0x198   :  { %1976 = vmatpush.msrb.mxu3 %v1104_v61  ;;  %2009 = vmatpush.msrb.mxu0 %v1134_v62  ;;  %v964_v61 = vld [vmem:[#allocation8 + $0x1480] sm:$0xff]  ;;  %v345_v62 = vld [vmem:[#allocation8 + $0x128] sm:$0xff] }
 0x199   :  { %1865 = vmatpush.msrb.mxu1 %v1013_v63  ;;  %1945 = vmatpush.msra.mxu2 %v694_v0  ;;  %v555_v63 = vld [vmem:[#allocation8 + $0x7b8] sm:$0xff]  ;;  %v864_v0 = vld [vmem:[#allocation8 + $0x1160] sm:$0xff] }
 0x19a   :  { %1977 = vmatpush.msrb.mxu3 %v1094_v1  ;;  %2010 = vmatpush.msrb.mxu0 %v1124_v2  ;;  %v954_v1 = vld [vmem:[#allocation8 + $0x1430] sm:$0xff]  ;;  %v335_v2 = vld [vmem:[#allocation8 + $0xd8] sm:$0xff] }
 0x19b   :  { %1866 = vmatpush.msrb.mxu1 %v1003_v3  ;;  %1946 = vmatpush.msra.mxu2 %v684_v4  ;;  %v545_v3 = vld [vmem:[#allocation8 + $0x768] sm:$0xff] }
 0x19c   :  { %1978 = vmatpush.msrb.mxu3 %v1084_v5  ;;  %2011 = vmatpush.msrb.mxu0 %v1114_v6  ;;  %v945_v4 = vld [vmem:[#allocation8 + $0x13e8] sm:$0xff]  ;;  %v854_v5 = vld [vmem:[#allocation8 + $0x1110] sm:$0xff] }
 0x19d   :  { %1867 = vmatpush.msrb.mxu1 %v993_v7  ;;  %1947 = vmatpush.msra.mxu2 %v674_v9  ;;  %v325_v6 = vld [vmem:[#allocation8 + $0x88] sm:$0xff]  ;;  %v535_v7 = vld [vmem:[#allocation8 + $0x718] sm:$0xff]  ;;  %v844_v9 = vld [vmem:[#allocation8 + $0x10c0] sm:$0xff] }
 0x19e   :  { %2016 = vmatpush.msra.mxu0 %v465_v8  ;;  %1979 = vmatpush.msrb.mxu3 %v1074_v10  ;;  %v935_v8 = vld [vmem:[#allocation8 + $0x1398] sm:$0xff] }
 0x19f   :  { %2796 = vmatmul.msk.f32.vlgmr.msrb.gmra.mxu0 %vm1172_vm1, %v3118_v15  ;;  %1868 = vmatpush.msrb.mxu1 %v983_v11  ;;  %v315_v10 = vld [vmem:[#allocation8 + $0x38] sm:$0xff]  ;;  %v525_v11 = vld [vmem:[#allocation8 + $0x6c8] sm:$0xff] }
 0x1a0   :  { %2017 = vmatpush.msra.mxu0 %v455_v12  ;;  %1948 = vmatpush.msra.mxu2 %v664_v13  ;;  %v925_v12 = vld [vmem:[#allocation8 + $0x1348] sm:$0xff]  ;;  %v834_v13 = vld [vmem:[#allocation8 + $0x1070] sm:$0xff] }
 0x1a1   :  { %1980 = vmatpush.msrb.mxu3 %v1064_v14  ;;  %1869 = vmatpush.msrb.mxu1 %v973_v16  ;;  %v1105_v14 = vld [vmem:[#allocation8 + $0x18e8] sm:$0xff]  ;;  %v515_v16 = vld [vmem:[#allocation8 + $0x678] sm:$0xff] }
 0x1a2   :  { %2018 = vmatpush.msra.mxu0 %v445_v17  ;;  %1949 = vmatpush.msra.mxu2 %v654_v18  ;;  %v915_v17 = vld [vmem:[#allocation8 + $0x12f8] sm:$0xff]  ;;  %v824_v18 = vld [vmem:[#allocation8 + $0x1020] sm:$0xff] }
 0x1a3   :  { %1981 = vmatpush.msrb.mxu3 %v1054_v19  ;;  %1870 = vmatpush.msrb.mxu1 %v963_v20  ;;  %v1095_v19 = vld [vmem:[#allocation8 + $0x1898] sm:$0xff]  ;;  %v505_v20 = vld [vmem:[#allocation8 + $0x628] sm:$0xff] }
 0x1a4   :  { %2019 = vmatpush.msra.mxu0 %v435_v21  ;;  %1950 = vmatpush.msra.mxu2 %v644_v22  ;;  %v905_v21 = vld [vmem:[#allocation8 + $0x12a8] sm:$0xff]  ;;  %v814_v22 = vld [vmem:[#allocation8 + $0xfd0] sm:$0xff] }
 0x1a5   :  { %1982 = vmatpush.msrb.mxu3 %v1044_v23  ;;  %1871 = vmatpush.msrb.mxu1 %v953_v25  ;;  %v1085_v23 = vld [vmem:[#allocation8 + $0x1848] sm:$0xff]  ;;  %v495_v25 = vld [vmem:[#allocation8 + $0x5d8] sm:$0xff] }
 0x1a6   :  { %2020 = vmatpush.msra.mxu0 %v425_v26  ;;  %1872 = vmatmul.f32.vlgmr.msrb.gmra.mxu1 %v3112_v59  ;;  %v895_v26 = vld [vmem:[#allocation8 + $0x1258] sm:$0xff] }
 0x1a7   :  { %1951 = vmatpush.msra.mxu2 %v634_v27  ;;  %1956 = vmatpush.msra.mxu1 %v944_v28  ;;  %v804_v27 = vld [vmem:[#allocation8 + $0xf80] sm:$0xff]  ;;  %v1075_v28 = vld [vmem:[#allocation8 + $0x17f8] sm:$0xff] }
 0x1a8   :  { %1983 = vmatpush.msrb.mxu3 %v1034_v29  ;;  %1952 = vmatmul.f32.vlgmr.msra.gmra.mxu2 %v3102_v36  ;;  %v485_v29 = vld [vmem:[#allocation8 + $0x588] sm:$0xff] }
 0x1a9   :  { %2021 = vmatpush.msra.mxu0 %v415_v30  ;;  %2036 = vmatpush.msrb.mxu2 %v625_v31  ;;  %v885_v30 = vld [vmem:[#allocation8 + $0x1208] sm:$0xff]  ;;  %v794_v31 = vld [vmem:[#allocation8 + $0xf30] sm:$0xff] }
 0x1aa   :  { %1957 = vmatpush.msra.mxu1 %v934_v32  ;;  %1984 = vmatpush.msrb.mxu3 %v1024_v33  ;;  %v1065_v32 = vld [vmem:[#allocation8 + $0x17a8] sm:$0xff]  ;;  %v475_v33 = vld [vmem:[#allocation8 + $0x538] sm:$0xff] }
 0x1ab   :  { %2022 = vmatpush.msra.mxu0 %v405_v34  ;;  %2037 = vmatpush.msrb.mxu2 %v615_v35  ;;  %v785_v34 = vld [vmem:[#allocation8 + $0xee8] sm:$0xff]  ;;  %v875_v35 = vld [vmem:[#allocation8 + $0x11b8] sm:$0xff] }
 0x1ac   :  { %1958 = vmatpush.msra.mxu1 %v924_v37  ;;  %1985 = vmatpush.msrb.mxu3 %v1014_v38  ;;  %v1055_v37 = vld [vmem:[#allocation8 + $0x1758] sm:$0xff]  ;;  %v1145_v38 = vld [vmem:[#allocation8 + $0x1a28] sm:$0xff] }
 0x1ad   :  { %2023 = vmatpush.msra.mxu0 %v395_v40  ;;  %2038 = vmatpush.msrb.mxu2 %v605_v41  ;;  %v775_v40 = vld [vmem:[#allocation8 + $0xe98] sm:$0xff]  ;;  %v865_v41 = vld [vmem:[#allocation8 + $0x1168] sm:$0xff] }
 0x1ae   :  { %1959 = vmatpush.msra.mxu1 %v914_v42  ;;  %1986 = vmatpush.msrb.mxu3 %v1004_v43  ;;  %v1045_v42 = vld [vmem:[#allocation8 + $0x1708] sm:$0xff]  ;;  %v1135_v43 = vld [vmem:[#allocation8 + $0x19d8] sm:$0xff] }
 0x1af   :  { %2024 = vmatpush.msra.mxu0 %v385_v44  ;;  %2039 = vmatpush.msrb.mxu2 %v595_v45  ;;  %v765_v44 = vld [vmem:[#allocation8 + $0xe48] sm:$0xff]  ;;  %v855_v45 = vld [vmem:[#allocation8 + $0x1118] sm:$0xff] }
 0x1b0   :  { %1960 = vmatpush.msra.mxu1 %v904_v47  ;;  %1987 = vmatpush.msrb.mxu3 %v994_v48  ;;  %v1035_v47 = vld [vmem:[#allocation8 + $0x16b8] sm:$0xff]  ;;  %v1125_v48 = vld [vmem:[#allocation8 + $0x1988] sm:$0xff] }
 0x1b1   :  { %2025 = vmatpush.msra.mxu0 %v375_v49  ;;  %2040 = vmatpush.msrb.mxu2 %v585_v50  ;;  %v755_v49 = vld [vmem:[#allocation8 + $0xdf8] sm:$0xff]  ;;  %v845_v50 = vld [vmem:[#allocation8 + $0x10c8] sm:$0xff] }
 0x1b2   :  { %1961 = vmatpush.msra.mxu1 %v894_v51  ;;  %1988 = vmatpush.msrb.mxu3 %v984_v52  ;;  %v1025_v51 = vld [vmem:[#allocation8 + $0x1668] sm:$0xff]  ;;  %v1115_v52 = vld [vmem:[#allocation8 + $0x1938] sm:$0xff] }
 0x1b3   :  { %2026 = vmatpush.msra.mxu0 %v365_v53  ;;  %2041 = vmatpush.msrb.mxu2 %v575_v54  ;;  %v745_v53 = vld [vmem:[#allocation8 + $0xda8] sm:$0xff]  ;;  %v835_v54 = vld [vmem:[#allocation8 + $0x1078] sm:$0xff] }
 0x1b4   :  { %1962 = vmatpush.msra.mxu1 %v884_v55  ;;  %1989 = vmatpush.msrb.mxu3 %v974_v56  ;;  %v626_v55 = vld [vmem:[#allocation8 + $0x9f0] sm:$0xff]  ;;  %v1015_v56 = vld [vmem:[#allocation8 + $0x1618] sm:$0xff] }
 0x1b5   :  { %2027 = vmatpush.msra.mxu0 %v355_v57  ;;  %2042 = vmatpush.msrb.mxu2 %v565_v58  ;;  %v735_v57 = vld [vmem:[#allocation8 + $0xd58] sm:$0xff]  ;;  %v825_v58 = vld [vmem:[#allocation8 + $0x1028] sm:$0xff] }
 0x1b6   :  { %1963 = vmatpush.msra.mxu1 %v874_v60  ;;  %1990 = vmatpush.msrb.mxu3 %v964_v61  ;;  %v616_v60 = vld [vmem:[#allocation8 + $0x9a0] sm:$0xff]  ;;  %v1005_v61 = vld [vmem:[#allocation8 + $0x15c8] sm:$0xff] }
 0x1b7   :  { %2028 = vmatpush.msra.mxu0 %v345_v62  ;;  %2043 = vmatpush.msrb.mxu2 %v555_v63  ;;  %v725_v62 = vld [vmem:[#allocation8 + $0xd08] sm:$0xff]  ;;  %v815_v63 = vld [vmem:[#allocation8 + $0xfd8] sm:$0xff] }
 0x1b8   :  { %1964 = vmatpush.msra.mxu1 %v864_v0  ;;  %1991 = vmatpush.msrb.mxu3 %v954_v1  ;;  %v606_v0 = vld [vmem:[#allocation8 + $0x950] sm:$0xff]  ;;  %v995_v1 = vld [vmem:[#allocation8 + $0x1578] sm:$0xff] }
 0x1b9   :  { %1992 = vmatmul.f32.vlgmr.msrb.gmra.mxu3 %v3112_v59  ;;  %2029 = vmatpush.msra.mxu0 %v335_v2  ;;  %v715_v2 = vld [vmem:[#allocation8 + $0xcb8] sm:$0xff] }
 0x1ba   :  { %2044 = vmatpush.msrb.mxu2 %v545_v3  ;;  %2076 = vmatpush.msra.mxu3 %v945_v4  ;;  %v805_v3 = vld [vmem:[#allocation8 + $0xf88] sm:$0xff]  ;;  %v596_v4 = vld [vmem:[#allocation8 + $0x900] sm:$0xff] }
 0x1bb   :  { %1965 = vmatpush.msra.mxu1 %v854_v5  ;;  %2030 = vmatpush.msra.mxu0 %v325_v6  ;;  %v985_v5 = vld [vmem:[#allocation8 + $0x1528] sm:$0xff] }
 0x1bc   :  { %2045 = vmatpush.msrb.mxu2 %v535_v7  ;;  %2077 = vmatpush.msra.mxu3 %v935_v8  ;;  %v705_v6 = vld [vmem:[#allocation8 + $0xc68] sm:$0xff]  ;;  %v795_v7 = vld [vmem:[#allocation8 + $0xf38] sm:$0xff]  ;;  %v586_v8 = vld [vmem:[#allocation8 + $0x8b0] sm:$0xff] }
 0x1bd   :  { %1966 = vmatpush.msra.mxu1 %v844_v9  ;;  %2031 = vmatpush.msra.mxu0 %v315_v10  ;;  %v975_v9 = vld [vmem:[#allocation8 + $0x14d8] sm:$0xff]  ;;  %v786_v10 = vld [vmem:[#allocation8 + $0xef0] sm:$0xff] }
 0x1be   :  { %2046 = vmatpush.msrb.mxu2 %v525_v11  ;;  %2078 = vmatpush.msra.mxu3 %v925_v12  ;;  %v695_v11 = vld [vmem:[#allocation8 + $0xc18] sm:$0xff]  ;;  %v576_v12 = vld [vmem:[#allocation8 + $0x860] sm:$0xff] }
 0x1bf   :  { %1967 = vmatpush.msra.mxu1 %v834_v13  ;;  %2032 = vmatmul.f32.vlgmr.msra.gmra.mxu0 %v3096_v24  ;;  %v965_v13 = vld [vmem:[#allocation8 + $0x1488] sm:$0xff] }
 0x1c0   :  { %2096 = vmatpush.msrb.mxu0 %v1105_v14  ;;  %2047 = vmatpush.msrb.mxu2 %v515_v16  ;;  %v776_v14 = vld [vmem:[#allocation8 + $0xea0] sm:$0xff]  ;;  %v685_v16 = vld [vmem:[#allocation8 + $0xbc8] sm:$0xff] }
 0x1c1   :  { %2079 = vmatpush.msra.mxu3 %v915_v17  ;;  %1968 = vmatpush.msra.mxu1 %v824_v18  ;;  %v566_v17 = vld [vmem:[#allocation8 + $0x810] sm:$0xff]  ;;  %v955_v18 = vld [vmem:[#allocation8 + $0x1438] sm:$0xff] }
 0x1c2   :  { %2097 = vmatpush.msrb.mxu0 %v1095_v19  ;;  %2048 = vmatpush.msrb.mxu2 %v505_v20  ;;  %v766_v19 = vld [vmem:[#allocation8 + $0xe50] sm:$0xff]  ;;  %v675_v20 = vld [vmem:[#allocation8 + $0xb78] sm:$0xff] }
 0x1c3   :  { %2080 = vmatpush.msra.mxu3 %v905_v21  ;;  %1969 = vmatpush.msra.mxu1 %v814_v22  ;;  %v556_v21 = vld [vmem:[#allocation8 + $0x7c0] sm:$0xff]  ;;  %v946_v22 = vld [vmem:[#allocation8 + $0x13f0] sm:$0xff] }
 0x1c4   :  { %2098 = vmatpush.msrb.mxu0 %v1085_v23  ;;  %2049 = vmatpush.msrb.mxu2 %v495_v25  ;;  %v756_v23 = vld [vmem:[#allocation8 + $0xe00] sm:$0xff]  ;;  %v665_v25 = vld [vmem:[#allocation8 + $0xb28] sm:$0xff] }
 0x1c5   :  { %2081 = vmatpush.msra.mxu3 %v895_v26  ;;  %1970 = vmatpush.msra.mxu1 %v804_v27  ;;  %v546_v26 = vld [vmem:[#allocation8 + $0x770] sm:$0xff]  ;;  %v936_v27 = vld [vmem:[#allocation8 + $0x13a0] sm:$0xff] }
 0x1c6   :  { %2099 = vmatpush.msrb.mxu0 %v1075_v28  ;;  %2050 = vmatpush.msrb.mxu2 %v485_v29  ;;  %v746_v28 = vld [vmem:[#allocation8 + $0xdb0] sm:$0xff]  ;;  %v655_v29 = vld [vmem:[#allocation8 + $0xad8] sm:$0xff] }
 0x1c7   :  { %2082 = vmatpush.msra.mxu3 %v885_v30  ;;  %1971 = vmatpush.msra.mxu1 %v794_v31  ;;  %v536_v30 = vld [vmem:[#allocation8 + $0x720] sm:$0xff]  ;;  %v926_v31 = vld [vmem:[#allocation8 + $0x1350] sm:$0xff] }
 0x1c8   :  { %2100 = vmatpush.msrb.mxu0 %v1065_v32  ;;  %1972 = vmatmul.f32.vlgmr.msra.gmra.mxu1 %v3104_v39  ;;  %v736_v32 = vld [vmem:[#allocation8 + $0xd60] sm:$0xff] }
 0x1c9   :  { %2051 = vmatpush.msrb.mxu2 %v475_v33  ;;  %2056 = vmatpush.msrb.mxu1 %v785_v34  ;;  %v645_v33 = vld [vmem:[#allocation8 + $0xa88] sm:$0xff]  ;;  %v526_v34 = vld [vmem:[#allocation8 + $0x6d0] sm:$0xff] }
 0x1ca   :  { %2083 = vmatpush.msra.mxu3 %v875_v35  ;;  %2052 = vmatmul.f32.vlgmr.msrb.gmra.mxu2 %v3108_v46  ;;  %v916_v35 = vld [vmem:[#allocation8 + $0x1300] sm:$0xff] }
 0x1cb   :  { %2101 = vmatpush.msrb.mxu0 %v1055_v37  ;;  %2128 = vmatpush.msra.mxu2 %v1145_v38  ;;  %v726_v37 = vld [vmem:[#allocation8 + $0xd10] sm:$0xff]  ;;  %v635_v38 = vld [vmem:[#allocation8 + $0xa38] sm:$0xff] }
 0x1cc   :  { %2057 = vmatpush.msrb.mxu1 %v775_v40  ;;  %2084 = vmatpush.msra.mxu3 %v865_v41  ;;  %v516_v40 = vld [vmem:[#allocation8 + $0x680] sm:$0xff]  ;;  %v906_v41 = vld [vmem:[#allocation8 + $0x12b0] sm:$0xff] }
 0x1cd   :  { %2102 = vmatpush.msrb.mxu0 %v1045_v42  ;;  %2129 = vmatpush.msra.mxu2 %v1135_v43  ;;  %v466_v42 = vld [vmem:[#allocation8 + $0x4f0] sm:$0xff]  ;;  %v716_v43 = vld [vmem:[#allocation8 + $0xcc0] sm:$0xff] }
 0x1ce   :  { %2058 = vmatpush.msrb.mxu1 %v765_v44  ;;  %2085 = vmatpush.msra.mxu3 %v855_v45  ;;  %v506_v44 = vld [vmem:[#allocation8 + $0x630] sm:$0xff]  ;;  %v896_v45 = vld [vmem:[#allocation8 + $0x1260] sm:$0xff] }
 0x1cf   :  { %2103 = vmatpush.msrb.mxu0 %v1035_v47  ;;  %2130 = vmatpush.msra.mxu2 %v1125_v48  ;;  %v456_v47 = vld [vmem:[#allocation8 + $0x4a0] sm:$0xff]  ;;  %v706_v48 = vld [vmem:[#allocation8 + $0xc70] sm:$0xff] }
 0x1d0   :  { %2059 = vmatpush.msrb.mxu1 %v755_v49  ;;  %2086 = vmatpush.msra.mxu3 %v845_v50  ;;  %v496_v49 = vld [vmem:[#allocation8 + $0x5e0] sm:$0xff]  ;;  %v886_v50 = vld [vmem:[#allocation8 + $0x1210] sm:$0xff] }
 0x1d1   :  { %2104 = vmatpush.msrb.mxu0 %v1025_v51  ;;  %2131 = vmatpush.msra.mxu2 %v1115_v52  ;;  %v446_v51 = vld [vmem:[#allocation8 + $0x450] sm:$0xff]  ;;  %v696_v52 = vld [vmem:[#allocation8 + $0xc20] sm:$0xff] }
 0x1d2   :  { %2060 = vmatpush.msrb.mxu1 %v745_v53  ;;  %2087 = vmatpush.msra.mxu3 %v835_v54  ;;  %v486_v53 = vld [vmem:[#allocation8 + $0x590] sm:$0xff]  ;;  %v876_v54 = vld [vmem:[#allocation8 + $0x11c0] sm:$0xff] }
 0x1d3   :  { %2156 = vmatpush.msrb.mxu2 %v626_v55  ;;  %2105 = vmatpush.msrb.mxu0 %v1015_v56  ;;  %v436_v55 = vld [vmem:[#allocation8 + $0x400] sm:$0xff]  ;;  %v686_v56 = vld [vmem:[#allocation8 + $0xbd0] sm:$0xff] }
 0x1d4   :  { %2797 = vmatmul.msk.f32.vlgmr.msra.gmra.mxu2 %vm1172_vm1, %v3118_v15  ;;  %2061 = vmatpush.msrb.mxu1 %v735_v57  ;;  %v476_v57 = vld [vmem:[#allocation8 + $0x540] sm:$0xff] }
 0x1d5   :  { %2088 = vmatpush.msra.mxu3 %v825_v58  ;;  %2157 = vmatpush.msrb.mxu2 %v616_v60  ;;  %v866_v58 = vld [vmem:[#allocation8 + $0x1170] sm:$0xff] }
 0x1d6   :  { %2106 = vmatpush.msrb.mxu0 %v1005_v61  ;;  %2062 = vmatpush.msrb.mxu1 %v725_v62  ;;  %v426_v60 = vld [vmem:[#allocation8 + $0x3b0] sm:$0xff]  ;;  %v676_v61 = vld [vmem:[#allocation8 + $0xb80] sm:$0xff] }
 0x1d7   :  { %2089 = vmatpush.msra.mxu3 %v815_v63  ;;  %2158 = vmatpush.msrb.mxu2 %v606_v0  ;;  %v1146_v62 = vld [vmem:[#allocation8 + $0x1a30] sm:$0xff]  ;;  %v856_v63 = vld [vmem:[#allocation8 + $0x1120] sm:$0xff] }
 0x1d8   :  { %2107 = vmatpush.msrb.mxu0 %v995_v1  ;;  %2063 = vmatpush.msrb.mxu1 %v715_v2  ;;  %v416_v0 = vld [vmem:[#allocation8 + $0x360] sm:$0xff]  ;;  %v666_v1 = vld [vmem:[#allocation8 + $0xb30] sm:$0xff] }
 0x1d9   :  { %2090 = vmatpush.msra.mxu3 %v805_v3  ;;  %2159 = vmatpush.msrb.mxu2 %v596_v4  ;;  %v1136_v2 = vld [vmem:[#allocation8 + $0x19e0] sm:$0xff]  ;;  %v846_v3 = vld [vmem:[#allocation8 + $0x10d0] sm:$0xff] }
 0x1da   :  { %2108 = vmatpush.msrb.mxu0 %v985_v5  ;;  %2064 = vmatpush.msrb.mxu1 %v705_v6  ;;  %v406_v4 = vld [vmem:[#allocation8 + $0x310] sm:$0xff]  ;;  %v656_v5 = vld [vmem:[#allocation8 + $0xae0] sm:$0xff] }
 0x1db   :  { %2091 = vmatpush.msra.mxu3 %v795_v7  ;;  %2160 = vmatpush.msrb.mxu2 %v586_v8  ;;  %v1126_v6 = vld [vmem:[#allocation8 + $0x1990] sm:$0xff]  ;;  %v836_v7 = vld [vmem:[#allocation8 + $0x1080] sm:$0xff] }
 0x1dc   :  { %2092 = vmatmul.f32.vlgmr.msra.gmra.mxu3 %v3104_v39  ;;  %2109 = vmatpush.msrb.mxu0 %v975_v9  ;;  %v396_v8 = vld [vmem:[#allocation8 + $0x2c0] sm:$0xff]  ;;  %v646_v9 = vld [vmem:[#allocation8 + $0xa90] sm:$0xff] }
 0x1dd   :  { %2176 = vmatpush.msrb.mxu3 %v786_v10  ;;  %2065 = vmatpush.msrb.mxu1 %v695_v11  ;;  %v1116_v10 = vld [vmem:[#allocation8 + $0x1940] sm:$0xff]  ;;  %v826_v11 = vld [vmem:[#allocation8 + $0x1030] sm:$0xff] }
 0x1de   :  { %2161 = vmatpush.msrb.mxu2 %v576_v12  ;;  %2110 = vmatpush.msrb.mxu0 %v965_v13  ;;  %v467_v12 = vld [vmem:[#allocation8 + $0x4f8] sm:$0xff]  ;;  %v386_v13 = vld [vmem:[#allocation8 + $0x270] sm:$0xff] }
 0x1df   :  { %2177 = vmatpush.msrb.mxu3 %v776_v14  ;;  %2066 = vmatpush.msrb.mxu1 %v685_v16  ;;  %v636_v14 = vld [vmem:[#allocation8 + $0xa40] sm:$0xff] }
 0x1e0   :  { %2162 = vmatpush.msrb.mxu2 %v566_v17  ;;  %2111 = vmatpush.msrb.mxu0 %v955_v18  ;;  %v816_v16 = vld [vmem:[#allocation8 + $0xfe0] sm:$0xff]  ;;  %v457_v17 = vld [vmem:[#allocation8 + $0x4a8] sm:$0xff]  ;;  %v627_v18 = vld [vmem:[#allocation8 + $0x9f8] sm:$0xff] }
 0x1e1   :  { %2178 = vmatpush.msrb.mxu3 %v766_v19  ;;  %2067 = vmatpush.msrb.mxu1 %v675_v20  ;;  %v376_v19 = vld [vmem:[#allocation8 + $0x220] sm:$0xff]  ;;  %v806_v20 = vld [vmem:[#allocation8 + $0xf90] sm:$0xff] }
 0x1e2   :  { %2112 = vmatmul.f32.vlgmr.msrb.gmra.mxu0 %v3112_v59  ;;  %2163 = vmatpush.msrb.mxu2 %v556_v21  ;;  %v447_v21 = vld [vmem:[#allocation8 + $0x458] sm:$0xff] }
 0x1e3   :  { %2196 = vmatpush.msra.mxu0 %v946_v22  ;;  %2179 = vmatpush.msrb.mxu3 %v756_v23  ;;  %v617_v22 = vld [vmem:[#allocation8 + $0x9a8] sm:$0xff]  ;;  %v366_v23 = vld [vmem:[#allocation8 + $0x1d0] sm:$0xff] }
 0x1e4   :  { %2068 = vmatpush.msrb.mxu1 %v665_v25  ;;  %2164 = vmatpush.msrb.mxu2 %v546_v26  ;;  %v796_v25 = vld [vmem:[#allocation8 + $0xf40] sm:$0xff]  ;;  %v437_v26 = vld [vmem:[#allocation8 + $0x408] sm:$0xff] }
 0x1e5   :  { %2197 = vmatpush.msra.mxu0 %v936_v27  ;;  %2180 = vmatpush.msrb.mxu3 %v746_v28  ;;  %v607_v27 = vld [vmem:[#allocation8 + $0x958] sm:$0xff]  ;;  %v356_v28 = vld [vmem:[#allocation8 + $0x180] sm:$0xff] }
 0x1e6   :  { %2069 = vmatpush.msrb.mxu1 %v655_v29  ;;  %2165 = vmatpush.msrb.mxu2 %v536_v30  ;;  %v427_v29 = vld [vmem:[#allocation8 + $0x3b8] sm:$0xff] }
 0x1e7   :  { %2198 = vmatpush.msra.mxu0 %v926_v31  ;;  %2181 = vmatpush.msrb.mxu3 %v736_v32  ;;  %v787_v30 = vld [vmem:[#allocation8 + $0xef8] sm:$0xff]  ;;  %v597_v31 = vld [vmem:[#allocation8 + $0x908] sm:$0xff]  ;;  %v346_v32 = vld [vmem:[#allocation8 + $0x130] sm:$0xff] }
 0x1e8   :  { %2070 = vmatpush.msrb.mxu1 %v645_v33  ;;  %2166 = vmatpush.msrb.mxu2 %v526_v34  ;;  %v417_v33 = vld [vmem:[#allocation8 + $0x368] sm:$0xff] }
 0x1e9   :  { %2199 = vmatpush.msra.mxu0 %v916_v35  ;;  %2182 = vmatpush.msrb.mxu3 %v726_v37  ;;  %v777_v34 = vld [vmem:[#allocation8 + $0xea8] sm:$0xff]  ;;  %v587_v35 = vld [vmem:[#allocation8 + $0x8b8] sm:$0xff]  ;;  %v336_v37 = vld [vmem:[#allocation8 + $0xe0] sm:$0xff] }
 0x1ea   :  { %2071 = vmatpush.msrb.mxu1 %v635_v38  ;;  %2167 = vmatpush.msrb.mxu2 %v516_v40  ;;  %v407_v38 = vld [vmem:[#allocation8 + $0x318] sm:$0xff] }
 0x1eb   :  { %2200 = vmatpush.msra.mxu0 %v906_v41  ;;  %2072 = vmatmul.f32.vlgmr.msrb.gmra.mxu1 %v3102_v36  ;;  %v767_v40 = vld [vmem:[#allocation8 + $0xe58] sm:$0xff]  ;;  %v577_v41 = vld [vmem:[#allocation8 + $0x868] sm:$0xff] }
 0x1ec   :  { %2136 = vmatpush.msra.mxu1 %v466_v42  ;;  %2183 = vmatpush.msrb.mxu3 %v716_v43  ;;  %v326_v42 = vld [vmem:[#allocation8 + $0x90] sm:$0xff]  ;;  %v397_v43 = vld [vmem:[#allocation8 + $0x2c8] sm:$0xff] }
 0x1ed   :  { %2168 = vmatpush.msrb.mxu2 %v506_v44  ;;  %2201 = vmatpush.msra.mxu0 %v896_v45  ;;  %v3174_v44 = vpop.f32.mrf.mxu0  ;;  %v757_v45 = vld [vmem:[#allocation8 + $0xe08] sm:$0xff] }
 0x1ee   :  { %2137 = vmatpush.msra.mxu1 %v456_v47  ;;  %2184 = vmatpush.msrb.mxu3 %v706_v48  ;;  %v567_v47 = vld [vmem:[#allocation8 + $0x818] sm:$0xff]  ;;  %v316_v48 = vld [vmem:[#allocation8 + $0x40] sm:$0xff] }
 0x1ef   :  { %2169 = vmatpush.msrb.mxu2 %v496_v49  ;;  %2202 = vmatpush.msra.mxu0 %v886_v50  ;;  %v387_v49 = vld [vmem:[#allocation8 + $0x278] sm:$0xff] }
 0x1f0   :  { %2138 = vmatpush.msra.mxu1 %v446_v51  ;;  %2185 = vmatpush.msrb.mxu3 %v696_v52  ;;  %v747_v50 = vld [vmem:[#allocation8 + $0xdb8] sm:$0xff]  ;;  %v1106_v51 = vld [vmem:[#allocation8 + $0x18f0] sm:$0xff]  ;;  %v557_v52 = vld [vmem:[#allocation8 + $0x7c8] sm:$0xff] }
 0x1f1   :  { %2170 = vmatpush.msrb.mxu2 %v486_v53  ;;  %2203 = vmatpush.msra.mxu0 %v876_v54  ;;  %v737_v53 = vld [vmem:[#allocation8 + $0xd68] sm:$0xff] }
 0x1f2   :  { %2139 = vmatpush.msra.mxu1 %v436_v55  ;;  %2186 = vmatpush.msrb.mxu3 %v686_v56  ;;  %v377_v54 = vld [vmem:[#allocation8 + $0x228] sm:$0xff]  ;;  %v1096_v55 = vld [vmem:[#allocation8 + $0x18a0] sm:$0xff]  ;;  %v547_v56 = vld [vmem:[#allocation8 + $0x778] sm:$0xff] }
 0x1f3   :  { %2171 = vmatpush.msrb.mxu2 %v476_v57  ;;  %2204 = vmatpush.msra.mxu0 %v866_v58  ;;  %v727_v57 = vld [vmem:[#allocation8 + $0xd18] sm:$0xff] }
 0x1f4   :  { %2140 = vmatpush.msra.mxu1 %v426_v60  ;;  %2172 = vmatmul.f32.vlgmr.msrb.gmra.mxu2 %v3108_v46  ;;  %v367_v58 = vld [vmem:[#allocation8 + $0x1d8] sm:$0xff]  ;;  %v1086_v60 = vld [vmem:[#allocation8 + $0x1850] sm:$0xff] }
 0x1f5   :  { %2187 = vmatpush.msrb.mxu3 %v676_v61  ;;  %2248 = vmatpush.msra.mxu2 %v1146_v62  ;;  %v537_v61 = vld [vmem:[#allocation8 + $0x728] sm:$0xff] }
 0x1f6   :  { %2205 = vmatpush.msra.mxu0 %v856_v63  ;;  %2141 = vmatpush.msra.mxu1 %v416_v0  ;;  %v717_v62 = vld [vmem:[#allocation8 + $0xcc8] sm:$0xff]  ;;  %v1076_v0 = vld [vmem:[#allocation8 + $0x1800] sm:$0xff] }
 0x1f7   :  { %2188 = vmatpush.msrb.mxu3 %v666_v1  ;;  %2249 = vmatpush.msra.mxu2 %v1136_v2  ;;  %v357_v63 = vld [vmem:[#allocation8 + $0x188] sm:$0xff]  ;;  %v527_v1 = vld [vmem:[#allocation8 + $0x6d8] sm:$0xff]  ;;  %v3177_v2 = vpop.f32.mrf.mxu0 }
 0x1f8   :  { %2206 = vmatpush.msra.mxu0 %v846_v3  ;;  %2142 = vmatpush.msra.mxu1 %v406_v4  ;;  %v707_v3 = vld [vmem:[#allocation8 + $0xc78] sm:$0xff] }
 0x1f9   :  { %2189 = vmatpush.msrb.mxu3 %v656_v5  ;;  %2250 = vmatpush.msra.mxu2 %v1126_v6  ;;  %v347_v4 = vld [vmem:[#allocation8 + $0x138] sm:$0xff]  ;;  %v1066_v5 = vld [vmem:[#allocation8 + $0x17b0] sm:$0xff]  ;;  %v517_v6 = vld [vmem:[#allocation8 + $0x688] sm:$0xff] }
 0x1fa   :  { %2207 = vmatpush.msra.mxu0 %v836_v7  ;;  %2143 = vmatpush.msra.mxu1 %v396_v8  ;;  %v697_v7 = vld [vmem:[#allocation8 + $0xc28] sm:$0xff] }
 0x1fb   :  { %2190 = vmatpush.msrb.mxu3 %v646_v9  ;;  %2251 = vmatpush.msra.mxu2 %v1116_v10  ;;  %v337_v8 = vld [vmem:[#allocation8 + $0xe8] sm:$0xff]  ;;  %v3179_v9 = vpop.f32.mrf.mxu3  ;;  %v1056_v10 = vld [vmem:[#allocation8 + $0x1760] sm:$0xff] }
 0x1fc   :  { %2208 = vmatpush.msra.mxu0 %v826_v11  ;;  %2144 = vmatpush.msra.mxu1 %v386_v13  ;;  %v507_v11 = vld [vmem:[#allocation8 + $0x638] sm:$0xff] }
 0x1fd   :  { %2256 = vmatpush.msrb.mxu2 %v467_v12  ;;  %2191 = vmatpush.msrb.mxu3 %v636_v14  ;;  %v687_v12 = vld [vmem:[#allocation8 + $0xbd8] sm:$0xff]  ;;  %v3181_v14 = vpop.f32.mrf.mxu1 }
 0x1fe   :  { %2798 = vmatmul.msk.f32.vlgmr.msra.gmra.mxu2 %vm1172_vm1, %v3118_v15  ;;  %2192 = vmatmul.f32.vlgmr.msrb.gmra.mxu3 %v3102_v36  ;;  %v327_v13 = vld [vmem:[#allocation8 + $0x98] sm:$0xff] }
 0x1ff   :  { %2209 = vmatpush.msra.mxu0 %v816_v16  ;;  %2257 = vmatpush.msrb.mxu2 %v457_v17  ;;  %v3183_v16 = vpop.f32.mrf.mxu2  ;;  %v1046_v17 = vld [vmem:[#allocation8 + $0x1710] sm:$0xff] }
 0x200   :  { %2276 = vmatpush.msra.mxu3 %v627_v18  ;;  %2145 = vmatpush.msra.mxu1 %v376_v19  ;;  %v497_v18 = vld [vmem:[#allocation8 + $0x5e8] sm:$0xff] }
 0x201   :  { %2210 = vmatpush.msra.mxu0 %v806_v20  ;;  %2258 = vmatpush.msrb.mxu2 %v447_v21  ;;  %v677_v19 = vld [vmem:[#allocation8 + $0xb88] sm:$0xff]  ;;  %v1036_v21 = vld [vmem:[#allocation8 + $0x16c0] sm:$0xff] }
 0x202   :  { %2277 = vmatpush.msra.mxu3 %v617_v22  ;;  %2146 = vmatpush.msra.mxu1 %v366_v23  ;;  %v317_v20 = vld [vmem:[#allocation8 + $0x48] sm:$0xff]  ;;  %v487_v22 = vld [vmem:[#allocation8 + $0x598] sm:$0xff]  ;;  %v3185_v23 = vpop.f32.mrf.mxu0 }
 0x203   :  { %2211 = vmatpush.msra.mxu0 %v796_v25  ;;  %2259 = vmatpush.msrb.mxu2 %v437_v26  ;;  %v667_v25 = vld [vmem:[#allocation8 + $0xb38] sm:$0xff] }
 0x204   :  { %2278 = vmatpush.msra.mxu3 %v607_v27  ;;  %2147 = vmatpush.msra.mxu1 %v356_v28  ;;  %v1107_v26 = vld [vmem:[#allocation8 + $0x18f8] sm:$0xff]  ;;  %v1026_v27 = vld [vmem:[#allocation8 + $0x1670] sm:$0xff]  ;;  %v477_v28 = vld [vmem:[#allocation8 + $0x548] sm:$0xff] }
 0x205   :  { %2212 = vmatmul.f32.vlgmr.msra.gmra.mxu0 %v3104_v39  ;;  %2260 = vmatpush.msrb.mxu2 %v427_v29  ;;  %v657_v29 = vld [vmem:[#allocation8 + $0xae8] sm:$0xff] }
 0x206   :  { %2296 = vmatpush.msrb.mxu0 %v787_v30  ;;  %2279 = vmatpush.msra.mxu3 %v597_v31  ;;  %v1097_v30 = vld [vmem:[#allocation8 + $0x18a8] sm:$0xff]  ;;  %v1147_v31 = vld [vmem:[#allocation8 + $0x1a38] sm:$0xff] }
 0x207   :  { %2148 = vmatpush.msra.mxu1 %v346_v32  ;;  %2261 = vmatpush.msrb.mxu2 %v417_v33  ;;  %v1016_v32 = vld [vmem:[#allocation8 + $0x1620] sm:$0xff]  ;;  %v3188_v33 = vpop.f32.mrf.mxu1 }
 0x208   :  { %2297 = vmatpush.msrb.mxu0 %v777_v34  ;;  %2280 = vmatpush.msra.mxu3 %v587_v35  ;;  %v3190_v34 = vpop.f32.mrf.mxu3  ;;  %v647_v35 = vld [vmem:[#allocation8 + $0xa98] sm:$0xff] }
 0x209   :  { %2149 = vmatpush.msra.mxu1 %v336_v37  ;;  %2262 = vmatpush.msrb.mxu2 %v407_v38  ;;  %v1087_v37 = vld [vmem:[#allocation8 + $0x1858] sm:$0xff]  ;;  %v1137_v38 = vld [vmem:[#allocation8 + $0x19e8] sm:$0xff] }
 0x20a   :  { %2298 = vmatpush.msrb.mxu0 %v767_v40  ;;  %2281 = vmatpush.msra.mxu3 %v577_v41  ;;  %v1006_v40 = vld [vmem:[#allocation8 + $0x15d0] sm:$0xff]  ;;  %v637_v41 = vld [vmem:[#allocation8 + $0xa48] sm:$0xff] }
 0x20b   :  { %2150 = vmatpush.msra.mxu1 %v326_v42  ;;  %2263 = vmatpush.msrb.mxu2 %v397_v43  ;;  %v1077_v42 = vld [vmem:[#allocation8 + $0x1808] sm:$0xff]  ;;  %v1127_v43 = vld [vmem:[#allocation8 + $0x1998] sm:$0xff] }
 0x20c   :  { %2299 = vmatpush.msrb.mxu0 %v757_v45  ;;  %2282 = vmatpush.msra.mxu3 %v567_v47  ;;  %v996_v45 = vld [vmem:[#allocation8 + $0x1580] sm:$0xff]  ;;  %v1067_v47 = vld [vmem:[#allocation8 + $0x17b8] sm:$0xff] }
 0x20d   :  { %2151 = vmatpush.msra.mxu1 %v316_v48  ;;  %2264 = vmatpush.msrb.mxu2 %v387_v49  ;;  %v3195_v48 = vpop.f32.mrf.mxu0  ;;  %v1117_v49 = vld [vmem:[#allocation8 + $0x1948] sm:$0xff] }
 0x20e   :  { %2300 = vmatpush.msrb.mxu0 %v747_v50  ;;  %2152 = vmatmul.f32.vlgmr.msra.gmra.mxu1 %v3096_v24  ;;  %v986_v50 = vld [vmem:[#allocation8 + $0x1530] sm:$0xff] }
 0x20f   :  { %2216 = vmatpush.msrb.mxu1 %v1106_v51  ;;  %2283 = vmatpush.msra.mxu3 %v557_v52  ;;  %v2401_v51 = vld [vmem:[%s3786_s5 + $0x78] sm:$0xff]  ;;  %v2416_v52 = vld [vmem:[%s3786_s5 + $0xf0] sm:$0xff] }
 0x210   :  { %2301 = vmatpush.msrb.mxu0 %v737_v53  ;;  %2265 = vmatpush.msrb.mxu2 %v377_v54  ;;  %v1057_v53 = vld [vmem:[#allocation8 + $0x1768] sm:$0xff]  ;;  %v3207_v54 = vpop.f32.mrf.mxu1 }
 0x211   :  { %2217 = vmatpush.msrb.mxu1 %v1096_v55  ;;  %2284 = vmatpush.msra.mxu3 %v547_v56  ;;  %v3209_v55 = vpop.f32.mrf.mxu3  ;;  %v976_v56 = vld [vmem:[#allocation8 + $0x14e0] sm:$0xff] }
 0x212   :  { %2302 = vmatpush.msrb.mxu0 %v727_v57  ;;  %2266 = vmatpush.msrb.mxu2 %v367_v58  ;;  %v2400_v57 = vld [vmem:[%s3786_s5 + $0x70] sm:$0xff]  ;;  %v3217_v58 = vld [vmem:[#allocation10] sm:$0xff] }
 0x213   :  { %2218 = vmatpush.msrb.mxu1 %v1086_v60  ;;  %2285 = vmatpush.msra.mxu3 %v537_v61  ;;  %v1047_v61 = vld [vmem:[#allocation8 + $0x1718] sm:$0xff] }
 0x214   :  { %2303 = vmatpush.msrb.mxu0 %v717_v62  ;;  %2267 = vmatpush.msrb.mxu2 %v357_v63  ;;  %v966_v62 = vld [vmem:[#allocation8 + $0x1490] sm:$0xff] }
 0x215   :  { %2219 = vmatpush.msrb.mxu1 %v1076_v0  ;;  %2286 = vmatpush.msra.mxu3 %v527_v1  ;;  %v2399_v63 = vld [vmem:[%s3786_s5 + $0x68] sm:$0xff]  ;;  %v2414_v0 = vld [vmem:[%s3786_s5 + $0xe0] sm:$0xff] }
 0x216   :  { %2304 = vmatpush.msrb.mxu0 %v707_v3  ;;  %2268 = vmatpush.msrb.mxu2 %v347_v4  ;;  %v1037_v1 = vld [vmem:[#allocation8 + $0x16c8] sm:$0xff]  ;;  %v956_v3 = vld [vmem:[#allocation8 + $0x1440] sm:$0xff]  ;;  %v1152_v4 = vperm.slane %v3217_v58, 0 }
 0x217   :  { %2220 = vmatpush.msrb.mxu1 %v1066_v5  ;;  %2287 = vmatpush.msra.mxu3 %v517_v6  ;;  %v2413_v5 = vld [vmem:[%s3786_s5 + $0xd8] sm:$0xff] }
 0x218   :  { %2305 = vmatpush.msrb.mxu0 %v697_v7  ;;  %2269 = vmatpush.msrb.mxu2 %v337_v8  ;;  %v1027_v6 = vld [vmem:[#allocation8 + $0x1678] sm:$0xff]  ;;  %v1153_v7 = vperm.slane %v3217_v58, 1  ;;  %v3237_v8 = vpop.f32.mrf.mxu0 }
 0x219   :  { %2221 = vmatpush.msrb.mxu1 %v1056_v10  ;;  %2288 = vmatpush.msra.mxu3 %v507_v11  ;;  %v947_v10 = vld [vmem:[#allocation8 + $0x13f8] sm:$0xff] }
 0x21a   :  { %2306 = vmatpush.msrb.mxu0 %v687_v12  ;;  %2270 = vmatpush.msrb.mxu2 %v327_v13  ;;  %v2397_v11 = vld [vmem:[%s3786_s5 + $0x58] sm:$0xff]  ;;  %v3242_v12 = vpop.f32.mrf.mxu1  ;;  %v3244_v13 = vpop.f32.mrf.mxu3 }
 0x21b   :  { %2222 = vmatpush.msrb.mxu1 %v1046_v17  ;;  %2289 = vmatpush.msra.mxu3 %v497_v18  ;;  %v2412_v17 = vld [vmem:[%s3786_s5 + $0xd0] sm:$0xff]  ;;  %v1017_v18 = vld [vmem:[#allocation8 + $0x1628] sm:$0xff] }
 0x21c   :  { %2307 = vmatpush.msrb.mxu0 %v677_v19  ;;  %2271 = vmatpush.msrb.mxu2 %v317_v20  ;;  %v1194_v19 = vadd.f32 %v3183_v16, %v1152_v4  ;;  %v937_v20 = vld [vmem:[#allocation8 + $0x13a8] sm:$0xff]  ;;  %v927_v16 = vld [vmem:[#allocation8 + $0x1358] sm:$0xff] }
 0x21d   :  { %2223 = vmatpush.msrb.mxu1 %v1036_v21  ;;  %2290 = vmatpush.msra.mxu3 %v487_v22  ;;  %v2396_v21 = vld [vmem:[%s3786_s5 + $0x50] sm:$0xff] }
 0x21e   :  { %2272 = vmatmul.f32.vlgmr.msrb.gmra.mxu2 %v3096_v24  ;;  %2308 = vmatpush.msrb.mxu0 %v667_v25  ;;  %v3193_v24 = vpop.f32.mrf.mxu2  ;;  %v2411_v25 = vld [vmem:[%s3786_s5 + $0xc8] sm:$0xff] }
 0x21f   :  { %2336 = vmatpush.msra.mxu2 %v1107_v26  ;;  %2224 = vmatpush.msrb.mxu1 %v1026_v27  ;;  %v1007_v26 = vld [vmem:[#allocation8 + $0x15d8] sm:$0xff]  ;;  %v1314_v27 = vadd.f32 %v3190_v34, %v1153_v7  ;;  %v2394_v34 = vld [vmem:[%s3786_s5 + $0x40] sm:$0xff] }
 0x220   :  { %2291 = vmatpush.msra.mxu3 %v477_v28  ;;  %2309 = vmatpush.msrb.mxu0 %v657_v29  ;;  %v2395_v28 = vld [vmem:[%s3786_s5 + $0x48] sm:$0xff]  ;;  %v2410_v29 = vld [vmem:[%s3786_s5 + $0xc0] sm:$0xff]  ;;  %v2448_v7 = vld [vmem:[%s3786_s5 + $0x1f0] sm:$0xff] }
 0x221   :  { %2292 = vmatmul.f32.vlgmr.msra.gmra.mxu3 %v3108_v46  ;;  %2337 = vmatpush.msra.mxu2 %v1097_v30  ;;  %v2417_v46 = vld [vmem:[%s3786_s5 + $0xf8] sm:$0xff]  ;;  %v997_v30 = vld [vmem:[#allocation8 + $0x1588] sm:$0xff] }
 0x222   :  { %2368 = vmatpush.msrb.mxu3 %v1147_v31  ;;  %2225 = vmatpush.msrb.mxu1 %v1016_v32  ;;  %v1214_v31 = vadd.f32 %v3179_v9, %v1194_v19  ;;  %v917_v32 = vld [vmem:[#allocation8 + $0x1308] sm:$0xff]  ;;  %v907_v9 = vld [vmem:[#allocation8 + $0x12b8] sm:$0xff] }
 0x223   :  { %2310 = vmatpush.msrb.mxu0 %v647_v35  ;;  %2338 = vmatpush.msra.mxu2 %v1087_v37  ;;  %v2409_v35 = vld [vmem:[%s3786_s5 + $0xb8] sm:$0xff] }
 0x224   :  { %2369 = vmatpush.msrb.mxu3 %v1137_v38  ;;  %2226 = vmatpush.msrb.mxu1 %v1006_v40  ;;  %v987_v37 = vld [vmem:[#allocation8 + $0x1538] sm:$0xff]  ;;  %v1334_v38 = vadd.f32 %v3177_v2, %v1314_v27  ;;  %v3274_v40 = vpop.f32.mrf.mxu0  ;;  %v977_v2 = vld [vmem:[#allocation8 + $0x14e8] sm:$0xff] }
 0x225   :  { %2311 = vmatpush.msrb.mxu0 %v637_v41  ;;  %2339 = vmatpush.msra.mxu2 %v1077_v42  ;;  %v2393_v41 = vld [vmem:[%s3786_s5 + $0x38] sm:$0xff]  ;;  %v3279_v42 = vpop.f32.mrf.mxu1  ;;  %v2386_v27 = vld [vmem:[%s3786_s5] sm:$0xff] }
 0x226   :  { %2370 = vmatpush.msrb.mxu3 %v1127_v43  ;;  %2227 = vmatpush.msrb.mxu1 %v996_v45  ;;  %v3219_v60 = vpop.f32.mrf.mxu2  ;;  %v3281_v43 = vpop.f32.mrf.mxu3  ;;  %v2408_v45 = vld [vmem:[%s3786_s5 + $0xb0] sm:$0xff] }
 0x227   :  { %2312 = vmatmul.f32.vlgmr.msrb.gmra.mxu0 %v3102_v36  ;;  %2340 = vmatpush.msra.mxu2 %v1067_v47  ;;  %v2415_v36 = vld [vmem:[%s3786_s5 + $0xe8] sm:$0xff]  ;;  %v1234_v47 = vadd.f32 %v3174_v44, %v1214_v31  ;;  %v887_v44 = vld [vmem:[#allocation8 + $0x1218] sm:$0xff] }
 0x228   :  { %2570 = vmatpush.msra.mxu0 %v2417_v46  ;;  %2371 = vmatpush.msrb.mxu3 %v1117_v49  ;;  %v1354_v46 = vadd.f32 %v3207_v54, %v1334_v38  ;;  %v897_v49 = vld [vmem:[#allocation8 + $0x1268] sm:$0xff]  ;;  %v827_v31 = vld [vmem:[#allocation8 + $0x1038] sm:$0xff] }
 0x229   :  { %2228 = vmatpush.msrb.mxu1 %v986_v50  ;;  %2341 = vmatpush.msra.mxu2 %v1057_v53  ;;  %v2392_v50 = vld [vmem:[%s3786_s5 + $0x30] sm:$0xff]  ;;  %v2391_v54 = vld [vmem:[%s3786_s5 + $0x28] sm:$0xff] }
 0x22a   :  { %2550 = vmatpush.msra.mxu3 %v2401_v51  ;;  %2571 = vmatpush.msra.mxu0 %v2416_v52  ;;  %v2407_v52 = vld [vmem:[%s3786_s5 + $0xa8] sm:$0xff]  ;;  %v967_v53 = vld [vmem:[#allocation8 + $0x1498] sm:$0xff] }
 0x22b   :  { %2799 = vmatmul.msk.f32.vlgmr.msrb.gmra.mxu3 %vm1172_vm1, %v3118_v15  ;;  %2229 = vmatpush.msrb.mxu1 %v976_v56  ;;  %v2398_v15 = vld [vmem:[%s3786_s5 + $0x60] sm:$0xff] }
 0x22c   :  { %2551 = vmatpush.msra.mxu3 %v2400_v57  ;;  %2572 = vmatpush.msra.mxu0 %v2415_v36  ;;  %v2406_v56 = vld [vmem:[%s3786_s5 + $0xa0] sm:$0xff]  ;;  %v1254_v36 = vadd.f32 %v3181_v14, %v1234_v47  ;;  %v2449_v14 = vld [vmem:[%s3786_s5 + $0x1f8] sm:$0xff] }
 0x22d   :  { %2342 = vmatpush.msra.mxu2 %v1047_v61  ;;  %2230 = vmatpush.msrb.mxu1 %v966_v62  ;;  %v957_v57 = vld [vmem:[#allocation8 + $0x1448] sm:$0xff]  ;;  %v1374_v61 = vadd.f32 %v3219_v60, %v1354_v46  ;;  %v867_v60 = vld [vmem:[#allocation8 + $0x1178] sm:$0xff]  ;;  %v3316_v4 = vpop.f32.mrf.mxu1 }
 0x22e   :  { %2552 = vmatpush.msra.mxu3 %v2399_v63  ;;  %2573 = vmatpush.msra.mxu0 %v2414_v0  ;;  %v3254_v22 = vpop.f32.mrf.mxu2  ;;  %v877_v62 = vld [vmem:[#allocation8 + $0x11c8] sm:$0xff]  ;;  %v2405_v0 = vld [vmem:[%s3786_s5 + $0x98] sm:$0xff] }
 0x22f   :  { %2343 = vmatpush.msra.mxu2 %v1037_v1  ;;  %2231 = vmatpush.msrb.mxu1 %v956_v3  ;;  %v2390_v63 = vld [vmem:[%s3786_s5 + $0x20] sm:$0xff]  ;;  %v1394_v1 = vadd.f32 %v3209_v55, %v1374_v61  ;;  %v3311_v3 = vpop.f32.mrf.mxu0  ;;  %v2389_v55 = vld [vmem:[%s3786_s5 + $0x18] sm:$0xff]  ;;  %v2443_v46 = vld [vmem:[%s3786_s5 + $0x1c8] sm:$0xff] }
 0x230   :  { %2553 = vmatpush.msra.mxu3 %v2398_v15  ;;  %2574 = vmatpush.msra.mxu0 %v2413_v5  ;;  %v3318_v15 = vpop.f32.mrf.mxu3  ;;  %v2404_v5 = vld [vmem:[%s3786_s5 + $0x90] sm:$0xff] }
 0x231   :  { %2232 = vmatmul.f32.vlgmr.msrb.gmra.mxu1 %v3112_v59  ;;  %2344 = vmatpush.msra.mxu2 %v1027_v6  ;;  %v1274_v6 = vadd.f32 %v3193_v24, %v1254_v36  ;;  %v2447_v24 = vld [vmem:[%s3786_s5 + $0x1e8] sm:$0xff]  ;;  %v2477_v36 = vld [vmem:[%s3786_s5 + $0x2d8] sm:$0xff] }
 0x232   :  { %2316 = vmatpush.msra.mxu1 %v947_v10  ;;  %2554 = vmatpush.msra.mxu3 %v2397_v11  ;;  %v857_v10 = vld [vmem:[#allocation8 + $0x1128] sm:$0xff] }
 0x233   :  { %2575 = vmatpush.msra.mxu0 %v2412_v17  ;;  %2345 = vmatpush.msra.mxu2 %v1017_v18  ;;  %v2403_v11 = vld [vmem:[%s3786_s5 + $0x88] sm:$0xff]  ;;  %v1414_v17 = vadd.f32 %v3185_v23, %v1394_v1  ;;  %v847_v18 = vld [vmem:[#allocation8 + $0x10d8] sm:$0xff]  ;;  %v1294_v23 = vadd.f32 %v3188_v33, %v1274_v6 }
 0x234   :  { %2317 = vmatpush.msra.mxu1 %v937_v20  ;;  %2555 = vmatpush.msra.mxu3 %v2396_v21  ;;  %v2387_v20 = vld [vmem:[%s3786_s5 + $0x8] sm:$0xff]  ;;  %v2402_v21 = vld [vmem:[%s3786_s5 + $0x80] sm:$0xff]  ;;  %v2481_v33 = vld [vmem:[%s3786_s5 + $0x2f8] sm:$0xff] }
 0x235   :  { %2576 = vmatpush.msra.mxu0 %v2411_v25  ;;  %2346 = vmatpush.msra.mxu2 %v1007_v26  ;;  %v2446_v25 = vld [vmem:[%s3786_s5 + $0x1e0] sm:$0xff]  ;;  %v2461_v1 = vld [vmem:[%s3786_s5 + $0x258] sm:$0xff] }
 0x236   :  { %2318 = vmatpush.msra.mxu1 %v927_v16  ;;  %2556 = vmatpush.msra.mxu3 %v2395_v28  ;;  %v3291_v51 = vpop.f32.mrf.mxu2  ;;  %v837_v26 = vld [vmem:[#allocation8 + $0x1088] sm:$0xff]  ;;  %v2377_v16 = vmax.f32 %v1414_v17, 0.0  ;;  %v2445_v28 = vld [vmem:[%s3786_s5 + $0x1d8] sm:$0xff] }
 0x237   :  { %2577 = vmatpush.msra.mxu0 %v2410_v29  ;;  %2347 = vmatpush.msra.mxu2 %v997_v30  ;;  %v3362_v29 = vpop.f32.mrf.mxu0  ;;  %v3364_v30 = vpop.f32.mrf.mxu1  ;;  %v2431_v17 = vld [vmem:[%s3786_s5 + $0x168] sm:$0xff] }
 0x238   :  { %2319 = vmatpush.msra.mxu1 %v917_v32  ;;  %2557 = vmatpush.msra.mxu3 %v2394_v34  ;;  %v2376_v32 = vmax.f32 %v1294_v23, 0.0  ;;  %v2465_v34 = vld [vmem:[%s3786_s5 + $0x278] sm:$0xff]  ;;  %v3373_v38 = vpop.f32.mrf.mxu3  ;;  %v2430_v23 = vld [vmem:[%s3786_s5 + $0x160] sm:$0xff] }
 0x239   :  { %2578 = vmatpush.msra.mxu0 %v2409_v35  ;;  %2348 = vmatpush.msra.mxu2 %v987_v37  ;;  %v2480_v35 = vld [vmem:[%s3786_s5 + $0x2f0] sm:$0xff]  ;;  %v1155_v37 = vperm.slane %v3217_v58, 3 }
 0x23a   :  { %2320 = vmatpush.msra.mxu1 %v907_v9  ;;  %2558 = vmatpush.msra.mxu3 %v2393_v41  ;;  %v2444_v9 = vld [vmem:[%s3786_s5 + $0x1d0] sm:$0xff]  ;;  %v817_v41 = vld [vmem:[#allocation8 + $0xfe8] sm:$0xff] }
 0x23b   :  { %2579 = vmatpush.msra.mxu0 %v2408_v45  ;;  %2349 = vmatpush.msra.mxu2 %v977_v2  ;;  %v2464_v45 = vld [vmem:[%s3786_s5 + $0x270] sm:$0xff]  ;;  %v2479_v2 = vld [vmem:[%s3786_s5 + $0x2e8] sm:$0xff] }
 0x23c   :  { %2321 = vmatpush.msra.mxu1 %v897_v49  ;;  %2559 = vmatpush.msra.mxu3 %v2392_v50  ;;  %v807_v49 = vld [vmem:[#allocation8 + $0xf98] sm:$0xff]  ;;  %v2463_v50 = vld [vmem:[%s3786_s5 + $0x268] sm:$0xff] }
 0x23d   :  { %2580 = vmatpush.msra.mxu0 %v2407_v52  ;;  %2350 = vmatpush.msra.mxu2 %v967_v53  ;;  %v2478_v52 = vld [vmem:[%s3786_s5 + $0x2e0] sm:$0xff]  ;;  %v1554_v53 = vadd.f32 %v3274_v40, %v1155_v37 }
 0x23e   :  { %2322 = vmatpush.msra.mxu1 %v887_v44  ;;  %2560 = vmatpush.msra.mxu3 %v2391_v54  ;;  %v3341_v19 = vpop.f32.mrf.mxu2  ;;  %v2442_v44 = vld [vmem:[%s3786_s5 + $0x1c0] sm:$0xff] }
 0x23f   :  { %2581 = vmatpush.msra.mxu0 %v2406_v56  ;;  %2351 = vmatpush.msra.mxu2 %v957_v57  ;;  %v797_v54 = vld [vmem:[#allocation8 + $0xf48] sm:$0xff]  ;;  %v1157_v56 = vperm.slane %v3217_v58, 5  ;;  %v1574_v40 = vadd.f32 %v3291_v51, %v1554_v53  ;;  %v1833_v61 = vpop.f32.mrf.mxu0 }
 0x240   :  { %2323 = vmatpush.msra.mxu1 %v877_v62  ;;  %2352 = vmatmul.f32.vlgmr.msra.gmra.mxu2 %v3112_v59  ;;  %v2388_v59 = vld [vmem:[%s3786_s5 + $0x10] sm:$0xff]  ;;  %v2462_v57 = vld [vmem:[%s3786_s5 + $0x260] sm:$0xff]  ;;  %v1793_v62 = vpop.f32.mrf.mxu1 }
 0x241   :  { %2561 = vmatpush.msra.mxu3 %v2390_v63  ;;  %2582 = vmatpush.msra.mxu0 %v2405_v0  ;;  %v2441_v63 = vld [vmem:[%s3786_s5 + $0x1b8] sm:$0xff]  ;;  %v1594_v51 = vadd.f32 %v3281_v43, %v1574_v40  ;;  %v1794_v6 = vadd.f32 %v1793_v62, %v1157_v56  ;;  %v2432_v43 = vld [vmem:[%s3786_s5 + $0x170] sm:$0xff] }
 0x242   :  { %2610 = vmatpush.msrb.mxu2 %v2449_v14  ;;  %2324 = vmatpush.msra.mxu1 %v867_v60  ;;  %v2433_v0 = vld [vmem:[%s3786_s5 + $0x178] sm:$0xff]  ;;  %v1813_v14 = vpop.f32.mrf.mxu3  ;;  %v2476_v60 = vld [vmem:[%s3786_s5 + $0x2d0] sm:$0xff] }
 0x243   :  { %2562 = vmatpush.msra.mxu3 %v2389_v55  ;;  %2583 = vmatpush.msra.mxu0 %v2404_v5  ;;  %v2440_v55 = vld [vmem:[%s3786_s5 + $0x1b0] sm:$0xff]  ;;  %v1156_v5 = vperm.slane %v3217_v58, 4 }
 0x244   :  { %2611 = vmatpush.msrb.mxu2 %v2448_v7  ;;  %2325 = vmatpush.msra.mxu1 %v857_v10  ;;  %v2460_v7 = vld [vmem:[%s3786_s5 + $0x250] sm:$0xff]  ;;  %v1614_v10 = vadd.f32 %v3316_v4, %v1594_v51  ;;  %v2459_v4 = vld [vmem:[%s3786_s5 + $0x248] sm:$0xff] }
 0x245   :  { %2563 = vmatpush.msra.mxu3 %v2388_v59  ;;  %2584 = vmatpush.msra.mxu0 %v2403_v11  ;;  %v2475_v11 = vld [vmem:[%s3786_s5 + $0x2c8] sm:$0xff] }
 0x246   :  { %2612 = vmatpush.msrb.mxu2 %v2447_v24  ;;  %2326 = vmatpush.msra.mxu1 %v847_v18  ;;  %v1673_v47 = vpop.f32.mrf.mxu2  ;;  %v2474_v24 = vld [vmem:[%s3786_s5 + $0x2c0] sm:$0xff] }
 0x247   :  { %2564 = vmatpush.msra.mxu3 %v2387_v20  ;;  %2585 = vmatpush.msra.mxu0 %v2402_v21  ;;  %v2438_v18 = vld [vmem:[%s3786_s5 + $0x1a0] sm:$0xff]  ;;  %v1674_v20 = vadd.f32 %v1673_v47, %v1156_v5  ;;  %v1814_v21 = vadd.f32 %v1813_v14, %v1794_v6  ;;  %v2512_v14 = vld [vmem:[%s3786_s5 + $0x3f0] sm:$0xff] }
 0x248   :  { %2613 = vmatpush.msrb.mxu2 %v2446_v25  ;;  %2327 = vmatpush.msra.mxu1 %v837_v26  ;;  %v2458_v25 = vld [vmem:[%s3786_s5 + $0x240] sm:$0xff]  ;;  %v1634_v26 = vadd.f32 %v3311_v3, %v1614_v10  ;;  %v2429_v3 = vld [vmem:[%s3786_s5 + $0x158] sm:$0xff]  ;;  %v1873_v53 = vpop.f32.mrf.mxu1  ;;  %v2452_v6 = vld [vmem:[%s3786_s5 + $0x210] sm:$0xff] }
 0x249   :  { %2586 = vmatmul.f32.vlgmr.msra.gmra.mxu0 %v2377_v16  ;;  %2565 = vmatpush.msra.mxu3 %v2386_v27  ;;  %v3457_v27 = vpop.f32.mrf.mxu0  ;;  %v2473_v16 = vld [vmem:[%s3786_s5 + $0x2b8] sm:$0xff]  ;;  %v1834_v37 = vadd.f32 %v1833_v61, %v1814_v21  ;;  %v2450_v21 = vld [vmem:[%s3786_s5 + $0x200] sm:$0xff] }
 0x24a   :  { %2650 = vmatpush.msrb.mxu0 %v2481_v33  ;;  %2614 = vmatpush.msrb.mxu2 %v2445_v28  ;;  %v2437_v33 = vld [vmem:[%s3786_s5 + $0x198] sm:$0xff]  ;;  %v1154_v28 = vperm.slane %v3217_v58, 2 }
 0x24b   :  { %2328 = vmatpush.msra.mxu1 %v827_v31  ;;  %2566 = vmatmul.f32.vlgmr.msra.gmra.mxu3 %v2376_v32  ;;  %v2457_v31 = vld [vmem:[%s3786_s5 + $0x238] sm:$0xff]  ;;  %v2472_v32 = vld [vmem:[%s3786_s5 + $0x2b0] sm:$0xff] }
 0x24c   :  { %2630 = vmatpush.msrb.mxu3 %v2465_v34  ;;  %2651 = vmatpush.msrb.mxu0 %v2480_v35  ;;  %v2436_v34 = vld [vmem:[%s3786_s5 + $0x190] sm:$0xff]  ;;  %v1694_v35 = vadd.f32 %v3318_v15, %v1674_v20  ;;  %v2471_v15 = vld [vmem:[%s3786_s5 + $0x2a8] sm:$0xff]  ;;  %v2422_v20 = vld [vmem:[%s3786_s5 + $0x120] sm:$0xff] }
 0x24d   :  { %2615 = vmatpush.msrb.mxu2 %v2444_v9  ;;  %2329 = vmatpush.msra.mxu1 %v817_v41  ;;  %v2428_v9 = vld [vmem:[%s3786_s5 + $0x150] sm:$0xff] }
 0x24e   :  { %2631 = vmatpush.msrb.mxu3 %v2464_v45  ;;  %2652 = vmatpush.msrb.mxu0 %v2479_v2  ;;  %v3430_v59 = vpop.f32.mrf.mxu2  ;;  %v2456_v41 = vld [vmem:[%s3786_s5 + $0x230] sm:$0xff]  ;;  %v1654_v45 = vadd.f32 %v3341_v19, %v1634_v26  ;;  %v1893_v2 = vpop.f32.mrf.mxu3  ;;  %v2427_v19 = vld [vmem:[%s3786_s5 + $0x148] sm:$0xff]  ;;  %v2421_v26 = vld [vmem:[%s3786_s5 + $0x118] sm:$0xff] }
 0x24f   :  { %2616 = vmatpush.msrb.mxu2 %v2443_v46  ;;  %2330 = vmatpush.msra.mxu1 %v807_v49  ;;  %v2435_v46 = vld [vmem:[%s3786_s5 + $0x188] sm:$0xff]  ;;  %v1434_v49 = vadd.f32 %v3242_v12, %v1154_v28  ;;  %v2434_v12 = vld [vmem:[%s3786_s5 + $0x180] sm:$0xff]  ;;  %v2420_v28 = vld [vmem:[%s3786_s5 + $0x110] sm:$0xff] }
 0x250   :  { %2632 = vmatpush.msrb.mxu3 %v2463_v50  ;;  %2653 = vmatpush.msrb.mxu0 %v2478_v52  ;;  %v1714_v50 = vadd.f32 %v3364_v30, %v1694_v35  ;;  %v2455_v52 = vld [vmem:[%s3786_s5 + $0x228] sm:$0xff]  ;;  %v2379_v56 = vmax.f32 %v1654_v45, 0.0  ;;  %v2506_v45 = vld [vmem:[%s3786_s5 + $0x3c0] sm:$0xff] }
 0x251   :  { %2617 = vmatpush.msrb.mxu2 %v2442_v44  ;;  %2331 = vmatpush.msra.mxu1 %v797_v54  ;;  %v2470_v44 = vld [vmem:[%s3786_s5 + $0x2a0] sm:$0xff]  ;;  %v1454_v40 = vadd.f32 %v3195_v48, %v1434_v49  ;;  %v2453_v48 = vld [vmem:[%s3786_s5 + $0x218] sm:$0xff]  ;;  %v2507_v35 = vld [vmem:[%s3786_s5 + $0x3c8] sm:$0xff] }
 0x252   :  { %2633 = vmatpush.msrb.mxu3 %v2462_v57  ;;  %2654 = vmatpush.msrb.mxu0 %v2477_v36  ;;  %v2426_v54 = vld [vmem:[%s3786_s5 + $0x140] sm:$0xff]  ;;  %v2469_v36 = vld [vmem:[%s3786_s5 + $0x298] sm:$0xff]  ;;  %v1734_v61 = vadd.f32 %v3362_v29, %v1714_v50  ;;  %v2468_v29 = vld [vmem:[%s3786_s5 + $0x290] sm:$0xff] }
 0x253   :  { %2332 = vmatmul.f32.vlgmr.msra.gmra.mxu1 %v3104_v39  ;;  %2618 = vmatpush.msrb.mxu2 %v2441_v63  ;;  %v2439_v39 = vld [vmem:[%s3786_s5 + $0x1a8] sm:$0xff]  ;;  %v2454_v57 = vld [vmem:[%s3786_s5 + $0x220] sm:$0xff]  ;;  %v2513_v63 = vld [vmem:[%s3786_s5 + $0x3f8] sm:$0xff] }
 0x254   :  { %2590 = vmatpush.msrb.mxu1 %v2433_v0  ;;  %2634 = vmatpush.msrb.mxu3 %v2461_v1  ;;  %v2425_v0 = vld [vmem:[%s3786_s5 + $0x138] sm:$0xff]  ;;  %v3523_v1 = vpop.f32.mrf.mxu0  ;;  %v1754_v51 = vadd.f32 %v3430_v59, %v1734_v61  ;;  %v2511_v59 = vld [vmem:[%s3786_s5 + $0x3e8] sm:$0xff]  ;;  %v2496_v49 = vld [vmem:[%s3786_s5 + $0x370] sm:$0xff]  ;;  %v1158_v61 = vperm.slane %v3217_v58, 6 }
 0x255   :  { %2655 = vmatpush.msrb.mxu0 %v2476_v60  ;;  %2619 = vmatpush.msrb.mxu2 %v2440_v55  ;;  %v2424_v60 = vld [vmem:[%s3786_s5 + $0x130] sm:$0xff] }
 0x256   :  { %2591 = vmatpush.msrb.mxu1 %v2432_v43  ;;  %2635 = vmatpush.msrb.mxu3 %v2460_v7  ;;  %v1853_v47 = vpop.f32.mrf.mxu2  ;;  %v3538_v55 = vpop.f32.mrf.mxu3  ;;  %v2467_v43 = vld [vmem:[%s3786_s5 + $0x288] sm:$0xff]  ;;  %v1474_v7 = vadd.f32 %v3254_v22, %v1454_v40  ;;  %v2466_v22 = vld [vmem:[%s3786_s5 + $0x280] sm:$0xff]  ;;  %v2504_v50 = vld [vmem:[%s3786_s5 + $0x3b0] sm:$0xff] }
 0x257   :  { %2656 = vmatpush.msrb.mxu0 %v2475_v11  ;;  %2620 = vmatpush.msrb.mxu2 %v2439_v39  ;;  %v1854_v30 = vadd.f32 %v1853_v47, %v1834_v37  ;;  %v2423_v11 = vld [vmem:[%s3786_s5 + $0x128] sm:$0xff]  ;;  %v3555_v39 = vpop.f32.mrf.mxu1  ;;  %v2497_v47 = vld [vmem:[%s3786_s5 + $0x378] sm:$0xff]  ;;  %v2526_v40 = vld [vmem:[%s3786_s5 + $0x460] sm:$0xff] }
 0x258   :  { %2592 = vmatpush.msrb.mxu1 %v2431_v17  ;;  %2636 = vmatpush.msrb.mxu3 %v2459_v4  ;;  %v2451_v17 = vld [vmem:[%s3786_s5 + $0x208] sm:$0xff]  ;;  %v1494_v4 = vadd.f32 %v3244_v13, %v1474_v7 }
 0x259   :  { %2657 = vmatpush.msrb.mxu0 %v2474_v24  ;;  %2621 = vmatpush.msrb.mxu2 %v2438_v18  ;;  %v1874_v62 = vadd.f32 %v1873_v53, %v1854_v30  ;;  %v1774_v24 = vadd.f32 %v3373_v38, %v1754_v51  ;;  %v2510_v18 = vld [vmem:[%s3786_s5 + $0x3e0] sm:$0xff]  ;;  %v1159_v38 = vperm.slane %v3217_v58, 7  ;;  %v2419_v37 = vld [vmem:[%s3786_s5 + $0x108] sm:$0xff]  ;;  %v2528_v53 = vld [vmem:[%s3786_s5 + $0x470] sm:$0xff] }
 0x25a   :  { %2593 = vmatpush.msrb.mxu1 %v2430_v23  ;;  %2637 = vmatpush.msrb.mxu3 %v2458_v25  ;;  %v1514_v13 = vadd.f32 %v3279_v42, %v1494_v4  ;;  %v2509_v25 = vld [vmem:[%s3786_s5 + $0x3d8] sm:$0xff]  ;;  %v2508_v42 = vld [vmem:[%s3786_s5 + $0x3d0] sm:$0xff]  ;;  %v2503_v30 = vld [vmem:[%s3786_s5 + $0x3a8] sm:$0xff] }
 0x25b   :  { %2658 = vmatpush.msrb.mxu0 %v2473_v16  ;;  %2622 = vmatpush.msrb.mxu2 %v2437_v33  ;;  %v1894_v10 = vadd.f32 %v1893_v2, %v1874_v62  ;;  %v2380_v33 = vmax.f32 %v1774_v24, 0.0  ;;  %v2492_v58 = vld [vmem:[%s3786_s5 + $0x350] sm:$0xff]  ;;  %v2499_v7 = vld [vmem:[%s3786_s5 + $0x388] sm:$0xff]  ;;  %v2522_v4 = vld [vmem:[%s3786_s5 + $0x440] sm:$0xff] }
 0x25c   :  { %2594 = vmatpush.msrb.mxu1 %v2429_v3  ;;  %2638 = vmatpush.msrb.mxu3 %v2457_v31  ;;  %v2033_v16 = vpop.f32.mrf.mxu0 }
 0x25d   :  { %2659 = vmatpush.msrb.mxu0 %v2472_v32  ;;  %2623 = vmatpush.msrb.mxu2 %v2436_v34  ;;  %v2381_v23 = vmax.f32 %v1894_v10, 0.0  ;;  %v1534_v32 = vadd.f32 %v3237_v8, %v1514_v13  ;;  %v2034_v34 = vadd.f32 %v2033_v16, %v1159_v38  ;;  %v2418_v8 = vld [vmem:[%s3786_s5 + $0x100] sm:$0xff]  ;;  %v2523_v10 = vld [vmem:[%s3786_s5 + $0x448] sm:$0xff]  ;;  %v2485_v38 = vld [vmem:[%s3786_s5 + $0x318] sm:$0xff] }
 0x25e   :  { %2595 = vmatpush.msrb.mxu1 %v2428_v9  ;;  %2639 = vmatpush.msrb.mxu3 %v2456_v41  ;;  %v3540_v5 = vpop.f32.mrf.mxu2  ;;  %v3588_v3 = vpop.f32.mrf.mxu3  ;;  %v2486_v13 = vld [vmem:[%s3786_s5 + $0x320] sm:$0xff] }
 0x25f   :  { %2660 = vmatpush.msrb.mxu0 %v2471_v15  ;;  %2624 = vmatpush.msrb.mxu2 %v2435_v46  ;;  %v2378_v2 = vmax.f32 %v1534_v32, 0.0  ;;  %v2505_v15 = vld [vmem:[%s3786_s5 + $0x3b8] sm:$0xff] }
 0x260   :  { %2596 = vmatpush.msrb.mxu1 %v2427_v19  ;;  %2640 = vmatpush.msrb.mxu3 %v2455_v52  ;;  %v2529_v19 = vld [vmem:[%s3786_s5 + $0x478] sm:$0xff] }
 0x261   :  { %2661 = vmatpush.msrb.mxu0 %v2470_v44  ;;  %2625 = vmatpush.msrb.mxu2 %v2434_v12  ;;  %v2495_v12 = vld [vmem:[%s3786_s5 + $0x368] sm:$0xff]  ;;  %v2545_v32 = vld [vmem:[%s3786_s5 + $0x4f8] sm:$0xff] }
 0x262   :  { %2597 = vmatpush.msrb.mxu1 %v2426_v54  ;;  %2626 = vmatmul.f32.vlgmr.msrb.gmra.mxu2 %v2379_v56  ;;  %v2527_v54 = vld [vmem:[%s3786_s5 + $0x468] sm:$0xff]  ;;  %v2494_v56 = vld [vmem:[%s3786_s5 + $0x360] sm:$0xff] }
 0x263   :  { %2641 = vmatpush.msrb.mxu3 %v2454_v57  ;;  %2662 = vmatpush.msrb.mxu0 %v2469_v36  ;;  %v2502_v57 = vld [vmem:[%s3786_s5 + $0x3a0] sm:$0xff] }
 0x264   :  { %2690 = vmatpush.msra.mxu2 %v2513_v63  ;;  %2598 = vmatpush.msrb.mxu1 %v2425_v0  ;;  %v2113_v36 = vpop.f32.mrf.mxu0  ;;  %v2493_v63 = vld [vmem:[%s3786_s5 + $0x358] sm:$0xff] }
 0x265   :  { %2642 = vmatpush.msrb.mxu3 %v2453_v48  ;;  %2663 = vmatpush.msrb.mxu0 %v2468_v29  ;;  %v2501_v0 = vld [vmem:[%s3786_s5 + $0x398] sm:$0xff]  ;;  %v2500_v29 = vld [vmem:[%s3786_s5 + $0x390] sm:$0xff] }
 0x266   :  { %2691 = vmatpush.msra.mxu2 %v2512_v14  ;;  %2599 = vmatpush.msrb.mxu1 %v2424_v60  ;;  %v2053_v31 = vpop.f32.mrf.mxu2  ;;  %v2093_v52 = vpop.f32.mrf.mxu3  ;;  %v2525_v48 = vld [vmem:[%s3786_s5 + $0x458] sm:$0xff]  ;;  %v2524_v14 = vld [vmem:[%s3786_s5 + $0x450] sm:$0xff]  ;;  %v1914_v60 = vadd.f32 %v3538_v55, %v1158_v61  ;;  %v2490_v55 = vld [vmem:[%s3786_s5 + $0x340] sm:$0xff] }
 0x267   :  { %2643 = vmatpush.msrb.mxu3 %v2452_v6  ;;  %2664 = vmatpush.msrb.mxu0 %v2467_v43  ;;  %v2054_v41 = vadd.f32 %v2053_v31, %v2034_v34  ;;  %v2491_v43 = vld [vmem:[%s3786_s5 + $0x348] sm:$0xff]  ;;  %v2544_v34 = vld [vmem:[%s3786_s5 + $0x4f0] sm:$0xff] }
 0x268   :  { %2692 = vmatpush.msra.mxu2 %v2511_v59  ;;  %2600 = vmatpush.msrb.mxu1 %v2423_v11  ;;  %v2073_v9 = vpop.f32.mrf.mxu1  ;;  %v2498_v59 = vld [vmem:[%s3786_s5 + $0x380] sm:$0xff]  ;;  %v1934_v11 = vadd.f32 %v3457_v27, %v1914_v60  ;;  %v2515_v31 = vld [vmem:[%s3786_s5 + $0x408] sm:$0xff] }
 0x269   :  { %2644 = vmatpush.msrb.mxu3 %v2451_v17  ;;  %2665 = vmatpush.msrb.mxu0 %v2466_v22  ;;  %v2074_v46 = vadd.f32 %v2073_v9, %v2054_v41  ;;  %v2489_v22 = vld [vmem:[%s3786_s5 + $0x338] sm:$0xff]  ;;  %v2542_v9 = vld [vmem:[%s3786_s5 + $0x4e0] sm:$0xff] }
 0x26a   :  { %2693 = vmatpush.msra.mxu2 %v2510_v18  ;;  %2601 = vmatpush.msrb.mxu1 %v2422_v20  ;;  %v1954_v24 = vadd.f32 %v3540_v5, %v1934_v11  ;;  %v2488_v18 = vld [vmem:[%s3786_s5 + $0x330] sm:$0xff]  ;;  %v2487_v20 = vld [vmem:[%s3786_s5 + $0x328] sm:$0xff]  ;;  %v1149_v41 = vld [vmem:[#allocation10 + $0x8] sm:$0x3] }
 0x26b   :  { %2666 = vmatmul.f32.vlgmr.msrb.gmra.mxu0 %v2381_v23  ;;  %2645 = vmatpush.msrb.mxu3 %v2450_v21  ;;  %v2094_v44 = vadd.f32 %v2093_v52, %v2074_v46  ;;  %v2521_v21 = vld [vmem:[%s3786_s5 + $0x438] sm:$0xff]  ;;  %v2520_v5 = vld [vmem:[%s3786_s5 + $0x430] sm:$0xff]  ;;  %v2539_v46 = vld [vmem:[%s3786_s5 + $0x4c8] sm:$0xff] }
 0x26c   :  { %2694 = vmatpush.msra.mxu2 %v2509_v25  ;;  %2602 = vmatpush.msrb.mxu1 %v2421_v26  ;;  %v1974_v27 = vadd.f32 %v3555_v39, %v1954_v24  ;;  %v2519_v39 = vld [vmem:[%s3786_s5 + $0x428] sm:$0xff]  ;;  %v2518_v25 = vld [vmem:[%s3786_s5 + $0x420] sm:$0xff]  ;;  %v2484_v26 = vld [vmem:[%s3786_s5 + $0x310] sm:$0xff] }
 0x26d   :  { %2646 = vmatmul.f32.vlgmr.msrb.gmra.mxu3 %v2380_v33  ;;  %v2114_v62 = vadd.f32 %v2113_v36, %v2094_v44  ;;  %v2483_v33 = vld [vmem:[%s3786_s5 + $0x308] sm:$0xff]  ;;  %2730 = vmatpush.msra.mxu0 %v2545_v32  ;;  %v2537_v52 = vld [vmem:[%s3786_s5 + $0x4b8] sm:$0xff]  ;;  %v2536_v44 = vld [vmem:[%s3786_s5 + $0x4b0] sm:$0xff] }
 0x26e   :  { %2695 = vmatpush.msra.mxu2 %v2508_v42  ;;  %2603 = vmatpush.msrb.mxu1 %v2420_v28  ;;  %v2133_v51 = vpop.f32.mrf.mxu2  ;;  %v1994_v23 = vadd.f32 %v3588_v3, %v1974_v27  ;;  %v2482_v42 = vld [vmem:[%s3786_s5 + $0x300] sm:$0xff]  ;;  %v2517_v3 = vld [vmem:[%s3786_s5 + $0x418] sm:$0xff] }
 0x26f   :  { %2710 = vmatpush.msra.mxu3 %v2529_v19  ;;  %v2134_v6 = vadd.f32 %v2133_v51, %v2114_v62  ;;  %2731 = vmatpush.msra.mxu0 %v2544_v34  ;;  %v2538_v19 = vld [vmem:[%s3786_s5 + $0x4c0] sm:$0xff]  ;;  %v1161_v51 = vperm.slane %v1149_v41, 1 }
 0x270   :  { %2696 = vmatpush.msra.mxu2 %v2507_v35  ;;  %2604 = vmatpush.msrb.mxu1 %v2419_v37  ;;  %v2014_v16 = vadd.f32 %v3523_v1, %v1994_v23  ;;  %v2516_v1 = vld [vmem:[%s3786_s5 + $0x410] sm:$0xff]  ;;  %v2514_v35 = vld [vmem:[%s3786_s5 + $0x400] sm:$0xff]  ;;  %v2543_v37 = vld [vmem:[%s3786_s5 + $0x4e8] sm:$0xff] }
 0x271   :  { %2711 = vmatpush.msra.mxu3 %v2528_v53  ;;  %v2383_v17 = vmax.f32 %v2134_v6, 0.0  ;;  %2732 = vmatpush.msra.mxu0 %v2543_v37  ;;  %v2534_v62 = vld [vmem:[%s3786_s5 + $0x4a0] sm:$0xff] }
 0x272   :  { %2697 = vmatpush.msra.mxu2 %v2506_v45  ;;  %2605 = vmatpush.msrb.mxu1 %v2418_v8  ;;  %v2382_v28 = vmax.f32 %v2014_v16, 0.0  ;;  %v2541_v45 = vld [vmem:[%s3786_s5 + $0x4d8] sm:$0xff]  ;;  %v1160_v8 = vperm.slane %v1149_v41, 0  ;;  %v2812_v37 = vld [vmem:[#allocation13] ss:$0 sm:$0xff] }
 0x273   :  { %2606 = vmatmul.f32.vlgmr.msrb.gmra.mxu1 %v2378_v2  ;;  %2712 = vmatpush.msra.mxu3 %v2527_v54  ;;  %v2540_v2 = vld [vmem:[%s3786_s5 + $0x4d0] sm:$0xff] }
 0x274   :  { %2670 = vmatpush.msra.mxu1 %v2497_v47  ;;  %2698 = vmatpush.msra.mxu2 %v2505_v15 }
 0x275   :  { %2713 = vmatpush.msra.mxu3 %v2526_v40  ;;  %2733 = vmatpush.msra.mxu0 %v2542_v9 }
 0x276   :  { %2671 = vmatpush.msra.mxu1 %v2496_v49  ;;  %2699 = vmatpush.msra.mxu2 %v2504_v50 }
 0x277   :  { %2714 = vmatpush.msra.mxu3 %v2525_v48  ;;  %2734 = vmatpush.msra.mxu0 %v2541_v45  ;;  %v2173_v49 = vpop.f32.mrf.mxu2  ;;  %v2532_v48 = vld [vmem:[%s3786_s5 + $0x490] sm:$0xff] }
 0x278   :  { %2672 = vmatpush.msra.mxu1 %v2495_v12  ;;  %2700 = vmatpush.msra.mxu2 %v2503_v30  ;;  %v2535_v30 = vld [vmem:[%s3786_s5 + $0x4a8] sm:$0xff] }
 0x279   :  { %2715 = vmatpush.msra.mxu3 %v2524_v14  ;;  %2735 = vmatpush.msra.mxu0 %v2540_v2 }
 0x27a   :  { %2673 = vmatpush.msra.mxu1 %v2494_v56  ;;  %2701 = vmatpush.msra.mxu2 %v2502_v57 }
 0x27b   :  { %2716 = vmatpush.msra.mxu3 %v2523_v10  ;;  %2736 = vmatpush.msra.mxu0 %v2539_v46 }
 0x27c   :  { %2674 = vmatpush.msra.mxu1 %v2493_v63  ;;  %2702 = vmatpush.msra.mxu2 %v2501_v0  ;;  %v2533_v0 = vld [vmem:[%s3786_s5 + $0x498] sm:$0xff] }
 0x27d   :  { %2717 = vmatpush.msra.mxu3 %v2522_v4  ;;  %2737 = vmatpush.msra.mxu0 %v2538_v19 }
 0x27e   :  { %2675 = vmatpush.msra.mxu1 %v2492_v58  ;;  %2703 = vmatpush.msra.mxu2 %v2500_v29  ;;  %v2531_v58 = vld [vmem:[%s3786_s5 + $0x488] sm:$0xff]  ;;  %v2530_v29 = vld [vmem:[%s3786_s5 + $0x480] sm:$0xff] }
 0x27f   :  { %2718 = vmatpush.msra.mxu3 %v2521_v21  ;;  %2738 = vmatpush.msra.mxu0 %v2537_v52 }
 0x280   :  { %2676 = vmatpush.msra.mxu1 %v2491_v43  ;;  %2704 = vmatpush.msra.mxu2 %v2499_v7 }
 0x281   :  { %2719 = vmatpush.msra.mxu3 %v2520_v5  ;;  %v2193_v53 = vpop.f32.mrf.mxu3  ;;  %2739 = vmatpush.msra.mxu0 %v2536_v44  ;;  %v2253_v40 = vpop.f32.mrf.mxu2 }
 0x282   :  { %2677 = vmatpush.msra.mxu1 %v2490_v55  ;;  %2705 = vmatpush.msra.mxu2 %v2498_v59  ;;  %v2213_v54 = vpop.f32.mrf.mxu0 }
 0x283   :  { %2706 = vmatmul.f32.vlgmr.msra.gmra.mxu2 %v2383_v17  ;;  %2720 = vmatpush.msra.mxu3 %v2519_v39 }
 0x284   :  { %2678 = vmatpush.msra.mxu1 %v2489_v22  ;;  %2740 = vmatpush.msra.mxu0 %v2535_v30 }
 0x285   :  { %2721 = vmatpush.msra.mxu3 %v2518_v25 }
 0x286   :  { %2679 = vmatpush.msra.mxu1 %v2488_v18  ;;  %2741 = vmatpush.msra.mxu0 %v2534_v62  ;;  %v2811_v18 = vld [vmem:[#allocation11] ss:$0 sm:$0xff] }
 0x287   :  { %2722 = vmatpush.msra.mxu3 %v2517_v3 }
 0x288   :  { %2680 = vmatpush.msra.mxu1 %v2487_v20  ;;  %2742 = vmatpush.msra.mxu0 %v2533_v0 }
 0x289   :  { %2723 = vmatpush.msra.mxu3 %v2516_v1 }
 0x28a   :  { %2681 = vmatpush.msra.mxu1 %v2486_v13  ;;  %2743 = vmatpush.msra.mxu0 %v2532_v48 }
 0x28b   :  { %2724 = vmatpush.msra.mxu3 %v2515_v31  ;;  %v2153_v47 = vpop.f32.mrf.mxu1 }
 0x28c   :  { %2682 = vmatpush.msra.mxu1 %v2485_v38  ;;  %v2154_v15 = vadd.f32 %v2153_v47, %v1160_v8  ;;  %2744 = vmatpush.msra.mxu0 %v2531_v58  ;;  %v2813_v8 = vld [vmem:[#allocation2] ss:$0 sm:$0xff] }
 0x28d   :  { %2725 = vmatpush.msra.mxu3 %v2514_v35 }
 0x28e   :  { %2683 = vmatpush.msra.mxu1 %v2484_v26  ;;  %v2174_v50 = vadd.f32 %v2173_v49, %v2154_v15  ;;  %2745 = vmatpush.msra.mxu0 %v2530_v29 }
 0x290   :  { %2684 = vmatpush.msra.mxu1 %v2483_v33  ;;  %v2194_v12 = vadd.f32 %v2193_v53, %v2174_v50 }
 0x292   :  { %2685 = vmatpush.msra.mxu1 %v2482_v42  ;;  %v2214_v56 = vadd.f32 %v2213_v54, %v2194_v12 }
 0x293   :  { %2686 = vmatmul.f32.vlgmr.msra.gmra.mxu1 %v2382_v28 }
 0x2a1   :  { %v2273_v14 = vpop.f32.mrf.mxu2 }
 0x2a2   :  { %v2274_v60 = vadd.f32 %v2273_v14, %v1161_v51 }
 0x2a4   :  { %v2293_v6 = vpop.f32.mrf.mxu3  ;;  %v2313_v7 = vpop.f32.mrf.mxu0 }
 0x2a5   :  { %v2294_v43 = vadd.f32 %v2293_v6, %v2274_v60 }
 0x2a7   :  { %v2314_v10 = vadd.f32 %v2313_v7, %v2294_v43 }
 0x2ae   :  { %v2233_v57 = vpop.f32.mrf.mxu1  ;;  %v2373_v22 = vpop.f32.mrf.mxu3 }
 0x2af   :  { %v2234_v36 = vadd.f32 %v2233_v57, %v2214_v56 }
 0x2b1   :  { %v2254_v61 = vadd.f32 %v2253_v40, %v2234_v36 }
 0x2b3   :  { %v2384_v63 = vmax.f32 %v2254_v61, 0.0 }
 0x2b5   :  { %2726 = vmatmul.f32.vlgmr.msra.gmra.mxu3 %v2384_v63 }
 0x2c3   :  { %v2353_v11 = vpop.f32.mrf.mxu2 }
 0x2c6   :  { %v2587_v21 = vpop.f32.mrf.mxu0 }
 0x2ce   :  { %v2567_v27 = vpop.f32.mrf.mxu3 }
 0x2cf   :  { %v2568_v20 = vadd.f32 %v2811_v18, %v2567_v27 }
 0x2d0   :  { %v2333_v55 = vpop.f32.mrf.mxu1 }
 0x2d1   :  { %v2334_v59 = vadd.f32 %v2333_v55, %v2314_v10  ;;  %v2588_v13 = vadd.f32 %v2587_v21, %v2568_v20 }
 0x2d3   :  { %v2354_v17 = vadd.f32 %v2353_v11, %v2334_v59 }
 0x2d5   :  { %v2374_v4 = vadd.f32 %v2373_v22, %v2354_v17 }
 0x2d7   :  { %v2385_v24 = vmax.f32 %v2374_v4, 0.0 }
 0x2d9   :  { %2746 = vmatmul.f32.vlgmr.msra.gmra.mxu0 %v2385_v24 }
 0x2e5   :  { %v2627_v23 = vpop.f32.mrf.mxu2 }
 0x2e8   :  { %v2667_v16 = vpop.f32.mrf.mxu0 }
 0x2f0   :  { %v2607_v5 = vpop.f32.mrf.mxu1  ;;  %v2647_v25 = vpop.f32.mrf.mxu3 }
 0x2f1   :  { %v2608_v39 = vadd.f32 %v2607_v5, %v2588_v13 }
 0x2f3   :  { %v2628_v38 = vadd.f32 %v2627_v23, %v2608_v39 }
 0x2f5   :  { %v2648_v26 = vadd.f32 %v2647_v25, %v2628_v38 }
 0x2f7   :  { %v2668_v42 = vadd.f32 %v2667_v16, %v2648_v26 }
 0x306   :  { %v2707_v3 = vpop.f32.mrf.mxu2 }
 0x310   :  { %v2687_v33 = vpop.f32.mrf.mxu1 }
 0x311   :  { %v2688_v28 = vadd.f32 %v2687_v33, %v2668_v42 }
 0x313   :  { %v2708_v31 = vadd.f32 %v2707_v3, %v2688_v28 }
 0x338   :  { %v2727_v1 = vpop.f32.mrf.mxu3 }
 0x339   :  { %v2728_v32 = vadd.f32 %v2727_v1, %v2708_v31 }
 0x356   :  { %v2747_v34 = vpop.f32.mrf.mxu0 }
 0x357   :  { %v2748_v35 = vadd.f32 %v2747_v34, %v2728_v32 }
 0x359   :  { %v2750_v9 = vmax.f32 %v2748_v35, 0.0 }
 0x35b   :  { %v2755_v41 = vmul.f32 %v2812_v37, %v2750_v9 }
 0x35d   :  { %v2757_v45 = vsel %vm2756_vm2, %v2755_v41, 0.0 }
 0x35e   :  { %2758 = vadd.xlane.f32.xlu0 %v2757_v45 }
 0x3d1   :  { %v2759_v2 = vpop.xlane.xlu0 %2758 }
 0x3d2   :  { %v2764_v47 = vadd.f32 %v2813_v8, %v2759_v2 }
 0x3d4   :  { %v2765_v15 = vand.u32 2147483647, %v2764_v47  ;;  %vm2771_vm4 = vcmp.ge.f32.partialorder %v2764_v47, 0.0 }
 0x3d6   :  { %v2766_v46 = vsub.f32 0.0, %v2765_v15 }
 0x3d8   :  { %v2767_v49 = vmul.f32 1.442695, %v2766_v46 }
 0x3da   :  { %2814 = vpow2.f32 %v2767_v49 }
 0x3e0   :  { %v2815_v50 = vpop.eup %2814 }
 0x3e1   :  { %v2769_v19 = vadd.f32 1.0, %v2815_v50 }
 0x3e3   :  { %2816 = vrcp.f32 %v2769_v19 }
 0x3e9   :  { %v2817_v52 = vpop.eup %2816 }
 0x3ea   :  { %v2772_v53 = vmul.f32 %v2817_v52, %v2815_v50 }
 0x3ec   :  { %v2773_v44 = vsel %vm2771_vm4, %v2817_v52, %v2772_v53 }
 0x3ed   :  { %2775 = vst.msk [vmem:[%s3790_s9] sm:$0x3] %vm2774_vm3, %v2773_v44 }
 0x3ee   :  { %2780 = vsyncpa [#allocation4], 1 }
 0x3ef   :  { %2781 = vsyncpa [#allocation6], 1 }
 0x3f0   :  { %2782 = vsyncpa [#allocation9], 1 }
 0x3f1   :  { %2783 = vsyncpa [#allocation12], 1 }

</bundles_post_ra>
